<compile_context>
chip_gen: v5e
topology: v5e:2x2
jax: 0.10.0
libtpu: 0.0.40
codegen_flags: <defaults>
</compile_context>

<pallas_src>
import jax
import jax.numpy as jnp
from jax import lax
from jax.experimental import pallas as pl
from jax.experimental.pallas import tpu as pltpu


# ----------------------------- Pallas kernels --------------------------------

def _conv1_pool_kernel(p_ref, w_ref, b_ref, o_ref):
    # p_ref: (1, 4*NP, KK)   im2col patches, rows ordered (dh, dw, b, ph, pw)
    # w_ref: (1, KK, OC)     b_ref: (1, 1, OC)
    # o_ref: (1, NP, OC)     pooled output, rows ordered (b, ph, pw)
    w = w_ref[0]
    b = b_ref[0]
    npool = o_ref.shape[1]
    # Chunk the pooled rows so live values stay small (multiple of 8 sublanes).
    ck = next((c for c in (56, 64, 48, 32, 16, 8) if npool % c == 0), npool)
    for i in range(npool // ck):
        m = None
        for q in range(4):  # the 4 positions of the 2x2 pooling window
            xs = p_ref[0, q * npool + i * ck: q * npool + (i + 1) * ck, :]
            y = jnp.dot(xs, w, preferred_element_type=jnp.float32) + b
            y = jnp.maximum(y, 0.0)
            m = y if m is None else jnp.maximum(m, y)
        o_ref[0, i * ck:(i + 1) * ck, :] = m


def _conv2_pool_fc_kernel(p_ref, w2_ref, b2_ref, wf_ref, bf_ref, o_ref,
                          y_ref, m_ref):
    # p_ref : (1, 4*NPOS*B, KK)  patches, rows ordered (dh, dw, ph2, pw2, b)
    # w2_ref: (1, KK, OC)        b2_ref: (1, 1, OC)
    # wf_ref: (1, NPOS, OC, F)   bf_ref: (1, 1, F)
    # o_ref : (1, B, F)          per-stream fc1 features
    # y_ref : (4*NPOS*B, OC) scratch (conv2 output), m_ref: (NPOS*B, OC) scratch
    y = jnp.dot(p_ref[0], w2_ref[0], preferred_element_type=jnp.float32)
    y_ref[...] = jnp.maximum(y + b2_ref[0], 0.0)

    q = m_ref.shape[0]  # NPOS*B
    m_ref[...] = jnp.maximum(
        jnp.maximum(y_ref[0:q, :], y_ref[q:2 * q, :]),
        jnp.maximum(y_ref[2 * q:3 * q, :], y_ref[3 * q:4 * q, :]))

    B = o_ref.shape[1]
    F = o_ref.shape[2]
    npos = wf_ref.shape[1]
    acc = jnp.broadcast_to(bf_ref[0], (B, F))
    for p in range(npos):  # 25 spatial positions of the 5x5 pooled map
        acc = acc + jnp.dot(m_ref[p * B:(p + 1) * B, :], wf_ref[0, p],
                            preferred_element_type=jnp.float32)
    o_ref[0] = jnp.maximum(acc, 0.0)


def _classifier_kernel(f_ref, w_ref, b_ref, o_ref):
    # f_ref: (S, B, F)  w_ref: (S, F, NC)  b_ref: (1, NC)  o_ref: (B, NC)
    acc = jnp.broadcast_to(b_ref[...], o_ref.shape)
    for s in range(f_ref.shape[0]):
        acc = acc + jnp.dot(f_ref[s], w_ref[s], preferred_element_type=jnp.float32)
    o_ref[...] = acc


# ----------------------------- pallas_call wrappers ---------------------------

def conv1_pool(p1, w1k, b1):
    """p1: [S, 4*NP, KK], w1k: [S, KK, OC], b1: [S, 1, OC] -> [S, NP, OC]."""
    S, M, KK = p1.shape
    OC = w1k.shape[-1]
    NP = M // 4
    return pl.pallas_call(
        _conv1_pool_kernel,
        out_shape=jax.ShapeDtypeStruct((S, NP, OC), jnp.float32),
        grid=(S,),
        in_specs=[
            pl.BlockSpec((1, M, KK), lambda s: (s, 0, 0)),
            pl.BlockSpec((1, KK, OC), lambda s: (s, 0, 0)),
            pl.BlockSpec((1, 1, OC), lambda s: (s, 0, 0)),
        ],
        out_specs=pl.BlockSpec((1, NP, OC), lambda s: (s, 0, 0)),
        compiler_params=pltpu.CompilerParams(dimension_semantics=("parallel",)),
    )(p1, w1k, b1)


def conv2_pool_fc(p2, w2k, b2, wfk, bf):
    """p2: [S, 4*NPOS*B, KK], w2k: [S, KK, OC], b2: [S,1,OC],
    wfk: [S, NPOS, OC, F], bf: [S,1,F]  ->  feats [S, B, F]."""
    S, M, KK = p2.shape
    OC = w2k.shape[-1]
    NPOS = wfk.shape[1]
    F = wfk.shape[-1]
    B = M // (4 * NPOS)
    return pl.pallas_call(
        _conv2_pool_fc_kernel,
        out_shape=jax.ShapeDtypeStruct((S, B, F), jnp.float32),
        grid=(S,),
        in_specs=[
            pl.BlockSpec((1, M, KK), lambda s: (s, 0, 0)),
            pl.BlockSpec((1, KK, OC), lambda s: (s, 0, 0)),
            pl.BlockSpec((1, 1, OC), lambda s: (s, 0, 0)),
            pl.BlockSpec((1, NPOS, OC, F), lambda s: (s, 0, 0, 0)),
            pl.BlockSpec((1, 1, F), lambda s: (s, 0, 0)),
        ],
        out_specs=pl.BlockSpec((1, B, F), lambda s: (s, 0, 0)),
        scratch_shapes=[
            pltpu.VMEM((M, OC), jnp.float32),
            pltpu.VMEM((M // 4, OC), jnp.float32),
        ],
        compiler_params=pltpu.CompilerParams(dimension_semantics=("parallel",)),
    )(p2, w2k, b2, wfk, bf)


def classifier(feats, wck, bcls):
    """feats: [S,B,F], wck: [S,F,NC], bcls: [1,NC] -> [B,NC] (single grid step)."""
    S, B, F = feats.shape
    NC = wck.shape[-1]
    return pl.pallas_call(
        _classifier_kernel,
        out_shape=jax.ShapeDtypeStruct((B, NC), jnp.float32),
        grid=(1,),
        in_specs=[
            pl.BlockSpec((S, B, F), lambda i: (0, 0, 0)),
            pl.BlockSpec((S, F, NC), lambda i: (0, 0, 0)),
            pl.BlockSpec((1, NC), lambda i: (0, 0)),
        ],
        out_specs=pl.BlockSpec((B, NC), lambda i: (0, 0)),
        compiler_params=pltpu.CompilerParams(dimension_semantics=("arbitrary",)),
    )(feats, wck, bcls)


# ------------------------------- JAX glue -------------------------------------

def _pool_im2col(x, k, batch_major):
    """x: [S,B,H,W,C] -> patches [S, 4*B*PH*PW, k*k*C].

    Rows are ordered (dh, dw, b, ph, pw) if batch_major else (dh, dw, ph, pw, b),
    where the conv output position is (2*ph+dh, 2*pw+dw); columns are (kh, kw, c).
    This ordering turns the 2x2 maxpool into a max over 4 contiguous row blocks.
    """
    S, B, H, W, C = x.shape
    OH, OW = H - k + 1, W - k + 1
    PH, PW = OH // 2, OW // 2
    cols = [x[:, :, kh:kh + OH, kw:kw + OW, :] for kh in range(k) for kw in range(k)]
    p = jnp.stack(cols, axis=4).reshape(S, B, OH, OW, k * k * C)
    p = p.reshape(S, B, PH, 2, PW, 2, k * k * C)       # (s,b,ph,dh,pw,dw,K)
    if batch_major:
        p = jnp.transpose(p, (0, 3, 5, 1, 2, 4, 6))    # (s,dh,dw,b,ph,pw,K)
    else:
        p = jnp.transpose(p, (0, 3, 5, 2, 4, 1, 6))    # (s,dh,dw,ph,pw,b,K)
    return p.reshape(S, 4 * B * PH * PW, k * k * C)


def multistream_cnn_forward(histograms, params):
    """histograms: [9, B, C, 32, 32] float32 (stacked NCHW, like the PyTorch list)."""
    S, B, C, H, W = histograms.shape
    OC1 = params["w1"].shape[1]                     # 20
    OC2 = params["w2"].shape[1]                     # 50
    F = params["bf1"].shape[-1]
    NC = params["bcls"].shape[0]
    PH1 = (H - 4) // 2                              # 14
    PH2 = (PH1 - 4) // 2                            # 5
    NPOS = PH2 * PH2                                # 25

    x = jnp.transpose(histograms, (0, 1, 3, 4, 2))  # [S,B,H,W,C]

    # ---- stage 1: conv1(5x5, C->20) + relu + maxpool(2x2), one fused kernel ----
    # TODO(synk): im2col gathers stay in XLA glue (pure data movement, a few MB);
    # doing them in-kernel needs reshapes across the tiled dims that do not lower
    # robustly on all TPU generations.
    p1 = _pool_im2col(x, 5, batch_major=True)                        # [S,4*B*196,25C]
    w1k = jnp.transpose(params["w1"], (0, 3, 4, 2, 1)).reshape(S, 25 * C, OC1)
    pooled1 = conv1_pool(p1, w1k, params["b1"].reshape(S, 1, OC1))   # [S,B*196,20]
    pooled1 = pooled1.reshape(S, B, PH1, PH1, OC1)                   # [S,B,14,14,20]

    # ---- stage 2: conv2(5x5, 20->50) + relu + maxpool + fc1 + relu, fused ----
    p2 = _pool_im2col(pooled1, 5, batch_major=False)                 # [S,4*25*B,500]
    w2k = jnp.transpose(params["w2"], (0, 3, 4, 2, 1)).reshape(S, 25 * OC1, OC2)
    # fc1 weights regrouped per 5x5 spatial position; torch flatten order is (c,h,w).
    wfk = params["wf1"].reshape(S, F, OC2, NPOS).transpose(0, 3, 2, 1)  # [S,25,50,F]
    feats = conv2_pool_fc(p2, w2k, params["b2"].reshape(S, 1, OC2),
                          wfk, params["bf1"].reshape(S, 1, F))       # [S,B,F]

    # ---- classifier: cat(features, dim=1) @ Wcls.T + bcls, single grid step ----
    wck = params["wcls"].reshape(NC, S, F).transpose(1, 2, 0)        # [S,F,NC]
    return classifier(feats, wck, params["bcls"].reshape(1, NC))


# --------------------------- pure-JAX reference --------------------------------

def reference_forward(histograms, params):
    S, B, C, H, W = histograms.shape
    feats = []
    for s in range(S):
        x = histograms[s]
        y = lax.conv_general_dilated(x, params["w1"][s], (1, 1), "VALID",
                                     dimension_numbers=("NCHW", "OIHW", "NCHW"))
        y = jnp.maximum(y + params["b1"][s][None, :, None, None], 0.0)
        y = lax.reduce_window(y, -jnp.inf, lax.max, (1, 1, 2, 2), (1, 1, 2, 2), "VALID")
        y = lax.conv_general_dilated(y, params["w2"][s], (1, 1), "VALID",
                                     dimension_numbers=("NCHW", "OIHW", "NCHW"))
        y = jnp.maximum(y + params["b2"][s][None, :, None, None], 0.0)
        y = lax.reduce_window(y, -jnp.inf, lax.max, (1, 1, 2, 2), (1, 1, 2, 2), "VALID")
        y = y.reshape(B, -1)
        y = jnp.maximum(y @ params["wf1"][s].T + params["bf1"][s], 0.0)
        feats.append(y)
    comb = jnp.concatenate(feats, axis=1)
    return comb @ params["wcls"].T + params["bcls"]


# ---------------------------------- main ---------------------------------------

if __name__ == "__main__":
    S, B, C, H, W = 9, 2, 2, 32, 32       # H=W=32 is implied by fc1 in_features=1250
    FEAT, NUM_CLASSES = 32, 10            # feature_size, num_classes (small)

    key = jax.random.PRNGKey(0)
    ks = jax.random.split(key, 9)
    histograms = jax.random.normal(ks[0], (S, B, C, H, W), jnp.float32)

    params = {
        "w1":   0.05 * jax.random.normal(ks[1], (S, 20, C, 5, 5), jnp.float32),
        "b1":   0.05 * jax.random.normal(ks[2], (S, 20), jnp.float32),
        "w2":   0.05 * jax.random.normal(ks[3], (S, 50, 20, 5, 5), jnp.float32),
        "b2":   0.05 * jax.random.normal(ks[4], (S, 50), jnp.float32),
        "wf1":  0.05 * jax.random.normal(ks[5], (S, FEAT, 1250), jnp.float32),
        "bf1":  0.05 * jax.random.normal(ks[6], (S, FEAT), jnp.float32),
        "wcls": 0.05 * jax.random.normal(ks[7], (NUM_CLASSES, S * FEAT), jnp.float32),
        "bcls": 0.05 * jax.random.normal(ks[8], (NUM_CLASSES,), jnp.float32),
    }

    out = jax.jit(multistream_cnn_forward)(histograms, params)
    out = jax.block_until_ready(out)
    assert out.shape == (B, NUM_CLASSES)

    ref = reference_forward(histograms, params)
    if not jnp.allclose(out, ref, rtol=1e-3, atol=1e-3):
        raise SystemExit(f"MISMATCH max_abs_err={float(jnp.max(jnp.abs(out - ref)))}")

    print("KERNEL_OK")
</pallas_src>

<mosaic_0001>
module attributes {stable_mosaic.version = 11 : i64} {
  func.func @_conv1_pool_kernel(%arg0: i32, %arg1: memref<1x1568x50xf32, #tpu.memory_space<vmem>>, %arg2: memref<1x50x20xf32, #tpu.memory_space<vmem>>, %arg3: memref<1x1x20xf32, #tpu.memory_space<vmem>>, %arg4: memref<1x392x20xf32, #tpu.memory_space<vmem>>) attributes {dimension_semantics = [#tpu.dimension_semantics<parallel>], iteration_bounds = array<i64: 9>, scalar_prefetch = 0 : i64, scratch_operands = 0 : i64, tpu.core_type = #tpu.core_type<tc>, window_params = [{transform_indices = @transform_0, window_bounds = array<i64: 1, 1568, 50>}, {transform_indices = @transform_1, window_bounds = array<i64: 1, 50, 20>}, {transform_indices = @transform_2, window_bounds = array<i64: 1, 1, 20>}, {transform_indices = @transform_3, window_bounds = array<i64: 1, 392, 20>}]} {
    %c0 = arith.constant 0 : index
    %c0_0 = arith.constant 0 : index
    %c0_1 = arith.constant 0 : index
    %0 = vector.load %arg2[%c0, %c0_0, %c0_1] : memref<1x50x20xf32, #tpu.memory_space<vmem>>, vector<1x50x20xf32>
    %1 = vector.shape_cast %0 : vector<1x50x20xf32> to vector<50x20xf32>
    %c0_2 = arith.constant 0 : index
    %c0_3 = arith.constant 0 : index
    %c0_4 = arith.constant 0 : index
    %2 = vector.load %arg3[%c0_2, %c0_3, %c0_4] : memref<1x1x20xf32, #tpu.memory_space<vmem>>, vector<1x1x20xf32>
    %3 = vector.shape_cast %2 : vector<1x1x20xf32> to vector<1x20xf32>
    %c0_5 = arith.constant 0 : index
    %c0_6 = arith.constant 0 : index
    %c0_7 = arith.constant 0 : index
    %4 = vector.load %arg1[%c0_5, %c0_6, %c0_7] : memref<1x1568x50xf32, #tpu.memory_space<vmem>>, vector<1x56x50xf32>
    %5 = vector.shape_cast %4 : vector<1x56x50xf32> to vector<56x50xf32>
    %cst = arith.constant dense<0.000000e+00> : vector<56x20xf32>
    %6 = tpu.matmul %5, %1, %cst {dimension_numbers = #tpu.dot_dimension_numbers<[1], [0], [0], [1], [0, 0, 1, 1], [], []>} : vector<56x50xf32>, vector<50x20xf32>, vector<56x20xf32> -> vector<56x20xf32>
    %7 = vector.broadcast %3 : vector<1x20xf32> to vector<56x20xf32>
    %8 = arith.addf %6, %7 : vector<56x20xf32>
    %cst_8 = arith.constant 0.000000e+00 : f32
    %9 = vector.broadcast %cst_8 : f32 to vector<56x20xf32>
    %10 = arith.maximumf %8, %9 : vector<56x20xf32>
    %c0_9 = arith.constant 0 : index
    %c392 = arith.constant 392 : index
    %c0_10 = arith.constant 0 : index
    %11 = vector.load %arg1[%c0_9, %c392, %c0_10] : memref<1x1568x50xf32, #tpu.memory_space<vmem>>, vector<1x56x50xf32>
    %12 = vector.shape_cast %11 : vector<1x56x50xf32> to vector<56x50xf32>
    %cst_11 = arith.constant dense<0.000000e+00> : vector<56x20xf32>
    %13 = tpu.matmul %12, %1, %cst_11 {dimension_numbers = #tpu.dot_dimension_numbers<[1], [0], [0], [1], [0, 0, 1, 1], [], []>} : vector<56x50xf32>, vector<50x20xf32>, vector<56x20xf32> -> vector<56x20xf32>
    %14 = vector.broadcast %3 : vector<1x20xf32> to vector<56x20xf32>
    %15 = arith.addf %13, %14 : vector<56x20xf32>
    %cst_12 = arith.constant 0.000000e+00 : f32
    %16 = vector.broadcast %cst_12 : f32 to vector<56x20xf32>
    %17 = arith.maximumf %15, %16 : vector<56x20xf32>
    %18 = arith.maximumf %10, %17 : vector<56x20xf32>
    %c0_13 = arith.constant 0 : index
    %c784 = arith.constant 784 : index
    %c0_14 = arith.constant 0 : index
    %19 = vector.load %arg1[%c0_13, %c784, %c0_14] : memref<1x1568x50xf32, #tpu.memory_space<vmem>>, vector<1x56x50xf32>
    %20 = vector.shape_cast %19 : vector<1x56x50xf32> to vector<56x50xf32>
    %cst_15 = arith.constant dense<0.000000e+00> : vector<56x20xf32>
    %21 = tpu.matmul %20, %1, %cst_15 {dimension_numbers = #tpu.dot_dimension_numbers<[1], [0], [0], [1], [0, 0, 1, 1], [], []>} : vector<56x50xf32>, vector<50x20xf32>, vector<56x20xf32> -> vector<56x20xf32>
    %22 = vector.broadcast %3 : vector<1x20xf32> to vector<56x20xf32>
    %23 = arith.addf %21, %22 : vector<56x20xf32>
    %cst_16 = arith.constant 0.000000e+00 : f32
    %24 = vector.broadcast %cst_16 : f32 to vector<56x20xf32>
    %25 = arith.maximumf %23, %24 : vector<56x20xf32>
    %26 = arith.maximumf %18, %25 : vector<56x20xf32>
    %c0_17 = arith.constant 0 : index
    %c1176 = arith.constant 1176 : index
    %c0_18 = arith.constant 0 : index
    %27 = vector.load %arg1[%c0_17, %c1176, %c0_18] : memref<1x1568x50xf32, #tpu.memory_space<vmem>>, vector<1x56x50xf32>
    %28 = vector.shape_cast %27 : vector<1x56x50xf32> to vector<56x50xf32>
    %cst_19 = arith.constant dense<0.000000e+00> : vector<56x20xf32>
    %29 = tpu.matmul %28, %1, %cst_19 {dimension_numbers = #tpu.dot_dimension_numbers<[1], [0], [0], [1], [0, 0, 1, 1], [], []>} : vector<56x50xf32>, vector<50x20xf32>, vector<56x20xf32> -> vector<56x20xf32>
    %30 = vector.broadcast %3 : vector<1x20xf32> to vector<56x20xf32>
    %31 = arith.addf %29, %30 : vector<56x20xf32>
    %cst_20 = arith.constant 0.000000e+00 : f32
    %32 = vector.broadcast %cst_20 : f32 to vector<56x20xf32>
    %33 = arith.maximumf %31, %32 : vector<56x20xf32>
    %34 = arith.maximumf %26, %33 : vector<56x20xf32>
    %c0_21 = arith.constant 0 : index
    %c0_22 = arith.constant 0 : index
    %c0_23 = arith.constant 0 : index
    %35 = vector.load %arg4[%c0_21, %c0_22, %c0_23] : memref<1x392x20xf32, #tpu.memory_space<vmem>>, vector<1x56x20xf32>
    %36 = vector.shape_cast %35 : vector<1x56x20xf32> to vector<56x20xf32>
    %37 = vector.shape_cast %34 : vector<56x20xf32> to vector<1x56x20xf32>
    tpu.vector_store %arg4[%c0_21, %c0_22, %c0_23], %37 {strides = array<i32>} : memref<1x392x20xf32, #tpu.memory_space<vmem>>, vector<1x56x20xf32>,
    %c0_24 = arith.constant 0 : index
    %c56 = arith.constant 56 : index
    %c0_25 = arith.constant 0 : index
    %38 = vector.load %arg1[%c0_24, %c56, %c0_25] : memref<1x1568x50xf32, #tpu.memory_space<vmem>>, vector<1x56x50xf32>
    %39 = vector.shape_cast %38 : vector<1x56x50xf32> to vector<56x50xf32>
    %cst_26 = arith.constant dense<0.000000e+00> : vector<56x20xf32>
    %40 = tpu.matmul %39, %1, %cst_26 {dimension_numbers = #tpu.dot_dimension_numbers<[1], [0], [0], [1], [0, 0, 1, 1], [], []>} : vector<56x50xf32>, vector<50x20xf32>, vector<56x20xf32> -> vector<56x20xf32>
    %41 = vector.broadcast %3 : vector<1x20xf32> to vector<56x20xf32>
    %42 = arith.addf %40, %41 : vector<56x20xf32>
    %cst_27 = arith.constant 0.000000e+00 : f32
    %43 = vector.broadcast %cst_27 : f32 to vector<56x20xf32>
    %44 = arith.maximumf %42, %43 : vector<56x20xf32>
    %c0_28 = arith.constant 0 : index
    %c448 = arith.constant 448 : index
    %c0_29 = arith.constant 0 : index
    %45 = vector.load %arg1[%c0_28, %c448, %c0_29] : memref<1x1568x50xf32, #tpu.memory_space<vmem>>, vector<1x56x50xf32>
    %46 = vector.shape_cast %45 : vector<1x56x50xf32> to vector<56x50xf32>
    %cst_30 = arith.constant dense<0.000000e+00> : vector<56x20xf32>
    %47 = tpu.matmul %46, %1, %cst_30 {dimension_numbers = #tpu.dot_dimension_numbers<[1], [0], [0], [1], [0, 0, 1, 1], [], []>} : vector<56x50xf32>, vector<50x20xf32>, vector<56x20xf32> -> vector<56x20xf32>
    %48 = vector.broadcast %3 : vector<1x20xf32> to vector<56x20xf32>
    %49 = arith.addf %47, %48 : vector<56x20xf32>
    %cst_31 = arith.constant 0.000000e+00 : f32
    %50 = vector.broadcast %cst_31 : f32 to vector<56x20xf32>
    %51 = arith.maximumf %49, %50 : vector<56x20xf32>
    %52 = arith.maximumf %44, %51 : vector<56x20xf32>
    %c0_32 = arith.constant 0 : index
    %c840 = arith.constant 840 : index
    %c0_33 = arith.constant 0 : index
    %53 = vector.load %arg1[%c0_32, %c840, %c0_33] : memref<1x1568x50xf32, #tpu.memory_space<vmem>>, vector<1x56x50xf32>
    %54 = vector.shape_cast %53 : vector<1x56x50xf32> to vector<56x50xf32>
    %cst_34 = arith.constant dense<0.000000e+00> : vector<56x20xf32>
    %55 = tpu.matmul %54, %1, %cst_34 {dimension_numbers = #tpu.dot_dimension_numbers<[1], [0], [0], [1], [0, 0, 1, 1], [], []>} : vector<56x50xf32>, vector<50x20xf32>, vector<56x20xf32> -> vector<56x20xf32>
    %56 = vector.broadcast %3 : vector<1x20xf32> to vector<56x20xf32>
    %57 = arith.addf %55, %56 : vector<56x20xf32>
    %cst_35 = arith.constant 0.000000e+00 : f32
    %58 = vector.broadcast %cst_35 : f32 to vector<56x20xf32>
    %59 = arith.maximumf %57, %58 : vector<56x20xf32>
    %60 = arith.maximumf %52, %59 : vector<56x20xf32>
    %c0_36 = arith.constant 0 : index
    %c1232 = arith.constant 1232 : index
    %c0_37 = arith.constant 0 : index
    %61 = vector.load %arg1[%c0_36, %c1232, %c0_37] : memref<1x1568x50xf32, #tpu.memory_space<vmem>>, vector<1x56x50xf32>
    %62 = vector.shape_cast %61 : vector<1x56x50xf32> to vector<56x50xf32>
    %cst_38 = arith.constant dense<0.000000e+00> : vector<56x20xf32>
    %63 = tpu.matmul %62, %1, %cst_38 {dimension_numbers = #tpu.dot_dimension_numbers<[1], [0], [0], [1], [0, 0, 1, 1], [], []>} : vector<56x50xf32>, vector<50x20xf32>, vector<56x20xf32> -> vector<56x20xf32>
    %64 = vector.broadcast %3 : vector<1x20xf32> to vector<56x20xf32>
    %65 = arith.addf %63, %64 : vector<56x20xf32>
    %cst_39 = arith.constant 0.000000e+00 : f32
    %66 = vector.broadcast %cst_39 : f32 to vector<56x20xf32>
    %67 = arith.maximumf %65, %66 : vector<56x20xf32>
    %68 = arith.maximumf %60, %67 : vector<56x20xf32>
    %c0_40 = arith.constant 0 : index
    %c56_41 = arith.constant 56 : index
    %c0_42 = arith.constant 0 : index
    %69 = vector.load %arg4[%c0_40, %c56_41, %c0_42] : memref<1x392x20xf32, #tpu.memory_space<vmem>>, vector<1x56x20xf32>
    %70 = vector.shape_cast %69 : vector<1x56x20xf32> to vector<56x20xf32>
    %71 = vector.shape_cast %68 : vector<56x20xf32> to vector<1x56x20xf32>
    tpu.vector_store %arg4[%c0_40, %c56_41, %c0_42], %71 {strides = array<i32>} : memref<1x392x20xf32, #tpu.memory_space<vmem>>, vector<1x56x20xf32>,
    %c0_43 = arith.constant 0 : index
    %c112 = arith.constant 112 : index
    %c0_44 = arith.constant 0 : index
    %72 = vector.load %arg1[%c0_43, %c112, %c0_44] : memref<1x1568x50xf32, #tpu.memory_space<vmem>>, vector<1x56x50xf32>
    %73 = vector.shape_cast %72 : vector<1x56x50xf32> to vector<56x50xf32>
    %cst_45 = arith.constant dense<0.000000e+00> : vector<56x20xf32>
    %74 = tpu.matmul %73, %1, %cst_45 {dimension_numbers = #tpu.dot_dimension_numbers<[1], [0], [0], [1], [0, 0, 1, 1], [], []>} : vector<56x50xf32>, vector<50x20xf32>, vector<56x20xf32> -> vector<56x20xf32>
    %75 = vector.broadcast %3 : vector<1x20xf32> to vector<56x20xf32>
    %76 = arith.addf %74, %75 : vector<56x20xf32>
    %cst_46 = arith.constant 0.000000e+00 : f32
    %77 = vector.broadcast %cst_46 : f32 to vector<56x20xf32>
    %78 = arith.maximumf %76, %77 : vector<56x20xf32>
    %c0_47 = arith.constant 0 : index
    %c504 = arith.constant 504 : index
    %c0_48 = arith.constant 0 : index
    %79 = vector.load %arg1[%c0_47, %c504, %c0_48] : memref<1x1568x50xf32, #tpu.memory_space<vmem>>, vector<1x56x50xf32>
    %80 = vector.shape_cast %79 : vector<1x56x50xf32> to vector<56x50xf32>
    %cst_49 = arith.constant dense<0.000000e+00> : vector<56x20xf32>
    %81 = tpu.matmul %80, %1, %cst_49 {dimension_numbers = #tpu.dot_dimension_numbers<[1], [0], [0], [1], [0, 0, 1, 1], [], []>} : vector<56x50xf32>, vector<50x20xf32>, vector<56x20xf32> -> vector<56x20xf32>
    %82 = vector.broadcast %3 : vector<1x20xf32> to vector<56x20xf32>
    %83 = arith.addf %81, %82 : vector<56x20xf32>
    %cst_50 = arith.constant 0.000000e+00 : f32
    %84 = vector.broadcast %cst_50 : f32 to vector<56x20xf32>
    %85 = arith.maximumf %83, %84 : vector<56x20xf32>
    %86 = arith.maximumf %78, %85 : vector<56x20xf32>
    %c0_51 = arith.constant 0 : index
    %c896 = arith.constant 896 : index
    %c0_52 = arith.constant 0 : index
    %87 = vector.load %arg1[%c0_51, %c896, %c0_52] : memref<1x1568x50xf32, #tpu.memory_space<vmem>>, vector<1x56x50xf32>
    %88 = vector.shape_cast %87 : vector<1x56x50xf32> to vector<56x50xf32>
    %cst_53 = arith.constant dense<0.000000e+00> : vector<56x20xf32>
    %89 = tpu.matmul %88, %1, %cst_53 {dimension_numbers = #tpu.dot_dimension_numbers<[1], [0], [0], [1], [0, 0, 1, 1], [], []>} : vector<56x50xf32>, vector<50x20xf32>, vector<56x20xf32> -> vector<56x20xf32>
    %90 = vector.broadcast %3 : vector<1x20xf32> to vector<56x20xf32>
    %91 = arith.addf %89, %90 : vector<56x20xf32>
    %cst_54 = arith.constant 0.000000e+00 : f32
    %92 = vector.broadcast %cst_54 : f32 to vector<56x20xf32>
    %93 = arith.maximumf %91, %92 : vector<56x20xf32>
    %94 = arith.maximumf %86, %93 : vector<56x20xf32>
    %c0_55 = arith.constant 0 : index
    %c1288 = arith.constant 1288 : index
    %c0_56 = arith.constant 0 : index
    %95 = vector.load %arg1[%c0_55, %c1288, %c0_56] : memref<1x1568x50xf32, #tpu.memory_space<vmem>>, vector<1x56x50xf32>
    %96 = vector.shape_cast %95 : vector<1x56x50xf32> to vector<56x50xf32>
    %cst_57 = arith.constant dense<0.000000e+00> : vector<56x20xf32>
    %97 = tpu.matmul %96, %1, %cst_57 {dimension_numbers = #tpu.dot_dimension_numbers<[1], [0], [0], [1], [0, 0, 1, 1], [], []>} : vector<56x50xf32>, vector<50x20xf32>, vector<56x20xf32> -> vector<56x20xf32>
    %98 = vector.broadcast %3 : vector<1x20xf32> to vector<56x20xf32>
    %99 = arith.addf %97, %98 : vector<56x20xf32>
    %cst_58 = arith.constant 0.000000e+00 : f32
    %100 = vector.broadcast %cst_58 : f32 to vector<56x20xf32>
    %101 = arith.maximumf %99, %100 : vector<56x20xf32>
    %102 = arith.maximumf %94, %101 : vector<56x20xf32>
    %c0_59 = arith.constant 0 : index
    %c112_60 = arith.constant 112 : index
    %c0_61 = arith.constant 0 : index
    %103 = vector.load %arg4[%c0_59, %c112_60, %c0_61] : memref<1x392x20xf32, #tpu.memory_space<vmem>>, vector<1x56x20xf32>
    %104 = vector.shape_cast %103 : vector<1x56x20xf32> to vector<56x20xf32>
    %105 = vector.shape_cast %102 : vector<56x20xf32> to vector<1x56x20xf32>
    tpu.vector_store %arg4[%c0_59, %c112_60, %c0_61], %105 {strides = array<i32>} : memref<1x392x20xf32, #tpu.memory_space<vmem>>, vector<1x56x20xf32>,
    %c0_62 = arith.constant 0 : index
    %c168 = arith.constant 168 : index
    %c0_63 = arith.constant 0 : index
    %106 = vector.load %arg1[%c0_62, %c168, %c0_63] : memref<1x1568x50xf32, #tpu.memory_space<vmem>>, vector<1x56x50xf32>
    %107 = vector.shape_cast %106 : vector<1x56x50xf32> to vector<56x50xf32>
    %cst_64 = arith.constant dense<0.000000e+00> : vector<56x20xf32>
    %108 = tpu.matmul %107, %1, %cst_64 {dimension_numbers = #tpu.dot_dimension_numbers<[1], [0], [0], [1], [0, 0, 1, 1], [], []>} : vector<56x50xf32>, vector<50x20xf32>, vector<56x20xf32> -> vector<56x20xf32>
    %109 = vector.broadcast %3 : vector<1x20xf32> to vector<56x20xf32>
    %110 = arith.addf %108, %109 : vector<56x20xf32>
    %cst_65 = arith.constant 0.000000e+00 : f32
    %111 = vector.broadcast %cst_65 : f32 to vector<56x20xf32>
    %112 = arith.maximumf %110, %111 : vector<56x20xf32>
    %c0_66 = arith.constant 0 : index
    %c560 = arith.constant 560 : index
    %c0_67 = arith.constant 0 : index
    %113 = vector.load %arg1[%c0_66, %c560, %c0_67] : memref<1x1568x50xf32, #tpu.memory_space<vmem>>, vector<1x56x50xf32>
    %114 = vector.shape_cast %113 : vector<1x56x50xf32> to vector<56x50xf32>
    %cst_68 = arith.constant dense<0.000000e+00> : vector<56x20xf32>
    %115 = tpu.matmul %114, %1, %cst_68 {dimension_numbers = #tpu.dot_dimension_numbers<[1], [0], [0], [1], [0, 0, 1, 1], [], []>} : vector<56x50xf32>, vector<50x20xf32>, vector<56x20xf32> -> vector<56x20xf32>
    %116 = vector.broadcast %3 : vector<1x20xf32> to vector<56x20xf32>
    %117 = arith.addf %115, %116 : vector<56x20xf32>
    %cst_69 = arith.constant 0.000000e+00 : f32
    %118 = vector.broadcast %cst_69 : f32 to vector<56x20xf32>
    %119 = arith.maximumf %117, %118 : vector<56x20xf32>
    %120 = arith.maximumf %112, %119 : vector<56x20xf32>
    %c0_70 = arith.constant 0 : index
    %c952 = arith.constant 952 : index
    %c0_71 = arith.constant 0 : index
    %121 = vector.load %arg1[%c0_70, %c952, %c0_71] : memref<1x1568x50xf32, #tpu.memory_space<vmem>>, vector<1x56x50xf32>
    %122 = vector.shape_cast %121 : vector<1x56x50xf32> to vector<56x50xf32>
    %cst_72 = arith.constant dense<0.000000e+00> : vector<56x20xf32>
    %123 = tpu.matmul %122, %1, %cst_72 {dimension_numbers = #tpu.dot_dimension_numbers<[1], [0], [0], [1], [0, 0, 1, 1], [], []>} : vector<56x50xf32>, vector<50x20xf32>, vector<56x20xf32> -> vector<56x20xf32>
    %124 = vector.broadcast %3 : vector<1x20xf32> to vector<56x20xf32>
    %125 = arith.addf %123, %124 : vector<56x20xf32>
    %cst_73 = arith.constant 0.000000e+00 : f32
    %126 = vector.broadcast %cst_73 : f32 to vector<56x20xf32>
    %127 = arith.maximumf %125, %126 : vector<56x20xf32>
    %128 = arith.maximumf %120, %127 : vector<56x20xf32>
    %c0_74 = arith.constant 0 : index
    %c1344 = arith.constant 1344 : index
    %c0_75 = arith.constant 0 : index
    %129 = vector.load %arg1[%c0_74, %c1344, %c0_75] : memref<1x1568x50xf32, #tpu.memory_space<vmem>>, vector<1x56x50xf32>
    %130 = vector.shape_cast %129 : vector<1x56x50xf32> to vector<56x50xf32>
    %cst_76 = arith.constant dense<0.000000e+00> : vector<56x20xf32>
    %131 = tpu.matmul %130, %1, %cst_76 {dimension_numbers = #tpu.dot_dimension_numbers<[1], [0], [0], [1], [0, 0, 1, 1], [], []>} : vector<56x50xf32>, vector<50x20xf32>, vector<56x20xf32> -> vector<56x20xf32>
    %132 = vector.broadcast %3 : vector<1x20xf32> to vector<56x20xf32>
    %133 = arith.addf %131, %132 : vector<56x20xf32>
    %cst_77 = arith.constant 0.000000e+00 : f32
    %134 = vector.broadcast %cst_77 : f32 to vector<56x20xf32>
    %135 = arith.maximumf %133, %134 : vector<56x20xf32>
    %136 = arith.maximumf %128, %135 : vector<56x20xf32>
    %c0_78 = arith.constant 0 : index
    %c168_79 = arith.constant 168 : index
    %c0_80 = arith.constant 0 : index
    %137 = vector.load %arg4[%c0_78, %c168_79, %c0_80] : memref<1x392x20xf32, #tpu.memory_space<vmem>>, vector<1x56x20xf32>
    %138 = vector.shape_cast %137 : vector<1x56x20xf32> to vector<56x20xf32>
    %139 = vector.shape_cast %136 : vector<56x20xf32> to vector<1x56x20xf32>
    tpu.vector_store %arg4[%c0_78, %c168_79, %c0_80], %139 {strides = array<i32>} : memref<1x392x20xf32, #tpu.memory_space<vmem>>, vector<1x56x20xf32>,
    %c0_81 = arith.constant 0 : index
    %c224 = arith.constant 224 : index
    %c0_82 = arith.constant 0 : index
    %140 = vector.load %arg1[%c0_81, %c224, %c0_82] : memref<1x1568x50xf32, #tpu.memory_space<vmem>>, vector<1x56x50xf32>
    %141 = vector.shape_cast %140 : vector<1x56x50xf32> to vector<56x50xf32>
    %cst_83 = arith.constant dense<0.000000e+00> : vector<56x20xf32>
    %142 = tpu.matmul %141, %1, %cst_83 {dimension_numbers = #tpu.dot_dimension_numbers<[1], [0], [0], [1], [0, 0, 1, 1], [], []>} : vector<56x50xf32>, vector<50x20xf32>, vector<56x20xf32> -> vector<56x20xf32>
    %143 = vector.broadcast %3 : vector<1x20xf32> to vector<56x20xf32>
    %144 = arith.addf %142, %143 : vector<56x20xf32>
    %cst_84 = arith.constant 0.000000e+00 : f32
    %145 = vector.broadcast %cst_84 : f32 to vector<56x20xf32>
    %146 = arith.maximumf %144, %145 : vector<56x20xf32>
    %c0_85 = arith.constant 0 : index
    %c616 = arith.constant 616 : index
    %c0_86 = arith.constant 0 : index
    %147 = vector.load %arg1[%c0_85, %c616, %c0_86] : memref<1x1568x50xf32, #tpu.memory_space<vmem>>, vector<1x56x50xf32>
    %148 = vector.shape_cast %147 : vector<1x56x50xf32> to vector<56x50xf32>
    %cst_87 = arith.constant dense<0.000000e+00> : vector<56x20xf32>
    %149 = tpu.matmul %148, %1, %cst_87 {dimension_numbers = #tpu.dot_dimension_numbers<[1], [0], [0], [1], [0, 0, 1, 1], [], []>} : vector<56x50xf32>, vector<50x20xf32>, vector<56x20xf32> -> vector<56x20xf32>
    %150 = vector.broadcast %3 : vector<1x20xf32> to vector<56x20xf32>
    %151 = arith.addf %149, %150 : vector<56x20xf32>
    %cst_88 = arith.constant 0.000000e+00 : f32
    %152 = vector.broadcast %cst_88 : f32 to vector<56x20xf32>
    %153 = arith.maximumf %151, %152 : vector<56x20xf32>
    %154 = arith.maximumf %146, %153 : vector<56x20xf32>
    %c0_89 = arith.constant 0 : index
    %c1008 = arith.constant 1008 : index
    %c0_90 = arith.constant 0 : index
    %155 = vector.load %arg1[%c0_89, %c1008, %c0_90] : memref<1x1568x50xf32, #tpu.memory_space<vmem>>, vector<1x56x50xf32>
    %156 = vector.shape_cast %155 : vector<1x56x50xf32> to vector<56x50xf32>
    %cst_91 = arith.constant dense<0.000000e+00> : vector<56x20xf32>
    %157 = tpu.matmul %156, %1, %cst_91 {dimension_numbers = #tpu.dot_dimension_numbers<[1], [0], [0], [1], [0, 0, 1, 1], [], []>} : vector<56x50xf32>, vector<50x20xf32>, vector<56x20xf32> -> vector<56x20xf32>
    %158 = vector.broadcast %3 : vector<1x20xf32> to vector<56x20xf32>
    %159 = arith.addf %157, %158 : vector<56x20xf32>
    %cst_92 = arith.constant 0.000000e+00 : f32
    %160 = vector.broadcast %cst_92 : f32 to vector<56x20xf32>
    %161 = arith.maximumf %159, %160 : vector<56x20xf32>
    %162 = arith.maximumf %154, %161 : vector<56x20xf32>
    %c0_93 = arith.constant 0 : index
    %c1400 = arith.constant 1400 : index
    %c0_94 = arith.constant 0 : index
    %163 = vector.load %arg1[%c0_93, %c1400, %c0_94] : memref<1x1568x50xf32, #tpu.memory_space<vmem>>, vector<1x56x50xf32>
    %164 = vector.shape_cast %163 : vector<1x56x50xf32> to vector<56x50xf32>
    %cst_95 = arith.constant dense<0.000000e+00> : vector<56x20xf32>
    %165 = tpu.matmul %164, %1, %cst_95 {dimension_numbers = #tpu.dot_dimension_numbers<[1], [0], [0], [1], [0, 0, 1, 1], [], []>} : vector<56x50xf32>, vector<50x20xf32>, vector<56x20xf32> -> vector<56x20xf32>
    %166 = vector.broadcast %3 : vector<1x20xf32> to vector<56x20xf32>
    %167 = arith.addf %165, %166 : vector<56x20xf32>
    %cst_96 = arith.constant 0.000000e+00 : f32
    %168 = vector.broadcast %cst_96 : f32 to vector<56x20xf32>
    %169 = arith.maximumf %167, %168 : vector<56x20xf32>
    %170 = arith.maximumf %162, %169 : vector<56x20xf32>
    %c0_97 = arith.constant 0 : index
    %c224_98 = arith.constant 224 : index
    %c0_99 = arith.constant 0 : index
    %171 = vector.load %arg4[%c0_97, %c224_98, %c0_99] : memref<1x392x20xf32, #tpu.memory_space<vmem>>, vector<1x56x20xf32>
    %172 = vector.shape_cast %171 : vector<1x56x20xf32> to vector<56x20xf32>
    %173 = vector.shape_cast %170 : vector<56x20xf32> to vector<1x56x20xf32>
    tpu.vector_store %arg4[%c0_97, %c224_98, %c0_99], %173 {strides = array<i32>} : memref<1x392x20xf32, #tpu.memory_space<vmem>>, vector<1x56x20xf32>,
    %c0_100 = arith.constant 0 : index
    %c280 = arith.constant 280 : index
    %c0_101 = arith.constant 0 : index
    %174 = vector.load %arg1[%c0_100, %c280, %c0_101] : memref<1x1568x50xf32, #tpu.memory_space<vmem>>, vector<1x56x50xf32>
    %175 = vector.shape_cast %174 : vector<1x56x50xf32> to vector<56x50xf32>
    %cst_102 = arith.constant dense<0.000000e+00> : vector<56x20xf32>
    %176 = tpu.matmul %175, %1, %cst_102 {dimension_numbers = #tpu.dot_dimension_numbers<[1], [0], [0], [1], [0, 0, 1, 1], [], []>} : vector<56x50xf32>, vector<50x20xf32>, vector<56x20xf32> -> vector<56x20xf32>
    %177 = vector.broadcast %3 : vector<1x20xf32> to vector<56x20xf32>
    %178 = arith.addf %176, %177 : vector<56x20xf32>
    %cst_103 = arith.constant 0.000000e+00 : f32
    %179 = vector.broadcast %cst_103 : f32 to vector<56x20xf32>
    %180 = arith.maximumf %178, %179 : vector<56x20xf32>
    %c0_104 = arith.constant 0 : index
    %c672 = arith.constant 672 : index
    %c0_105 = arith.constant 0 : index
    %181 = vector.load %arg1[%c0_104, %c672, %c0_105] : memref<1x1568x50xf32, #tpu.memory_space<vmem>>, vector<1x56x50xf32>
    %182 = vector.shape_cast %181 : vector<1x56x50xf32> to vector<56x50xf32>
    %cst_106 = arith.constant dense<0.000000e+00> : vector<56x20xf32>
    %183 = tpu.matmul %182, %1, %cst_106 {dimension_numbers = #tpu.dot_dimension_numbers<[1], [0], [0], [1], [0, 0, 1, 1], [], []>} : vector<56x50xf32>, vector<50x20xf32>, vector<56x20xf32> -> vector<56x20xf32>
    %184 = vector.broadcast %3 : vector<1x20xf32> to vector<56x20xf32>
    %185 = arith.addf %183, %184 : vector<56x20xf32>
    %cst_107 = arith.constant 0.000000e+00 : f32
    %186 = vector.broadcast %cst_107 : f32 to vector<56x20xf32>
    %187 = arith.maximumf %185, %186 : vector<56x20xf32>
    %188 = arith.maximumf %180, %187 : vector<56x20xf32>
    %c0_108 = arith.constant 0 : index
    %c1064 = arith.constant 1064 : index
    %c0_109 = arith.constant 0 : index
    %189 = vector.load %arg1[%c0_108, %c1064, %c0_109] : memref<1x1568x50xf32, #tpu.memory_space<vmem>>, vector<1x56x50xf32>
    %190 = vector.shape_cast %189 : vector<1x56x50xf32> to vector<56x50xf32>
    %cst_110 = arith.constant dense<0.000000e+00> : vector<56x20xf32>
    %191 = tpu.matmul %190, %1, %cst_110 {dimension_numbers = #tpu.dot_dimension_numbers<[1], [0], [0], [1], [0, 0, 1, 1], [], []>} : vector<56x50xf32>, vector<50x20xf32>, vector<56x20xf32> -> vector<56x20xf32>
    %192 = vector.broadcast %3 : vector<1x20xf32> to vector<56x20xf32>
    %193 = arith.addf %191, %192 : vector<56x20xf32>
    %cst_111 = arith.constant 0.000000e+00 : f32
    %194 = vector.broadcast %cst_111 : f32 to vector<56x20xf32>
    %195 = arith.maximumf %193, %194 : vector<56x20xf32>
    %196 = arith.maximumf %188, %195 : vector<56x20xf32>
    %c0_112 = arith.constant 0 : index
    %c1456 = arith.constant 1456 : index
    %c0_113 = arith.constant 0 : index
    %197 = vector.load %arg1[%c0_112, %c1456, %c0_113] : memref<1x1568x50xf32, #tpu.memory_space<vmem>>, vector<1x56x50xf32>
    %198 = vector.shape_cast %197 : vector<1x56x50xf32> to vector<56x50xf32>
    %cst_114 = arith.constant dense<0.000000e+00> : vector<56x20xf32>
    %199 = tpu.matmul %198, %1, %cst_114 {dimension_numbers = #tpu.dot_dimension_numbers<[1], [0], [0], [1], [0, 0, 1, 1], [], []>} : vector<56x50xf32>, vector<50x20xf32>, vector<56x20xf32> -> vector<56x20xf32>
    %200 = vector.broadcast %3 : vector<1x20xf32> to vector<56x20xf32>
    %201 = arith.addf %199, %200 : vector<56x20xf32>
    %cst_115 = arith.constant 0.000000e+00 : f32
    %202 = vector.broadcast %cst_115 : f32 to vector<56x20xf32>
    %203 = arith.maximumf %201, %202 : vector<56x20xf32>
    %204 = arith.maximumf %196, %203 : vector<56x20xf32>
    %c0_116 = arith.constant 0 : index
    %c280_117 = arith.constant 280 : index
    %c0_118 = arith.constant 0 : index
    %205 = vector.load %arg4[%c0_116, %c280_117, %c0_118] : memref<1x392x20xf32, #tpu.memory_space<vmem>>, vector<1x56x20xf32>
    %206 = vector.shape_cast %205 : vector<1x56x20xf32> to vector<56x20xf32>
    %207 = vector.shape_cast %204 : vector<56x20xf32> to vector<1x56x20xf32>
    tpu.vector_store %arg4[%c0_116, %c280_117, %c0_118], %207 {strides = array<i32>} : memref<1x392x20xf32, #tpu.memory_space<vmem>>, vector<1x56x20xf32>,
    %c0_119 = arith.constant 0 : index
    %c336 = arith.constant 336 : index
    %c0_120 = arith.constant 0 : index
    %208 = vector.load %arg1[%c0_119, %c336, %c0_120] : memref<1x1568x50xf32, #tpu.memory_space<vmem>>, vector<1x56x50xf32>
    %209 = vector.shape_cast %208 : vector<1x56x50xf32> to vector<56x50xf32>
    %cst_121 = arith.constant dense<0.000000e+00> : vector<56x20xf32>
    %210 = tpu.matmul %209, %1, %cst_121 {dimension_numbers = #tpu.dot_dimension_numbers<[1], [0], [0], [1], [0, 0, 1, 1], [], []>} : vector<56x50xf32>, vector<50x20xf32>, vector<56x20xf32> -> vector<56x20xf32>
    %211 = vector.broadcast %3 : vector<1x20xf32> to vector<56x20xf32>
    %212 = arith.addf %210, %211 : vector<56x20xf32>
    %cst_122 = arith.constant 0.000000e+00 : f32
    %213 = vector.broadcast %cst_122 : f32 to vector<56x20xf32>
    %214 = arith.maximumf %212, %213 : vector<56x20xf32>
    %c0_123 = arith.constant 0 : index
    %c728 = arith.constant 728 : index
    %c0_124 = arith.constant 0 : index
    %215 = vector.load %arg1[%c0_123, %c728, %c0_124] : memref<1x1568x50xf32, #tpu.memory_space<vmem>>, vector<1x56x50xf32>
    %216 = vector.shape_cast %215 : vector<1x56x50xf32> to vector<56x50xf32>
    %cst_125 = arith.constant dense<0.000000e+00> : vector<56x20xf32>
    %217 = tpu.matmul %216, %1, %cst_125 {dimension_numbers = #tpu.dot_dimension_numbers<[1], [0], [0], [1], [0, 0, 1, 1], [], []>} : vector<56x50xf32>, vector<50x20xf32>, vector<56x20xf32> -> vector<56x20xf32>
    %218 = vector.broadcast %3 : vector<1x20xf32> to vector<56x20xf32>
    %219 = arith.addf %217, %218 : vector<56x20xf32>
    %cst_126 = arith.constant 0.000000e+00 : f32
    %220 = vector.broadcast %cst_126 : f32 to vector<56x20xf32>
    %221 = arith.maximumf %219, %220 : vector<56x20xf32>
    %222 = arith.maximumf %214, %221 : vector<56x20xf32>
    %c0_127 = arith.constant 0 : index
    %c1120 = arith.constant 1120 : index
    %c0_128 = arith.constant 0 : index
    %223 = vector.load %arg1[%c0_127, %c1120, %c0_128] : memref<1x1568x50xf32, #tpu.memory_space<vmem>>, vector<1x56x50xf32>
    %224 = vector.shape_cast %223 : vector<1x56x50xf32> to vector<56x50xf32>
    %cst_129 = arith.constant dense<0.000000e+00> : vector<56x20xf32>
    %225 = tpu.matmul %224, %1, %cst_129 {dimension_numbers = #tpu.dot_dimension_numbers<[1], [0], [0], [1], [0, 0, 1, 1], [], []>} : vector<56x50xf32>, vector<50x20xf32>, vector<56x20xf32> -> vector<56x20xf32>
    %226 = vector.broadcast %3 : vector<1x20xf32> to vector<56x20xf32>
    %227 = arith.addf %225, %226 : vector<56x20xf32>
    %cst_130 = arith.constant 0.000000e+00 : f32
    %228 = vector.broadcast %cst_130 : f32 to vector<56x20xf32>
    %229 = arith.maximumf %227, %228 : vector<56x20xf32>
    %230 = arith.maximumf %222, %229 : vector<56x20xf32>
    %c0_131 = arith.constant 0 : index
    %c1512 = arith.constant 1512 : index
    %c0_132 = arith.constant 0 : index
    %231 = vector.load %arg1[%c0_131, %c1512, %c0_132] : memref<1x1568x50xf32, #tpu.memory_space<vmem>>, vector<1x56x50xf32>
    %232 = vector.shape_cast %231 : vector<1x56x50xf32> to vector<56x50xf32>
    %cst_133 = arith.constant dense<0.000000e+00> : vector<56x20xf32>
    %233 = tpu.matmul %232, %1, %cst_133 {dimension_numbers = #tpu.dot_dimension_numbers<[1], [0], [0], [1], [0, 0, 1, 1], [], []>} : vector<56x50xf32>, vector<50x20xf32>, vector<56x20xf32> -> vector<56x20xf32>
    %234 = vector.broadcast %3 : vector<1x20xf32> to vector<56x20xf32>
    %235 = arith.addf %233, %234 : vector<56x20xf32>
    %cst_134 = arith.constant 0.000000e+00 : f32
    %236 = vector.broadcast %cst_134 : f32 to vector<56x20xf32>
    %237 = arith.maximumf %235, %236 : vector<56x20xf32>
    %238 = arith.maximumf %230, %237 : vector<56x20xf32>
    %c0_135 = arith.constant 0 : index
    %c336_136 = arith.constant 336 : index
    %c0_137 = arith.constant 0 : index
    %239 = vector.load %arg4[%c0_135, %c336_136, %c0_137] : memref<1x392x20xf32, #tpu.memory_space<vmem>>, vector<1x56x20xf32>
    %240 = vector.shape_cast %239 : vector<1x56x20xf32> to vector<56x20xf32>
    %241 = vector.shape_cast %238 : vector<56x20xf32> to vector<1x56x20xf32>
    tpu.vector_store %arg4[%c0_135, %c336_136, %c0_137], %241 {strides = array<i32>} : memref<1x392x20xf32, #tpu.memory_space<vmem>>, vector<1x56x20xf32>,
    return
  }
  func.func @transform_0(%arg0: i32) -> (i32, i32, i32) {
    %c0_i32 = arith.constant 0 : i32
    %c0_i32_0 = arith.constant 0 : i32
    %c0_i32_1 = arith.constant 0 : i32
    return %arg0, %c0_i32, %c0_i32_0 : i32, i32, i32
  }
  func.func @transform_1(%arg0: i32) -> (i32, i32, i32) {
    %c0_i32 = arith.constant 0 : i32
    %c0_i32_0 = arith.constant 0 : i32
    %c0_i32_1 = arith.constant 0 : i32
    return %arg0, %c0_i32, %c0_i32_0 : i32, i32, i32
  }
  func.func @transform_2(%arg0: i32) -> (i32, i32, i32) {
    %c0_i32 = arith.constant 0 : i32
    %c0_i32_0 = arith.constant 0 : i32
    %c0_i32_1 = arith.constant 0 : i32
    return %arg0, %c0_i32, %c0_i32_0 : i32, i32, i32
  }
  func.func @transform_3(%arg0: i32) -> (i32, i32, i32) {
    %c0_i32 = arith.constant 0 : i32
    %c0_i32_0 = arith.constant 0 : i32
    %c0_i32_1 = arith.constant 0 : i32
    return %arg0, %c0_i32, %c0_i32_0 : i32, i32, i32
  }
}

module attributes {stable_mosaic.version = 11 : i64} {
  func.func @_conv2_pool_fc_kernel(%arg0: i32, %arg1: memref<1x200x500xf32, #tpu.memory_space<vmem>>, %arg2: memref<1x500x50xf32, #tpu.memory_space<vmem>>, %arg3: memref<1x1x50xf32, #tpu.memory_space<vmem>>, %arg4: memref<1x25x50x32xf32, #tpu.memory_space<vmem>>, %arg5: memref<1x1x32xf32, #tpu.memory_space<vmem>>, %arg6: memref<1x2x32xf32, #tpu.memory_space<vmem>>, %arg7: memref<200x50xf32, #tpu.memory_space<vmem>>, %arg8: memref<50x50xf32, #tpu.memory_space<vmem>>) attributes {dimension_semantics = [#tpu.dimension_semantics<parallel>], iteration_bounds = array<i64: 9>, scalar_prefetch = 0 : i64, scratch_operands = 2 : i64, tpu.core_type = #tpu.core_type<tc>, window_params = [{transform_indices = @transform_0, window_bounds = array<i64: 1, 200, 500>}, {transform_indices = @transform_1, window_bounds = array<i64: 1, 500, 50>}, {transform_indices = @transform_2, window_bounds = array<i64: 1, 1, 50>}, {transform_indices = @transform_3, window_bounds = array<i64: 1, 25, 50, 32>}, {transform_indices = @transform_4, window_bounds = array<i64: 1, 1, 32>}, {transform_indices = @transform_5, window_bounds = array<i64: 1, 2, 32>}]} {
    %c0 = arith.constant 0 : index
    %c0_0 = arith.constant 0 : index
    %c0_1 = arith.constant 0 : index
    %0 = vector.load %arg1[%c0, %c0_0, %c0_1] : memref<1x200x500xf32, #tpu.memory_space<vmem>>, vector<1x200x500xf32>
    %1 = vector.shape_cast %0 : vector<1x200x500xf32> to vector<200x500xf32>
    %c0_2 = arith.constant 0 : index
    %c0_3 = arith.constant 0 : index
    %c0_4 = arith.constant 0 : index
    %2 = vector.load %arg2[%c0_2, %c0_3, %c0_4] : memref<1x500x50xf32, #tpu.memory_space<vmem>>, vector<1x500x50xf32>
    %3 = vector.shape_cast %2 : vector<1x500x50xf32> to vector<500x50xf32>
    %cst = arith.constant dense<0.000000e+00> : vector<200x50xf32>
    %4 = tpu.matmul %1, %3, %cst {dimension_numbers = #tpu.dot_dimension_numbers<[1], [0], [0], [1], [0, 0, 1, 1], [], []>} : vector<200x500xf32>, vector<500x50xf32>, vector<200x50xf32> -> vector<200x50xf32>
    %c0_5 = arith.constant 0 : index
    %c0_6 = arith.constant 0 : index
    %c0_7 = arith.constant 0 : index
    %5 = vector.load %arg3[%c0_5, %c0_6, %c0_7] : memref<1x1x50xf32, #tpu.memory_space<vmem>>, vector<1x1x50xf32>
    %6 = vector.shape_cast %5 : vector<1x1x50xf32> to vector<1x50xf32>
    %7 = vector.broadcast %6 : vector<1x50xf32> to vector<200x50xf32>
    %8 = arith.addf %4, %7 : vector<200x50xf32>
    %cst_8 = arith.constant 0.000000e+00 : f32
    %9 = vector.broadcast %cst_8 : f32 to vector<200x50xf32>
    %10 = arith.maximumf %8, %9 : vector<200x50xf32>
    %c0_9 = arith.constant 0 : index
    %c0_10 = arith.constant 0 : index
    %11 = vector.load %arg7[%c0_9, %c0_10] : memref<200x50xf32, #tpu.memory_space<vmem>>, vector<200x50xf32>
    tpu.vector_store %arg7[%c0_9, %c0_10], %10 {strides = array<i32>} : memref<200x50xf32, #tpu.memory_space<vmem>>, vector<200x50xf32>,
    %c0_11 = arith.constant 0 : index
    %c0_12 = arith.constant 0 : index
    %12 = vector.load %arg7[%c0_11, %c0_12] : memref<200x50xf32, #tpu.memory_space<vmem>>, vector<50x50xf32>
    %c50 = arith.constant 50 : index
    %c0_13 = arith.constant 0 : index
    %13 = vector.load %arg7[%c50, %c0_13] : memref<200x50xf32, #tpu.memory_space<vmem>>, vector<50x50xf32>
    %14 = arith.maximumf %12, %13 : vector<50x50xf32>
    %c100 = arith.constant 100 : index
    %c0_14 = arith.constant 0 : index
    %15 = vector.load %arg7[%c100, %c0_14] : memref<200x50xf32, #tpu.memory_space<vmem>>, vector<50x50xf32>
    %c150 = arith.constant 150 : index
    %c0_15 = arith.constant 0 : index
    %16 = vector.load %arg7[%c150, %c0_15] : memref<200x50xf32, #tpu.memory_space<vmem>>, vector<50x50xf32>
    %17 = arith.maximumf %15, %16 : vector<50x50xf32>
    %18 = arith.maximumf %14, %17 : vector<50x50xf32>
    %c0_16 = arith.constant 0 : index
    %c0_17 = arith.constant 0 : index
    %19 = vector.load %arg8[%c0_16, %c0_17] : memref<50x50xf32, #tpu.memory_space<vmem>>, vector<50x50xf32>
    tpu.vector_store %arg8[%c0_16, %c0_17], %18 {strides = array<i32>} : memref<50x50xf32, #tpu.memory_space<vmem>>, vector<50x50xf32>,
    %c0_18 = arith.constant 0 : index
    %c0_19 = arith.constant 0 : index
    %c0_20 = arith.constant 0 : index
    %20 = vector.load %arg5[%c0_18, %c0_19, %c0_20] : memref<1x1x32xf32, #tpu.memory_space<vmem>>, vector<1x1x32xf32>
    %21 = vector.shape_cast %20 : vector<1x1x32xf32> to vector<1x32xf32>
    %22 = vector.shape_cast %21 : vector<1x32xf32> to vector<1x32xf32>
    %23 = vector.broadcast %22 : vector<1x32xf32> to vector<2x32xf32>
    %c0_21 = arith.constant 0 : index
    %c0_22 = arith.constant 0 : index
    %24 = vector.load %arg8[%c0_21, %c0_22] : memref<50x50xf32, #tpu.memory_space<vmem>>, vector<2x50xf32>
    %c0_23 = arith.constant 0 : index
    %c0_24 = arith.constant 0 : index
    %c0_25 = arith.constant 0 : index
    %c0_26 = arith.constant 0 : index
    %25 = vector.load %arg4[%c0_23, %c0_24, %c0_25, %c0_26] : memref<1x25x50x32xf32, #tpu.memory_space<vmem>>, vector<1x1x50x32xf32>
    %26 = vector.shape_cast %25 : vector<1x1x50x32xf32> to vector<50x32xf32>
    %cst_27 = arith.constant dense<0.000000e+00> : vector<2x32xf32>
    %27 = tpu.matmul %24, %26, %cst_27 {dimension_numbers = #tpu.dot_dimension_numbers<[1], [0], [0], [1], [0, 0, 1, 1], [], []>} : vector<2x50xf32>, vector<50x32xf32>, vector<2x32xf32> -> vector<2x32xf32>
    %28 = arith.addf %23, %27 : vector<2x32xf32>
    %c2 = arith.constant 2 : index
    %c0_28 = arith.constant 0 : index
    %29 = vector.load %arg8[%c2, %c0_28] : memref<50x50xf32, #tpu.memory_space<vmem>>, vector<2x50xf32>
    %c0_29 = arith.constant 0 : index
    %c1 = arith.constant 1 : index
    %c0_30 = arith.constant 0 : index
    %c0_31 = arith.constant 0 : index
    %30 = vector.load %arg4[%c0_29, %c1, %c0_30, %c0_31] : memref<1x25x50x32xf32, #tpu.memory_space<vmem>>, vector<1x1x50x32xf32>
    %31 = vector.shape_cast %30 : vector<1x1x50x32xf32> to vector<50x32xf32>
    %cst_32 = arith.constant dense<0.000000e+00> : vector<2x32xf32>
    %32 = tpu.matmul %29, %31, %cst_32 {dimension_numbers = #tpu.dot_dimension_numbers<[1], [0], [0], [1], [0, 0, 1, 1], [], []>} : vector<2x50xf32>, vector<50x32xf32>, vector<2x32xf32> -> vector<2x32xf32>
    %33 = arith.addf %28, %32 : vector<2x32xf32>
    %c4 = arith.constant 4 : index
    %c0_33 = arith.constant 0 : index
    %34 = vector.load %arg8[%c4, %c0_33] : memref<50x50xf32, #tpu.memory_space<vmem>>, vector<2x50xf32>
    %c0_34 = arith.constant 0 : index
    %c2_35 = arith.constant 2 : index
    %c0_36 = arith.constant 0 : index
    %c0_37 = arith.constant 0 : index
    %35 = vector.load %arg4[%c0_34, %c2_35, %c0_36, %c0_37] : memref<1x25x50x32xf32, #tpu.memory_space<vmem>>, vector<1x1x50x32xf32>
    %36 = vector.shape_cast %35 : vector<1x1x50x32xf32> to vector<50x32xf32>
    %cst_38 = arith.constant dense<0.000000e+00> : vector<2x32xf32>
    %37 = tpu.matmul %34, %36, %cst_38 {dimension_numbers = #tpu.dot_dimension_numbers<[1], [0], [0], [1], [0, 0, 1, 1], [], []>} : vector<2x50xf32>, vector<50x32xf32>, vector<2x32xf32> -> vector<2x32xf32>
    %38 = arith.addf %33, %37 : vector<2x32xf32>
    %c6 = arith.constant 6 : index
    %c0_39 = arith.constant 0 : index
    %39 = vector.load %arg8[%c6, %c0_39] : memref<50x50xf32, #tpu.memory_space<vmem>>, vector<2x50xf32>
    %c0_40 = arith.constant 0 : index
    %c3 = arith.constant 3 : index
    %c0_41 = arith.constant 0 : index
    %c0_42 = arith.constant 0 : index
    %40 = vector.load %arg4[%c0_40, %c3, %c0_41, %c0_42] : memref<1x25x50x32xf32, #tpu.memory_space<vmem>>, vector<1x1x50x32xf32>
    %41 = vector.shape_cast %40 : vector<1x1x50x32xf32> to vector<50x32xf32>
    %cst_43 = arith.constant dense<0.000000e+00> : vector<2x32xf32>
    %42 = tpu.matmul %39, %41, %cst_43 {dimension_numbers = #tpu.dot_dimension_numbers<[1], [0], [0], [1], [0, 0, 1, 1], [], []>} : vector<2x50xf32>, vector<50x32xf32>, vector<2x32xf32> -> vector<2x32xf32>
    %43 = arith.addf %38, %42 : vector<2x32xf32>
    %c8 = arith.constant 8 : index
    %c0_44 = arith.constant 0 : index
    %44 = vector.load %arg8[%c8, %c0_44] : memref<50x50xf32, #tpu.memory_space<vmem>>, vector<2x50xf32>
    %c0_45 = arith.constant 0 : index
    %c4_46 = arith.constant 4 : index
    %c0_47 = arith.constant 0 : index
    %c0_48 = arith.constant 0 : index
    %45 = vector.load %arg4[%c0_45, %c4_46, %c0_47, %c0_48] : memref<1x25x50x32xf32, #tpu.memory_space<vmem>>, vector<1x1x50x32xf32>
    %46 = vector.shape_cast %45 : vector<1x1x50x32xf32> to vector<50x32xf32>
    %cst_49 = arith.constant dense<0.000000e+00> : vector<2x32xf32>
    %47 = tpu.matmul %44, %46, %cst_49 {dimension_numbers = #tpu.dot_dimension_numbers<[1], [0], [0], [1], [0, 0, 1, 1], [], []>} : vector<2x50xf32>, vector<50x32xf32>, vector<2x32xf32> -> vector<2x32xf32>
    %48 = arith.addf %43, %47 : vector<2x32xf32>
    %c10 = arith.constant 10 : index
    %c0_50 = arith.constant 0 : index
    %49 = vector.load %arg8[%c10, %c0_50] : memref<50x50xf32, #tpu.memory_space<vmem>>, vector<2x50xf32>
    %c0_51 = arith.constant 0 : index
    %c5 = arith.constant 5 : index
    %c0_52 = arith.constant 0 : index
    %c0_53 = arith.constant 0 : index
    %50 = vector.load %arg4[%c0_51, %c5, %c0_52, %c0_53] : memref<1x25x50x32xf32, #tpu.memory_space<vmem>>, vector<1x1x50x32xf32>
    %51 = vector.shape_cast %50 : vector<1x1x50x32xf32> to vector<50x32xf32>
    %cst_54 = arith.constant dense<0.000000e+00> : vector<2x32xf32>
    %52 = tpu.matmul %49, %51, %cst_54 {dimension_numbers = #tpu.dot_dimension_numbers<[1], [0], [0], [1], [0, 0, 1, 1], [], []>} : vector<2x50xf32>, vector<50x32xf32>, vector<2x32xf32> -> vector<2x32xf32>
    %53 = arith.addf %48, %52 : vector<2x32xf32>
    %c12 = arith.constant 12 : index
    %c0_55 = arith.constant 0 : index
    %54 = vector.load %arg8[%c12, %c0_55] : memref<50x50xf32, #tpu.memory_space<vmem>>, vector<2x50xf32>
    %c0_56 = arith.constant 0 : index
    %c6_57 = arith.constant 6 : index
    %c0_58 = arith.constant 0 : index
    %c0_59 = arith.constant 0 : index
    %55 = vector.load %arg4[%c0_56, %c6_57, %c0_58, %c0_59] : memref<1x25x50x32xf32, #tpu.memory_space<vmem>>, vector<1x1x50x32xf32>
    %56 = vector.shape_cast %55 : vector<1x1x50x32xf32> to vector<50x32xf32>
    %cst_60 = arith.constant dense<0.000000e+00> : vector<2x32xf32>
    %57 = tpu.matmul %54, %56, %cst_60 {dimension_numbers = #tpu.dot_dimension_numbers<[1], [0], [0], [1], [0, 0, 1, 1], [], []>} : vector<2x50xf32>, vector<50x32xf32>, vector<2x32xf32> -> vector<2x32xf32>
    %58 = arith.addf %53, %57 : vector<2x32xf32>
    %c14 = arith.constant 14 : index
    %c0_61 = arith.constant 0 : index
    %59 = vector.load %arg8[%c14, %c0_61] : memref<50x50xf32, #tpu.memory_space<vmem>>, vector<2x50xf32>
    %c0_62 = arith.constant 0 : index
    %c7 = arith.constant 7 : index
    %c0_63 = arith.constant 0 : index
    %c0_64 = arith.constant 0 : index
    %60 = vector.load %arg4[%c0_62, %c7, %c0_63, %c0_64] : memref<1x25x50x32xf32, #tpu.memory_space<vmem>>, vector<1x1x50x32xf32>
    %61 = vector.shape_cast %60 : vector<1x1x50x32xf32> to vector<50x32xf32>
    %cst_65 = arith.constant dense<0.000000e+00> : vector<2x32xf32>
    %62 = tpu.matmul %59, %61, %cst_65 {dimension_numbers = #tpu.dot_dimension_numbers<[1], [0], [0], [1], [0, 0, 1, 1], [], []>} : vector<2x50xf32>, vector<50x32xf32>, vector<2x32xf32> -> vector<2x32xf32>
    %63 = arith.addf %58, %62 : vector<2x32xf32>
    %c16 = arith.constant 16 : index
    %c0_66 = arith.constant 0 : index
    %64 = vector.load %arg8[%c16, %c0_66] : memref<50x50xf32, #tpu.memory_space<vmem>>, vector<2x50xf32>
    %c0_67 = arith.constant 0 : index
    %c8_68 = arith.constant 8 : index
    %c0_69 = arith.constant 0 : index
    %c0_70 = arith.constant 0 : index
    %65 = vector.load %arg4[%c0_67, %c8_68, %c0_69, %c0_70] : memref<1x25x50x32xf32, #tpu.memory_space<vmem>>, vector<1x1x50x32xf32>
    %66 = vector.shape_cast %65 : vector<1x1x50x32xf32> to vector<50x32xf32>
    %cst_71 = arith.constant dense<0.000000e+00> : vector<2x32xf32>
    %67 = tpu.matmul %64, %66, %cst_71 {dimension_numbers = #tpu.dot_dimension_numbers<[1], [0], [0], [1], [0, 0, 1, 1], [], []>} : vector<2x50xf32>, vector<50x32xf32>, vector<2x32xf32> -> vector<2x32xf32>
    %68 = arith.addf %63, %67 : vector<2x32xf32>
    %c18 = arith.constant 18 : index
    %c0_72 = arith.constant 0 : index
    %69 = vector.load %arg8[%c18, %c0_72] : memref<50x50xf32, #tpu.memory_space<vmem>>, vector<2x50xf32>
    %c0_73 = arith.constant 0 : index
    %c9 = arith.constant 9 : index
    %c0_74 = arith.constant 0 : index
    %c0_75 = arith.constant 0 : index
    %70 = vector.load %arg4[%c0_73, %c9, %c0_74, %c0_75] : memref<1x25x50x32xf32, #tpu.memory_space<vmem>>, vector<1x1x50x32xf32>
    %71 = vector.shape_cast %70 : vector<1x1x50x32xf32> to vector<50x32xf32>
    %cst_76 = arith.constant dense<0.000000e+00> : vector<2x32xf32>
    %72 = tpu.matmul %69, %71, %cst_76 {dimension_numbers = #tpu.dot_dimension_numbers<[1], [0], [0], [1], [0, 0, 1, 1], [], []>} : vector<2x50xf32>, vector<50x32xf32>, vector<2x32xf32> -> vector<2x32xf32>
    %73 = arith.addf %68, %72 : vector<2x32xf32>
    %c20 = arith.constant 20 : index
    %c0_77 = arith.constant 0 : index
    %74 = vector.load %arg8[%c20, %c0_77] : memref<50x50xf32, #tpu.memory_space<vmem>>, vector<2x50xf32>
    %c0_78 = arith.constant 0 : index
    %c10_79 = arith.constant 10 : index
    %c0_80 = arith.constant 0 : index
    %c0_81 = arith.constant 0 : index
    %75 = vector.load %arg4[%c0_78, %c10_79, %c0_80, %c0_81] : memref<1x25x50x32xf32, #tpu.memory_space<vmem>>, vector<1x1x50x32xf32>
    %76 = vector.shape_cast %75 : vector<1x1x50x32xf32> to vector<50x32xf32>
    %cst_82 = arith.constant dense<0.000000e+00> : vector<2x32xf32>
    %77 = tpu.matmul %74, %76, %cst_82 {dimension_numbers = #tpu.dot_dimension_numbers<[1], [0], [0], [1], [0, 0, 1, 1], [], []>} : vector<2x50xf32>, vector<50x32xf32>, vector<2x32xf32> -> vector<2x32xf32>
    %78 = arith.addf %73, %77 : vector<2x32xf32>
    %c22 = arith.constant 22 : index
    %c0_83 = arith.constant 0 : index
    %79 = vector.load %arg8[%c22, %c0_83] : memref<50x50xf32, #tpu.memory_space<vmem>>, vector<2x50xf32>
    %c0_84 = arith.constant 0 : index
    %c11 = arith.constant 11 : index
    %c0_85 = arith.constant 0 : index
    %c0_86 = arith.constant 0 : index
    %80 = vector.load %arg4[%c0_84, %c11, %c0_85, %c0_86] : memref<1x25x50x32xf32, #tpu.memory_space<vmem>>, vector<1x1x50x32xf32>
    %81 = vector.shape_cast %80 : vector<1x1x50x32xf32> to vector<50x32xf32>
    %cst_87 = arith.constant dense<0.000000e+00> : vector<2x32xf32>
    %82 = tpu.matmul %79, %81, %cst_87 {dimension_numbers = #tpu.dot_dimension_numbers<[1], [0], [0], [1], [0, 0, 1, 1], [], []>} : vector<2x50xf32>, vector<50x32xf32>, vector<2x32xf32> -> vector<2x32xf32>
    %83 = arith.addf %78, %82 : vector<2x32xf32>
    %c24 = arith.constant 24 : index
    %c0_88 = arith.constant 0 : index
    %84 = vector.load %arg8[%c24, %c0_88] : memref<50x50xf32, #tpu.memory_space<vmem>>, vector<2x50xf32>
    %c0_89 = arith.constant 0 : index
    %c12_90 = arith.constant 12 : index
    %c0_91 = arith.constant 0 : index
    %c0_92 = arith.constant 0 : index
    %85 = vector.load %arg4[%c0_89, %c12_90, %c0_91, %c0_92] : memref<1x25x50x32xf32, #tpu.memory_space<vmem>>, vector<1x1x50x32xf32>
    %86 = vector.shape_cast %85 : vector<1x1x50x32xf32> to vector<50x32xf32>
    %cst_93 = arith.constant dense<0.000000e+00> : vector<2x32xf32>
    %87 = tpu.matmul %84, %86, %cst_93 {dimension_numbers = #tpu.dot_dimension_numbers<[1], [0], [0], [1], [0, 0, 1, 1], [], []>} : vector<2x50xf32>, vector<50x32xf32>, vector<2x32xf32> -> vector<2x32xf32>
    %88 = arith.addf %83, %87 : vector<2x32xf32>
    %c26 = arith.constant 26 : index
    %c0_94 = arith.constant 0 : index
    %89 = vector.load %arg8[%c26, %c0_94] : memref<50x50xf32, #tpu.memory_space<vmem>>, vector<2x50xf32>
    %c0_95 = arith.constant 0 : index
    %c13 = arith.constant 13 : index
    %c0_96 = arith.constant 0 : index
    %c0_97 = arith.constant 0 : index
    %90 = vector.load %arg4[%c0_95, %c13, %c0_96, %c0_97] : memref<1x25x50x32xf32, #tpu.memory_space<vmem>>, vector<1x1x50x32xf32>
    %91 = vector.shape_cast %90 : vector<1x1x50x32xf32> to vector<50x32xf32>
    %cst_98 = arith.constant dense<0.000000e+00> : vector<2x32xf32>
    %92 = tpu.matmul %89, %91, %cst_98 {dimension_numbers = #tpu.dot_dimension_numbers<[1], [0], [0], [1], [0, 0, 1, 1], [], []>} : vector<2x50xf32>, vector<50x32xf32>, vector<2x32xf32> -> vector<2x32xf32>
    %93 = arith.addf %88, %92 : vector<2x32xf32>
    %c28 = arith.constant 28 : index
    %c0_99 = arith.constant 0 : index
    %94 = vector.load %arg8[%c28, %c0_99] : memref<50x50xf32, #tpu.memory_space<vmem>>, vector<2x50xf32>
    %c0_100 = arith.constant 0 : index
    %c14_101 = arith.constant 14 : index
    %c0_102 = arith.constant 0 : index
    %c0_103 = arith.constant 0 : index
    %95 = vector.load %arg4[%c0_100, %c14_101, %c0_102, %c0_103] : memref<1x25x50x32xf32, #tpu.memory_space<vmem>>, vector<1x1x50x32xf32>
    %96 = vector.shape_cast %95 : vector<1x1x50x32xf32> to vector<50x32xf32>
    %cst_104 = arith.constant dense<0.000000e+00> : vector<2x32xf32>
    %97 = tpu.matmul %94, %96, %cst_104 {dimension_numbers = #tpu.dot_dimension_numbers<[1], [0], [0], [1], [0, 0, 1, 1], [], []>} : vector<2x50xf32>, vector<50x32xf32>, vector<2x32xf32> -> vector<2x32xf32>
    %98 = arith.addf %93, %97 : vector<2x32xf32>
    %c30 = arith.constant 30 : index
    %c0_105 = arith.constant 0 : index
    %99 = vector.load %arg8[%c30, %c0_105] : memref<50x50xf32, #tpu.memory_space<vmem>>, vector<2x50xf32>
    %c0_106 = arith.constant 0 : index
    %c15 = arith.constant 15 : index
    %c0_107 = arith.constant 0 : index
    %c0_108 = arith.constant 0 : index
    %100 = vector.load %arg4[%c0_106, %c15, %c0_107, %c0_108] : memref<1x25x50x32xf32, #tpu.memory_space<vmem>>, vector<1x1x50x32xf32>
    %101 = vector.shape_cast %100 : vector<1x1x50x32xf32> to vector<50x32xf32>
    %cst_109 = arith.constant dense<0.000000e+00> : vector<2x32xf32>
    %102 = tpu.matmul %99, %101, %cst_109 {dimension_numbers = #tpu.dot_dimension_numbers<[1], [0], [0], [1], [0, 0, 1, 1], [], []>} : vector<2x50xf32>, vector<50x32xf32>, vector<2x32xf32> -> vector<2x32xf32>
    %103 = arith.addf %98, %102 : vector<2x32xf32>
    %c32 = arith.constant 32 : index
    %c0_110 = arith.constant 0 : index
    %104 = vector.load %arg8[%c32, %c0_110] : memref<50x50xf32, #tpu.memory_space<vmem>>, vector<2x50xf32>
    %c0_111 = arith.constant 0 : index
    %c16_112 = arith.constant 16 : index
    %c0_113 = arith.constant 0 : index
    %c0_114 = arith.constant 0 : index
    %105 = vector.load %arg4[%c0_111, %c16_112, %c0_113, %c0_114] : memref<1x25x50x32xf32, #tpu.memory_space<vmem>>, vector<1x1x50x32xf32>
    %106 = vector.shape_cast %105 : vector<1x1x50x32xf32> to vector<50x32xf32>
    %cst_115 = arith.constant dense<0.000000e+00> : vector<2x32xf32>
    %107 = tpu.matmul %104, %106, %cst_115 {dimension_numbers = #tpu.dot_dimension_numbers<[1], [0], [0], [1], [0, 0, 1, 1], [], []>} : vector<2x50xf32>, vector<50x32xf32>, vector<2x32xf32> -> vector<2x32xf32>
    %108 = arith.addf %103, %107 : vector<2x32xf32>
    %c34 = arith.constant 34 : index
    %c0_116 = arith.constant 0 : index
    %109 = vector.load %arg8[%c34, %c0_116] : memref<50x50xf32, #tpu.memory_space<vmem>>, vector<2x50xf32>
    %c0_117 = arith.constant 0 : index
    %c17 = arith.constant 17 : index
    %c0_118 = arith.constant 0 : index
    %c0_119 = arith.constant 0 : index
    %110 = vector.load %arg4[%c0_117, %c17, %c0_118, %c0_119] : memref<1x25x50x32xf32, #tpu.memory_space<vmem>>, vector<1x1x50x32xf32>
    %111 = vector.shape_cast %110 : vector<1x1x50x32xf32> to vector<50x32xf32>
    %cst_120 = arith.constant dense<0.000000e+00> : vector<2x32xf32>
    %112 = tpu.matmul %109, %111, %cst_120 {dimension_numbers = #tpu.dot_dimension_numbers<[1], [0], [0], [1], [0, 0, 1, 1], [], []>} : vector<2x50xf32>, vector<50x32xf32>, vector<2x32xf32> -> vector<2x32xf32>
    %113 = arith.addf %108, %112 : vector<2x32xf32>
    %c36 = arith.constant 36 : index
    %c0_121 = arith.constant 0 : index
    %114 = vector.load %arg8[%c36, %c0_121] : memref<50x50xf32, #tpu.memory_space<vmem>>, vector<2x50xf32>
    %c0_122 = arith.constant 0 : index
    %c18_123 = arith.constant 18 : index
    %c0_124 = arith.constant 0 : index
    %c0_125 = arith.constant 0 : index
    %115 = vector.load %arg4[%c0_122, %c18_123, %c0_124, %c0_125] : memref<1x25x50x32xf32, #tpu.memory_space<vmem>>, vector<1x1x50x32xf32>
    %116 = vector.shape_cast %115 : vector<1x1x50x32xf32> to vector<50x32xf32>
    %cst_126 = arith.constant dense<0.000000e+00> : vector<2x32xf32>
    %117 = tpu.matmul %114, %116, %cst_126 {dimension_numbers = #tpu.dot_dimension_numbers<[1], [0], [0], [1], [0, 0, 1, 1], [], []>} : vector<2x50xf32>, vector<50x32xf32>, vector<2x32xf32> -> vector<2x32xf32>
    %118 = arith.addf %113, %117 : vector<2x32xf32>
    %c38 = arith.constant 38 : index
    %c0_127 = arith.constant 0 : index
    %119 = vector.load %arg8[%c38, %c0_127] : memref<50x50xf32, #tpu.memory_space<vmem>>, vector<2x50xf32>
    %c0_128 = arith.constant 0 : index
    %c19 = arith.constant 19 : index
    %c0_129 = arith.constant 0 : index
    %c0_130 = arith.constant 0 : index
    %120 = vector.load %arg4[%c0_128, %c19, %c0_129, %c0_130] : memref<1x25x50x32xf32, #tpu.memory_space<vmem>>, vector<1x1x50x32xf32>
    %121 = vector.shape_cast %120 : vector<1x1x50x32xf32> to vector<50x32xf32>
    %cst_131 = arith.constant dense<0.000000e+00> : vector<2x32xf32>
    %122 = tpu.matmul %119, %121, %cst_131 {dimension_numbers = #tpu.dot_dimension_numbers<[1], [0], [0], [1], [0, 0, 1, 1], [], []>} : vector<2x50xf32>, vector<50x32xf32>, vector<2x32xf32> -> vector<2x32xf32>
    %123 = arith.addf %118, %122 : vector<2x32xf32>
    %c40 = arith.constant 40 : index
    %c0_132 = arith.constant 0 : index
    %124 = vector.load %arg8[%c40, %c0_132] : memref<50x50xf32, #tpu.memory_space<vmem>>, vector<2x50xf32>
    %c0_133 = arith.constant 0 : index
    %c20_134 = arith.constant 20 : index
    %c0_135 = arith.constant 0 : index
    %c0_136 = arith.constant 0 : index
    %125 = vector.load %arg4[%c0_133, %c20_134, %c0_135, %c0_136] : memref<1x25x50x32xf32, #tpu.memory_space<vmem>>, vector<1x1x50x32xf32>
    %126 = vector.shape_cast %125 : vector<1x1x50x32xf32> to vector<50x32xf32>
    %cst_137 = arith.constant dense<0.000000e+00> : vector<2x32xf32>
    %127 = tpu.matmul %124, %126, %cst_137 {dimension_numbers = #tpu.dot_dimension_numbers<[1], [0], [0], [1], [0, 0, 1, 1], [], []>} : vector<2x50xf32>, vector<50x32xf32>, vector<2x32xf32> -> vector<2x32xf32>
    %128 = arith.addf %123, %127 : vector<2x32xf32>
    %c42 = arith.constant 42 : index
    %c0_138 = arith.constant 0 : index
    %129 = vector.load %arg8[%c42, %c0_138] : memref<50x50xf32, #tpu.memory_space<vmem>>, vector<2x50xf32>
    %c0_139 = arith.constant 0 : index
    %c21 = arith.constant 21 : index
    %c0_140 = arith.constant 0 : index
    %c0_141 = arith.constant 0 : index
    %130 = vector.load %arg4[%c0_139, %c21, %c0_140, %c0_141] : memref<1x25x50x32xf32, #tpu.memory_space<vmem>>, vector<1x1x50x32xf32>
    %131 = vector.shape_cast %130 : vector<1x1x50x32xf32> to vector<50x32xf32>
    %cst_142 = arith.constant dense<0.000000e+00> : vector<2x32xf32>
    %132 = tpu.matmul %129, %131, %cst_142 {dimension_numbers = #tpu.dot_dimension_numbers<[1], [0], [0], [1], [0, 0, 1, 1], [], []>} : vector<2x50xf32>, vector<50x32xf32>, vector<2x32xf32> -> vector<2x32xf32>
    %133 = arith.addf %128, %132 : vector<2x32xf32>
    %c44 = arith.constant 44 : index
    %c0_143 = arith.constant 0 : index
    %134 = vector.load %arg8[%c44, %c0_143] : memref<50x50xf32, #tpu.memory_space<vmem>>, vector<2x50xf32>
    %c0_144 = arith.constant 0 : index
    %c22_145 = arith.constant 22 : index
    %c0_146 = arith.constant 0 : index
    %c0_147 = arith.constant 0 : index
    %135 = vector.load %arg4[%c0_144, %c22_145, %c0_146, %c0_147] : memref<1x25x50x32xf32, #tpu.memory_space<vmem>>, vector<1x1x50x32xf32>
    %136 = vector.shape_cast %135 : vector<1x1x50x32xf32> to vector<50x32xf32>
    %cst_148 = arith.constant dense<0.000000e+00> : vector<2x32xf32>
    %137 = tpu.matmul %134, %136, %cst_148 {dimension_numbers = #tpu.dot_dimension_numbers<[1], [0], [0], [1], [0, 0, 1, 1], [], []>} : vector<2x50xf32>, vector<50x32xf32>, vector<2x32xf32> -> vector<2x32xf32>
    %138 = arith.addf %133, %137 : vector<2x32xf32>
    %c46 = arith.constant 46 : index
    %c0_149 = arith.constant 0 : index
    %139 = vector.load %arg8[%c46, %c0_149] : memref<50x50xf32, #tpu.memory_space<vmem>>, vector<2x50xf32>
    %c0_150 = arith.constant 0 : index
    %c23 = arith.constant 23 : index
    %c0_151 = arith.constant 0 : index
    %c0_152 = arith.constant 0 : index
    %140 = vector.load %arg4[%c0_150, %c23, %c0_151, %c0_152] : memref<1x25x50x32xf32, #tpu.memory_space<vmem>>, vector<1x1x50x32xf32>
    %141 = vector.shape_cast %140 : vector<1x1x50x32xf32> to vector<50x32xf32>
    %cst_153 = arith.constant dense<0.000000e+00> : vector<2x32xf32>
    %142 = tpu.matmul %139, %141, %cst_153 {dimension_numbers = #tpu.dot_dimension_numbers<[1], [0], [0], [1], [0, 0, 1, 1], [], []>} : vector<2x50xf32>, vector<50x32xf32>, vector<2x32xf32> -> vector<2x32xf32>
    %143 = arith.addf %138, %142 : vector<2x32xf32>
    %c48 = arith.constant 48 : index
    %c0_154 = arith.constant 0 : index
    %144 = vector.load %arg8[%c48, %c0_154] : memref<50x50xf32, #tpu.memory_space<vmem>>, vector<2x50xf32>
    %c0_155 = arith.constant 0 : index
    %c24_156 = arith.constant 24 : index
    %c0_157 = arith.constant 0 : index
    %c0_158 = arith.constant 0 : index
    %145 = vector.load %arg4[%c0_155, %c24_156, %c0_157, %c0_158] : memref<1x25x50x32xf32, #tpu.memory_space<vmem>>, vector<1x1x50x32xf32>
    %146 = vector.shape_cast %145 : vector<1x1x50x32xf32> to vector<50x32xf32>
    %cst_159 = arith.constant dense<0.000000e+00> : vector<2x32xf32>
    %147 = tpu.matmul %144, %146, %cst_159 {dimension_numbers = #tpu.dot_dimension_numbers<[1], [0], [0], [1], [0, 0, 1, 1], [], []>} : vector<2x50xf32>, vector<50x32xf32>, vector<2x32xf32> -> vector<2x32xf32>
    %148 = arith.addf %143, %147 : vector<2x32xf32>
    %cst_160 = arith.constant 0.000000e+00 : f32
    %149 = vector.broadcast %cst_160 : f32 to vector<2x32xf32>
    %150 = arith.maximumf %148, %149 : vector<2x32xf32>
    %c0_161 = arith.constant 0 : index
    %c0_162 = arith.constant 0 : index
    %c0_163 = arith.constant 0 : index
    %151 = vector.load %arg6[%c0_161, %c0_162, %c0_163] : memref<1x2x32xf32, #tpu.memory_space<vmem>>, vector<1x2x32xf32>
    %152 = vector.shape_cast %151 : vector<1x2x32xf32> to vector<2x32xf32>
    %153 = vector.shape_cast %150 : vector<2x32xf32> to vector<1x2x32xf32>
    tpu.vector_store %arg6[%c0_161, %c0_162, %c0_163], %153 {strides = array<i32>} : memref<1x2x32xf32, #tpu.memory_space<vmem>>, vector<1x2x32xf32>,
    return
  }
  func.func @transform_0(%arg0: i32) -> (i32, i32, i32) {
    %c0_i32 = arith.constant 0 : i32
    %c0_i32_0 = arith.constant 0 : i32
    %c0_i32_1 = arith.constant 0 : i32
    return %arg0, %c0_i32, %c0_i32_0 : i32, i32, i32
  }
  func.func @transform_1(%arg0: i32) -> (i32, i32, i32) {
    %c0_i32 = arith.constant 0 : i32
    %c0_i32_0 = arith.constant 0 : i32
    %c0_i32_1 = arith.constant 0 : i32
    return %arg0, %c0_i32, %c0_i32_0 : i32, i32, i32
  }
  func.func @transform_2(%arg0: i32) -> (i32, i32, i32) {
    %c0_i32 = arith.constant 0 : i32
    %c0_i32_0 = arith.constant 0 : i32
    %c0_i32_1 = arith.constant 0 : i32
    return %arg0, %c0_i32, %c0_i32_0 : i32, i32, i32
  }
  func.func @transform_3(%arg0: i32) -> (i32, i32, i32, i32) {
    %c0_i32 = arith.constant 0 : i32
    %c0_i32_0 = arith.constant 0 : i32
    %c0_i32_1 = arith.constant 0 : i32
    %c0_i32_2 = arith.constant 0 : i32
    return %arg0, %c0_i32, %c0_i32_0, %c0_i32_1 : i32, i32, i32, i32
  }
  func.func @transform_4(%arg0: i32) -> (i32, i32, i32) {
    %c0_i32 = arith.constant 0 : i32
    %c0_i32_0 = arith.constant 0 : i32
    %c0_i32_1 = arith.constant 0 : i32
    return %arg0, %c0_i32, %c0_i32_0 : i32, i32, i32
  }
  func.func @transform_5(%arg0: i32) -> (i32, i32, i32) {
    %c0_i32 = arith.constant 0 : i32
    %c0_i32_0 = arith.constant 0 : i32
    %c0_i32_1 = arith.constant 0 : i32
    return %arg0, %c0_i32, %c0_i32_0 : i32, i32, i32
  }
}

module attributes {stable_mosaic.version = 11 : i64} {
  func.func @_classifier_kernel(%arg0: i32, %arg1: memref<9x2x32xf32, #tpu.memory_space<vmem>>, %arg2: memref<9x32x10xf32, #tpu.memory_space<vmem>>, %arg3: memref<1x10xf32, #tpu.memory_space<vmem>>, %arg4: memref<2x10xf32, #tpu.memory_space<vmem>>) attributes {dimension_semantics = [#tpu.dimension_semantics<arbitrary>], iteration_bounds = array<i64: 1>, scalar_prefetch = 0 : i64, scratch_operands = 0 : i64, tpu.core_type = #tpu.core_type<tc>, window_params = [{pipeline_mode = #tpu.pipeline_mode<synchronous>, transform_indices = @transform_0, window_bounds = array<i64: 9, 2, 32>}, {pipeline_mode = #tpu.pipeline_mode<synchronous>, transform_indices = @transform_1, window_bounds = array<i64: 9, 32, 10>}, {pipeline_mode = #tpu.pipeline_mode<synchronous>, transform_indices = @transform_2, window_bounds = array<i64: 1, 10>}, {pipeline_mode = #tpu.pipeline_mode<synchronous>, transform_indices = @transform_3, window_bounds = array<i64: 2, 10>}]} {
    %c0 = arith.constant 0 : index
    %c0_0 = arith.constant 0 : index
    %0 = vector.load %arg3[%c0, %c0_0] : memref<1x10xf32, #tpu.memory_space<vmem>>, vector<1x10xf32>
    %1 = vector.shape_cast %0 : vector<1x10xf32> to vector<1x10xf32>
    %2 = vector.broadcast %1 : vector<1x10xf32> to vector<2x10xf32>
    %c0_1 = arith.constant 0 : index
    %c0_2 = arith.constant 0 : index
    %c0_3 = arith.constant 0 : index
    %3 = vector.load %arg1[%c0_1, %c0_2, %c0_3] : memref<9x2x32xf32, #tpu.memory_space<vmem>>, vector<1x2x32xf32>
    %4 = vector.shape_cast %3 : vector<1x2x32xf32> to vector<2x32xf32>
    %c0_4 = arith.constant 0 : index
    %c0_5 = arith.constant 0 : index
    %c0_6 = arith.constant 0 : index
    %5 = vector.load %arg2[%c0_4, %c0_5, %c0_6] : memref<9x32x10xf32, #tpu.memory_space<vmem>>, vector<1x32x10xf32>
    %6 = vector.shape_cast %5 : vector<1x32x10xf32> to vector<32x10xf32>
    %cst = arith.constant dense<0.000000e+00> : vector<2x10xf32>
    %7 = tpu.matmul %4, %6, %cst {dimension_numbers = #tpu.dot_dimension_numbers<[1], [0], [0], [1], [0, 0, 1, 1], [], []>} : vector<2x32xf32>, vector<32x10xf32>, vector<2x10xf32> -> vector<2x10xf32>
    %8 = arith.addf %2, %7 : vector<2x10xf32>
    %c1 = arith.constant 1 : index
    %c0_7 = arith.constant 0 : index
    %c0_8 = arith.constant 0 : index
    %9 = vector.load %arg1[%c1, %c0_7, %c0_8] : memref<9x2x32xf32, #tpu.memory_space<vmem>>, vector<1x2x32xf32>
    %10 = vector.shape_cast %9 : vector<1x2x32xf32> to vector<2x32xf32>
    %c1_9 = arith.constant 1 : index
    %c0_10 = arith.constant 0 : index
    %c0_11 = arith.constant 0 : index
    %11 = vector.load %arg2[%c1_9, %c0_10, %c0_11] : memref<9x32x10xf32, #tpu.memory_space<vmem>>, vector<1x32x10xf32>
    %12 = vector.shape_cast %11 : vector<1x32x10xf32> to vector<32x10xf32>
    %cst_12 = arith.constant dense<0.000000e+00> : vector<2x10xf32>
    %13 = tpu.matmul %10, %12, %cst_12 {dimension_numbers = #tpu.dot_dimension_numbers<[1], [0], [0], [1], [0, 0, 1, 1], [], []>} : vector<2x32xf32>, vector<32x10xf32>, vector<2x10xf32> -> vector<2x10xf32>
    %14 = arith.addf %8, %13 : vector<2x10xf32>
    %c2 = arith.constant 2 : index
    %c0_13 = arith.constant 0 : index
    %c0_14 = arith.constant 0 : index
    %15 = vector.load %arg1[%c2, %c0_13, %c0_14] : memref<9x2x32xf32, #tpu.memory_space<vmem>>, vector<1x2x32xf32>
    %16 = vector.shape_cast %15 : vector<1x2x32xf32> to vector<2x32xf32>
    %c2_15 = arith.constant 2 : index
    %c0_16 = arith.constant 0 : index
    %c0_17 = arith.constant 0 : index
    %17 = vector.load %arg2[%c2_15, %c0_16, %c0_17] : memref<9x32x10xf32, #tpu.memory_space<vmem>>, vector<1x32x10xf32>
    %18 = vector.shape_cast %17 : vector<1x32x10xf32> to vector<32x10xf32>
    %cst_18 = arith.constant dense<0.000000e+00> : vector<2x10xf32>
    %19 = tpu.matmul %16, %18, %cst_18 {dimension_numbers = #tpu.dot_dimension_numbers<[1], [0], [0], [1], [0, 0, 1, 1], [], []>} : vector<2x32xf32>, vector<32x10xf32>, vector<2x10xf32> -> vector<2x10xf32>
    %20 = arith.addf %14, %19 : vector<2x10xf32>
    %c3 = arith.constant 3 : index
    %c0_19 = arith.constant 0 : index
    %c0_20 = arith.constant 0 : index
    %21 = vector.load %arg1[%c3, %c0_19, %c0_20] : memref<9x2x32xf32, #tpu.memory_space<vmem>>, vector<1x2x32xf32>
    %22 = vector.shape_cast %21 : vector<1x2x32xf32> to vector<2x32xf32>
    %c3_21 = arith.constant 3 : index
    %c0_22 = arith.constant 0 : index
    %c0_23 = arith.constant 0 : index
    %23 = vector.load %arg2[%c3_21, %c0_22, %c0_23] : memref<9x32x10xf32, #tpu.memory_space<vmem>>, vector<1x32x10xf32>
    %24 = vector.shape_cast %23 : vector<1x32x10xf32> to vector<32x10xf32>
    %cst_24 = arith.constant dense<0.000000e+00> : vector<2x10xf32>
    %25 = tpu.matmul %22, %24, %cst_24 {dimension_numbers = #tpu.dot_dimension_numbers<[1], [0], [0], [1], [0, 0, 1, 1], [], []>} : vector<2x32xf32>, vector<32x10xf32>, vector<2x10xf32> -> vector<2x10xf32>
    %26 = arith.addf %20, %25 : vector<2x10xf32>
    %c4 = arith.constant 4 : index
    %c0_25 = arith.constant 0 : index
    %c0_26 = arith.constant 0 : index
    %27 = vector.load %arg1[%c4, %c0_25, %c0_26] : memref<9x2x32xf32, #tpu.memory_space<vmem>>, vector<1x2x32xf32>
    %28 = vector.shape_cast %27 : vector<1x2x32xf32> to vector<2x32xf32>
    %c4_27 = arith.constant 4 : index
    %c0_28 = arith.constant 0 : index
    %c0_29 = arith.constant 0 : index
    %29 = vector.load %arg2[%c4_27, %c0_28, %c0_29] : memref<9x32x10xf32, #tpu.memory_space<vmem>>, vector<1x32x10xf32>
    %30 = vector.shape_cast %29 : vector<1x32x10xf32> to vector<32x10xf32>
    %cst_30 = arith.constant dense<0.000000e+00> : vector<2x10xf32>
    %31 = tpu.matmul %28, %30, %cst_30 {dimension_numbers = #tpu.dot_dimension_numbers<[1], [0], [0], [1], [0, 0, 1, 1], [], []>} : vector<2x32xf32>, vector<32x10xf32>, vector<2x10xf32> -> vector<2x10xf32>
    %32 = arith.addf %26, %31 : vector<2x10xf32>
    %c5 = arith.constant 5 : index
    %c0_31 = arith.constant 0 : index
    %c0_32 = arith.constant 0 : index
    %33 = vector.load %arg1[%c5, %c0_31, %c0_32] : memref<9x2x32xf32, #tpu.memory_space<vmem>>, vector<1x2x32xf32>
    %34 = vector.shape_cast %33 : vector<1x2x32xf32> to vector<2x32xf32>
    %c5_33 = arith.constant 5 : index
    %c0_34 = arith.constant 0 : index
    %c0_35 = arith.constant 0 : index
    %35 = vector.load %arg2[%c5_33, %c0_34, %c0_35] : memref<9x32x10xf32, #tpu.memory_space<vmem>>, vector<1x32x10xf32>
    %36 = vector.shape_cast %35 : vector<1x32x10xf32> to vector<32x10xf32>
    %cst_36 = arith.constant dense<0.000000e+00> : vector<2x10xf32>
    %37 = tpu.matmul %34, %36, %cst_36 {dimension_numbers = #tpu.dot_dimension_numbers<[1], [0], [0], [1], [0, 0, 1, 1], [], []>} : vector<2x32xf32>, vector<32x10xf32>, vector<2x10xf32> -> vector<2x10xf32>
    %38 = arith.addf %32, %37 : vector<2x10xf32>
    %c6 = arith.constant 6 : index
    %c0_37 = arith.constant 0 : index
    %c0_38 = arith.constant 0 : index
    %39 = vector.load %arg1[%c6, %c0_37, %c0_38] : memref<9x2x32xf32, #tpu.memory_space<vmem>>, vector<1x2x32xf32>
    %40 = vector.shape_cast %39 : vector<1x2x32xf32> to vector<2x32xf32>
    %c6_39 = arith.constant 6 : index
    %c0_40 = arith.constant 0 : index
    %c0_41 = arith.constant 0 : index
    %41 = vector.load %arg2[%c6_39, %c0_40, %c0_41] : memref<9x32x10xf32, #tpu.memory_space<vmem>>, vector<1x32x10xf32>
    %42 = vector.shape_cast %41 : vector<1x32x10xf32> to vector<32x10xf32>
    %cst_42 = arith.constant dense<0.000000e+00> : vector<2x10xf32>
    %43 = tpu.matmul %40, %42, %cst_42 {dimension_numbers = #tpu.dot_dimension_numbers<[1], [0], [0], [1], [0, 0, 1, 1], [], []>} : vector<2x32xf32>, vector<32x10xf32>, vector<2x10xf32> -> vector<2x10xf32>
    %44 = arith.addf %38, %43 : vector<2x10xf32>
    %c7 = arith.constant 7 : index
    %c0_43 = arith.constant 0 : index
    %c0_44 = arith.constant 0 : index
    %45 = vector.load %arg1[%c7, %c0_43, %c0_44] : memref<9x2x32xf32, #tpu.memory_space<vmem>>, vector<1x2x32xf32>
    %46 = vector.shape_cast %45 : vector<1x2x32xf32> to vector<2x32xf32>
    %c7_45 = arith.constant 7 : index
    %c0_46 = arith.constant 0 : index
    %c0_47 = arith.constant 0 : index
    %47 = vector.load %arg2[%c7_45, %c0_46, %c0_47] : memref<9x32x10xf32, #tpu.memory_space<vmem>>, vector<1x32x10xf32>
    %48 = vector.shape_cast %47 : vector<1x32x10xf32> to vector<32x10xf32>
    %cst_48 = arith.constant dense<0.000000e+00> : vector<2x10xf32>
    %49 = tpu.matmul %46, %48, %cst_48 {dimension_numbers = #tpu.dot_dimension_numbers<[1], [0], [0], [1], [0, 0, 1, 1], [], []>} : vector<2x32xf32>, vector<32x10xf32>, vector<2x10xf32> -> vector<2x10xf32>
    %50 = arith.addf %44, %49 : vector<2x10xf32>
    %c8 = arith.constant 8 : index
    %c0_49 = arith.constant 0 : index
    %c0_50 = arith.constant 0 : index
    %51 = vector.load %arg1[%c8, %c0_49, %c0_50] : memref<9x2x32xf32, #tpu.memory_space<vmem>>, vector<1x2x32xf32>
    %52 = vector.shape_cast %51 : vector<1x2x32xf32> to vector<2x32xf32>
    %c8_51 = arith.constant 8 : index
    %c0_52 = arith.constant 0 : index
    %c0_53 = arith.constant 0 : index
    %53 = vector.load %arg2[%c8_51, %c0_52, %c0_53] : memref<9x32x10xf32, #tpu.memory_space<vmem>>, vector<1x32x10xf32>
    %54 = vector.shape_cast %53 : vector<1x32x10xf32> to vector<32x10xf32>
    %cst_54 = arith.constant dense<0.000000e+00> : vector<2x10xf32>
    %55 = tpu.matmul %52, %54, %cst_54 {dimension_numbers = #tpu.dot_dimension_numbers<[1], [0], [0], [1], [0, 0, 1, 1], [], []>} : vector<2x32xf32>, vector<32x10xf32>, vector<2x10xf32> -> vector<2x10xf32>
    %56 = arith.addf %50, %55 : vector<2x10xf32>
    %c0_55 = arith.constant 0 : index
    %c0_56 = arith.constant 0 : index
    %57 = vector.load %arg4[%c0_55, %c0_56] : memref<2x10xf32, #tpu.memory_space<vmem>>, vector<2x10xf32>
    tpu.vector_store %arg4[%c0_55, %c0_56], %56 {strides = array<i32>} : memref<2x10xf32, #tpu.memory_space<vmem>>, vector<2x10xf32>,
    return
  }
  func.func @transform_0(%arg0: i32) -> (i32, i32, i32) {
    %c0_i32 = arith.constant 0 : i32
    %c0_i32_0 = arith.constant 0 : i32
    %c0_i32_1 = arith.constant 0 : i32
    %c0_i32_2 = arith.constant 0 : i32
    return %c0_i32, %c0_i32_0, %c0_i32_1 : i32, i32, i32
  }
  func.func @transform_1(%arg0: i32) -> (i32, i32, i32) {
    %c0_i32 = arith.constant 0 : i32
    %c0_i32_0 = arith.constant 0 : i32
    %c0_i32_1 = arith.constant 0 : i32
    %c0_i32_2 = arith.constant 0 : i32
    return %c0_i32, %c0_i32_0, %c0_i32_1 : i32, i32, i32
  }
  func.func @transform_2(%arg0: i32) -> (i32, i32) {
    %c0_i32 = arith.constant 0 : i32
    %c0_i32_0 = arith.constant 0 : i32
    %c0_i32_1 = arith.constant 0 : i32
    return %c0_i32, %c0_i32_0 : i32, i32
  }
  func.func @transform_3(%arg0: i32) -> (i32, i32) {
    %c0_i32 = arith.constant 0 : i32
    %c0_i32_0 = arith.constant 0 : i32
    %c0_i32_1 = arith.constant 0 : i32
    return %c0_i32, %c0_i32_0 : i32, i32
  }
}

</mosaic_0001>

<bundles_post_ra>
// kernel: multistream_cnn_forward.3
= control target key start
LH: loop header
LB: loop body
LE: loop exit
PB: predicated region body
PF: predicated region fallthrough
CT: control target
= control target key end

     0   :  { %s2821_s12 = smov 0   ;;  %s3777_s0 = inlined_call_operand.vmem [shape: f32[9,1568,50], index: 0, kind: input, shape index: {}]   ;;  %s3778_s1 = inlined_call_operand.vmem [shape: f32[9,50,20], index: 1, kind: input, shape index: {}]   ;;  %s3779_s2 = inlined_call_operand.vmem [shape: f32[9,1,20], index: 2, kind: input, shape index: {}]   ;;  %s3780_s3 = inlined_call_operand.vmem [shape: f32[9,392,20], index: 3, kind: output, shape index: {}]  }
   0x1 LB: > { %s2538_s13 = sadd.s32 4294967295, %s2799_s12   ;;  %p2542_p0 = scmp.ge.s32.totalorder %s2799_s12, 1  ;;  %s2799_s12 = sphi %s2821_s12, %s13_s12  }
   0x2   : > { %p155_p1 = scmp.lt.s32.totalorder %s2799_s12, 10 }
   0x4   : > { %p156_p2 = pnand %p2542_p0, %p155_p1 }
   0x5   : > { %p187_p3 = scmp.lt.s32.totalorder (!%p156_p2), %s2538_s13, 8 }
   0x6   : > { %159 = sbr.rel (%p156_p2) target bundleno = 554 (0x22a), region = 32 }
   0xb   : > { %s3782_s13 = smov (!%p187_p3, %s2538_s13), 8  ;;  %vm245_vm0 = vcmask 1041408   ;;  %vm223_vm1 = vcmask 408576   ;;  %vm534_vm2 = vcmask 162816  }
   0xc   : > { %s2773_s14 = smul.u32 56, %s3782_s13  ;;  %s2900_s24 = scalar_lea.vmem %s3779_s2, %s3782_s13 }
   0xd   : > { %s2772_s18 = smul.u32 1568, %s3782_s13 }
   0xe   : > { %s2835_s17 = scalar_lea.vmem %s3778_s1, %s2773_s14  ;;  %s2774_s25 = smul.u32 392, %s3782_s13 }
   0xf   : > { %v2838_v0 = vld [vmem:[%s2835_s17 + $0x30] sm:$0x3]  ;;  %v2841_v1 = vld [vmem:[%s2835_s17 + $0x28] sm:$0xff]  ;;  %v2852_v2 = vld [vmem:[%s2835_s17 + $0x20] sm:$0xff]  ;;  %s2879_s21 = scalar_lea.vmem %s3777_s0, %s2772_s18 }
  0x10   : > { %2562 = vmatpush.msk.msra.mxu2 %vm245_vm0, %v2838_v0  ;;  %2570 = vmatpush.msk.msra.mxu3 %vm245_vm0, %v2838_v0  ;;  %v2859_v3 = vld [vmem:[%s2835_s17 + $0x18] sm:$0xff]  ;;  %v2867_v4 = vld [vmem:[%s2835_s17 + $0x10] sm:$0xff]  ;;  %v2874_v5 = vld [vmem:[%s2835_s17 + $0x8] sm:$0xff]  ;;  %s3183_s28 = scalar_lea.vmem %s3780_s3, %s2774_s25 }
  0x11   : > { %2546 = vmatpush.msk.msra.mxu0 %vm245_vm0, %v2838_v0  ;;  %2554 = vmatpush.msk.msra.mxu1 %vm245_vm0, %v2838_v0  ;;  %v2886_v6 = vld [vmem:[%s2835_s17] sm:$0xff]  ;;  %v374_v7 = vld [vmem:[%s2879_s21 + $0x310] sm:$0xff]  ;;  %v454_v8 = vld [vmem:[%s2879_s21 + $0x498] sm:$0xff] }
  0x12   : > { %412 = vmatpush.msra.mxu2 %v2841_v1  ;;  %492 = vmatpush.msra.mxu3 %v2841_v1  ;;  %v213_v9 = vld [vmem:[%s2879_s21] sm:$0xff]  ;;  %v294_v10 = vld [vmem:[%s2879_s21 + $0x188] sm:$0xff]  ;;  %v375_v11 = vld [vmem:[%s2879_s21 + $0x318] sm:$0xff] }
  0x13   : > { %259 = vmatpush.msra.mxu0 %v2841_v1  ;;  %332 = vmatpush.msra.mxu1 %v2841_v1  ;;  %v455_v12 = vld [vmem:[%s2879_s21 + $0x4a0] sm:$0xff]  ;;  %v214_v13 = vld [vmem:[%s2879_s21 + $0x8] sm:$0xff]  ;;  %v295_v14 = vld [vmem:[%s2879_s21 + $0x190] sm:$0xff] }
  0x14   : > { %413 = vmatpush.msra.mxu2 %v2852_v2  ;;  %493 = vmatpush.msra.mxu3 %v2852_v2  ;;  %v376_v15 = vld [vmem:[%s2879_s21 + $0x320] sm:$0xff]  ;;  %v456_v16 = vld [vmem:[%s2879_s21 + $0x4a8] sm:$0xff]  ;;  %v215_v17 = vld [vmem:[%s2879_s21 + $0x10] sm:$0xff] }
  0x15   : > { %260 = vmatpush.msra.mxu0 %v2852_v2  ;;  %333 = vmatpush.msra.mxu1 %v2852_v2  ;;  %v296_v18 = vld [vmem:[%s2879_s21 + $0x198] sm:$0xff]  ;;  %v377_v19 = vld [vmem:[%s2879_s21 + $0x328] sm:$0xff]  ;;  %v457_v20 = vld [vmem:[%s2879_s21 + $0x4b0] sm:$0xff] }
  0x16   : > { %414 = vmatpush.msra.mxu2 %v2859_v3  ;;  %494 = vmatpush.msra.mxu3 %v2859_v3  ;;  %v216_v21 = vld [vmem:[%s2879_s21 + $0x18] sm:$0xff]  ;;  %v297_v22 = vld [vmem:[%s2879_s21 + $0x1a0] sm:$0xff]  ;;  %v378_v23 = vld [vmem:[%s2879_s21 + $0x330] sm:$0xff] }
  0x17   : > { %261 = vmatpush.msra.mxu0 %v2859_v3  ;;  %334 = vmatpush.msra.mxu1 %v2859_v3  ;;  %v458_v24 = vld [vmem:[%s2879_s21 + $0x4b8] sm:$0xff]  ;;  %v217_v25 = vld [vmem:[%s2879_s21 + $0x20] sm:$0xff]  ;;  %v298_v26 = vld [vmem:[%s2879_s21 + $0x1a8] sm:$0xff] }
  0x18   : > { %415 = vmatpush.msra.mxu2 %v2867_v4  ;;  %495 = vmatpush.msra.mxu3 %v2867_v4  ;;  %v379_v27 = vld [vmem:[%s2879_s21 + $0x338] sm:$0xff]  ;;  %v459_v28 = vld [vmem:[%s2879_s21 + $0x4c0] sm:$0xff]  ;;  %v218_v29 = vld [vmem:[%s2879_s21 + $0x28] sm:$0xff] }
  0x19   : > { %262 = vmatpush.msra.mxu0 %v2867_v4  ;;  %335 = vmatpush.msra.mxu1 %v2867_v4  ;;  %v299_v30 = vld [vmem:[%s2879_s21 + $0x1b0] sm:$0xff]  ;;  %v380_v31 = vld [vmem:[%s2879_s21 + $0x340] sm:$0xff]  ;;  %v460_v32 = vld [vmem:[%s2879_s21 + $0x4c8] sm:$0xff] }
  0x1a   : > { %416 = vmatpush.msra.mxu2 %v2874_v5  ;;  %496 = vmatpush.msra.mxu3 %v2874_v5  ;;  %v219_v33 = vld [vmem:[%s2879_s21 + $0x30] sm:$0xff]  ;;  %v300_v34 = vld [vmem:[%s2879_s21 + $0x1b8] sm:$0xff]  ;;  %v695_v35 = vld [vmem:[%s2879_s21 + $0x348] sm:$0xff] }
  0x1b   : > { %263 = vmatpush.msra.mxu0 %v2874_v5  ;;  %336 = vmatpush.msra.mxu1 %v2874_v5  ;;  %v775_v36 = vld [vmem:[%s2879_s21 + $0x4d0] sm:$0xff]  ;;  %v542_v37 = vld [vmem:[%s2879_s21 + $0x38] sm:$0xff]  ;;  %v615_v38 = vld [vmem:[%s2879_s21 + $0x1c0] sm:$0xff] }
  0x1c   : > { %417 = vmatpush.msra.mxu2 %v2886_v6  ;;  %497 = vmatpush.msra.mxu3 %v2886_v6  ;;  %v696_v39 = vld [vmem:[%s2879_s21 + $0x350] sm:$0xff]  ;;  %v776_v40 = vld [vmem:[%s2879_s21 + $0x4d8] sm:$0xff]  ;;  %v543_v41 = vld [vmem:[%s2879_s21 + $0x40] sm:$0xff] }
  0x1d   : > { %2563 = vmatmul.msk.f32.vlgmr.msra.gmra.mxu2 %vm223_vm1, %v374_v7  ;;  %2571 = vmatmul.msk.f32.vlgmr.msra.gmra.mxu3 %vm223_vm1, %v454_v8  ;;  %v616_v42 = vld [vmem:[%s2879_s21 + $0x1c8] sm:$0xff]  ;;  %v697_v43 = vld [vmem:[%s2879_s21 + $0x358] sm:$0xff]  ;;  %v777_v44 = vld [vmem:[%s2879_s21 + $0x4e0] sm:$0xff] }
  0x1e   : > { %2594 = vmatpush.msk.msrb.mxu2 %vm245_vm0, %v2838_v0  ;;  %2602 = vmatpush.msk.msrb.mxu3 %vm245_vm0, %v2838_v0  ;;  %v544_v45 = vld [vmem:[%s2879_s21 + $0x48] sm:$0xff]  ;;  %v617_v46 = vld [vmem:[%s2879_s21 + $0x1d0] sm:$0xff]  ;;  %v698_v47 = vld [vmem:[%s2879_s21 + $0x360] sm:$0xff] }
  0x1f   : > { %264 = vmatpush.msra.mxu0 %v2886_v6  ;;  %337 = vmatpush.msra.mxu1 %v2886_v6  ;;  %v778_v48 = vld [vmem:[%s2879_s21 + $0x4e8] sm:$0xff]  ;;  %v545_v49 = vld [vmem:[%s2879_s21 + $0x50] sm:$0xff]  ;;  %v618_v50 = vld [vmem:[%s2879_s21 + $0x1d8] sm:$0xff] }
  0x20   : > { %2547 = vmatmul.msk.f32.vlgmr.msra.gmra.mxu0 %vm223_vm1, %v213_v9  ;;  %2555 = vmatmul.msk.f32.vlgmr.msra.gmra.mxu1 %vm223_vm1, %v294_v10  ;;  %v699_v51 = vld [vmem:[%s2879_s21 + $0x368] sm:$0xff]  ;;  %v779_v52 = vld [vmem:[%s2879_s21 + $0x4f0] sm:$0xff]  ;;  %v546_v53 = vld [vmem:[%s2879_s21 + $0x58] sm:$0xff] }
  0x21   : > { %2578 = vmatpush.msk.msrb.mxu0 %vm245_vm0, %v2838_v0  ;;  %2586 = vmatpush.msk.msrb.mxu1 %vm245_vm0, %v2838_v0  ;;  %v619_v54 = vld [vmem:[%s2879_s21 + $0x1e0] sm:$0xff]  ;;  %v700_v55 = vld [vmem:[%s2879_s21 + $0x370] sm:$0xff]  ;;  %v780_v56 = vld [vmem:[%s2879_s21 + $0x4f8] sm:$0xff] }
  0x22   : > { %733 = vmatpush.msrb.mxu2 %v2841_v1  ;;  %813 = vmatpush.msrb.mxu3 %v2841_v1  ;;  %v547_v57 = vld [vmem:[%s2879_s21 + $0x60] sm:$0xff]  ;;  %v620_v58 = vld [vmem:[%s2879_s21 + $0x1e8] sm:$0xff]  ;;  %v701_v59 = vld [vmem:[%s2879_s21 + $0x378] sm:$0xff] }
  0x23   : > { %580 = vmatpush.msrb.mxu0 %v2841_v1  ;;  %653 = vmatpush.msrb.mxu1 %v2841_v1  ;;  %v781_v60 = vld [vmem:[%s2879_s21 + $0x500] sm:$0xff]  ;;  %v548_v61 = vld [vmem:[%s2879_s21 + $0x68] sm:$0xff]  ;;  %v621_v62 = vld [vmem:[%s2879_s21 + $0x1f0] sm:$0xff] }
  0x24   : > { %734 = vmatpush.msrb.mxu2 %v2852_v2  ;;  %814 = vmatpush.msrb.mxu3 %v2852_v2  ;;  %v1015_v63 = vld [vmem:[%s2879_s21 + $0x380] sm:$0xff]  ;;  %v1095_v7 = vld [vmem:[%s2879_s21 + $0x508] sm:$0xff]  ;;  %v862_v8 = vld [vmem:[%s2879_s21 + $0x70] sm:$0xff] }
  0x25   : > { %2564 = vmatmul.msk.f32.gmra.mxu2 %vm223_vm1, %v375_v11  ;;  %2572 = vmatmul.msk.f32.gmra.mxu3 %vm223_vm1, %v455_v12  ;;  %v935_v9 = vld [vmem:[%s2879_s21 + $0x1f8] sm:$0xff]  ;;  %v1016_v10 = vld [vmem:[%s2879_s21 + $0x388] sm:$0xff]  ;;  %v1096_v11 = vld [vmem:[%s2879_s21 + $0x510] sm:$0xff] }
  0x26   : > { %581 = vmatpush.msrb.mxu0 %v2852_v2  ;;  %654 = vmatpush.msrb.mxu1 %v2852_v2  ;;  %v863_v12 = vld [vmem:[%s2879_s21 + $0x78] sm:$0xff] }
  0x27   : > { %735 = vmatpush.msrb.mxu2 %v2859_v3  ;;  %815 = vmatpush.msrb.mxu3 %v2859_v3 }
  0x28   : > { %2548 = vmatmul.msk.f32.gmra.mxu0 %vm223_vm1, %v214_v13  ;;  %2556 = vmatmul.msk.f32.gmra.mxu1 %vm223_vm1, %v295_v14  ;;  %v936_v13 = vld [vmem:[%s2879_s21 + $0x200] sm:$0xff]  ;;  %v1017_v14 = vld [vmem:[%s2879_s21 + $0x390] sm:$0xff] }
  0x29   : > { %582 = vmatpush.msrb.mxu0 %v2859_v3  ;;  %655 = vmatpush.msrb.mxu1 %v2859_v3 }
  0x2a   : > { %736 = vmatpush.msrb.mxu2 %v2867_v4  ;;  %816 = vmatpush.msrb.mxu3 %v2867_v4 }
  0x2b   : > { %583 = vmatpush.msrb.mxu0 %v2867_v4  ;;  %656 = vmatpush.msrb.mxu1 %v2867_v4 }
  0x2c   : > { %737 = vmatpush.msrb.mxu2 %v2874_v5  ;;  %817 = vmatpush.msrb.mxu3 %v2874_v5 }
  0x2d   : > { %2565 = vmatmul.msk.f32.gmra.mxu2 %vm223_vm1, %v376_v15  ;;  %2573 = vmatmul.msk.f32.gmra.mxu3 %vm223_vm1, %v456_v16  ;;  %v3148_v15 = vld [vmem:[%s2900_s24] ss:$0 sm:$0xff]  ;;  %v1097_v16 = vld [vmem:[%s2879_s21 + $0x518] sm:$0xff] }
  0x2e   : > { %584 = vmatpush.msrb.mxu0 %v2874_v5  ;;  %657 = vmatpush.msrb.mxu1 %v2874_v5 }
  0x2f   : > { %738 = vmatpush.msrb.mxu2 %v2886_v6  ;;  %818 = vmatpush.msrb.mxu3 %v2886_v6 }
  0x30   : > { %2549 = vmatmul.msk.f32.gmra.mxu0 %vm223_vm1, %v215_v17  ;;  %2557 = vmatmul.msk.f32.gmra.mxu1 %vm223_vm1, %v296_v18 }
  0x31   : > { %585 = vmatpush.msrb.mxu0 %v2886_v6  ;;  %658 = vmatpush.msrb.mxu1 %v2886_v6 }
  0x32   : > { %2626 = vmatpush.msk.msra.mxu2 %vm245_vm0, %v2838_v0  ;;  %2634 = vmatpush.msk.msra.mxu3 %vm245_vm0, %v2838_v0 }
  0x33   : > { %2610 = vmatpush.msk.msra.mxu0 %vm245_vm0, %v2838_v0  ;;  %2618 = vmatpush.msk.msra.mxu1 %vm245_vm0, %v2838_v0 }
  0x34   : > { %1053 = vmatpush.msra.mxu2 %v2841_v1  ;;  %1133 = vmatpush.msra.mxu3 %v2841_v1 }
  0x35   : > { %2566 = vmatmul.msk.f32.gmra.mxu2 %vm223_vm1, %v377_v19  ;;  %2574 = vmatmul.msk.f32.gmra.mxu3 %vm223_vm1, %v457_v20  ;;  %v864_v19 = vld [vmem:[%s2879_s21 + $0x80] sm:$0xff]  ;;  %v937_v20 = vld [vmem:[%s2879_s21 + $0x208] sm:$0xff] }
  0x36   : > { %900 = vmatpush.msra.mxu0 %v2841_v1  ;;  %973 = vmatpush.msra.mxu1 %v2841_v1 }
  0x37   : > { %1054 = vmatpush.msra.mxu2 %v2852_v2  ;;  %1134 = vmatpush.msra.mxu3 %v2852_v2 }
  0x38   : > { %2550 = vmatmul.msk.f32.gmra.mxu0 %vm223_vm1, %v216_v21  ;;  %2558 = vmatmul.msk.f32.gmra.mxu1 %vm223_vm1, %v297_v22 }
  0x39   : > { %901 = vmatpush.msra.mxu0 %v2852_v2  ;;  %974 = vmatpush.msra.mxu1 %v2852_v2 }
  0x3a   : > { %1055 = vmatpush.msra.mxu2 %v2859_v3  ;;  %1135 = vmatpush.msra.mxu3 %v2859_v3 }
  0x3b   : > { %902 = vmatpush.msra.mxu0 %v2859_v3  ;;  %975 = vmatpush.msra.mxu1 %v2859_v3 }
  0x3c   : > { %1056 = vmatpush.msra.mxu2 %v2867_v4  ;;  %1136 = vmatpush.msra.mxu3 %v2867_v4 }
  0x3d   : > { %2567 = vmatmul.msk.f32.gmra.mxu2 %vm223_vm1, %v378_v23  ;;  %2575 = vmatmul.msk.f32.gmra.mxu3 %vm223_vm1, %v458_v24 }
  0x3e   : > { %903 = vmatpush.msra.mxu0 %v2867_v4  ;;  %976 = vmatpush.msra.mxu1 %v2867_v4 }
  0x3f   : > { %1057 = vmatpush.msra.mxu2 %v2874_v5  ;;  %1137 = vmatpush.msra.mxu3 %v2874_v5 }
  0x40   : > { %2551 = vmatmul.msk.f32.gmra.mxu0 %vm223_vm1, %v217_v25  ;;  %2559 = vmatmul.msk.f32.gmra.mxu1 %vm223_vm1, %v298_v26 }
  0x41   : > { %904 = vmatpush.msra.mxu0 %v2874_v5  ;;  %977 = vmatpush.msra.mxu1 %v2874_v5 }
  0x42   : > { %1058 = vmatpush.msra.mxu2 %v2886_v6  ;;  %1138 = vmatpush.msra.mxu3 %v2886_v6 }
  0x43   : > { %905 = vmatpush.msra.mxu0 %v2886_v6  ;;  %978 = vmatpush.msra.mxu1 %v2886_v6 }
  0x45   : > { %2568 = vmatmul.msk.f32.gmra.mxu2 %vm223_vm1, %v379_v27  ;;  %2576 = vmatmul.msk.f32.gmra.mxu3 %vm223_vm1, %v459_v28 }
  0x48   : > { %2552 = vmatmul.msk.f32.gmra.mxu0 %vm223_vm1, %v218_v29  ;;  %2560 = vmatmul.msk.f32.gmra.mxu1 %vm223_vm1, %v299_v30  ;;  %v1018_v30 = vld [vmem:[%s2879_s21 + $0x398] sm:$0xff] }
  0x4d   : > { %2569 = vmatmul.msk.f32.gmra.mxu2 %vm223_vm1, %v380_v31  ;;  %2577 = vmatmul.msk.f32.gmra.mxu3 %vm223_vm1, %v460_v32  ;;  %v1098_v31 = vld [vmem:[%s2879_s21 + $0x520] sm:$0xff] }
  0x50   : > { %2553 = vmatmul.msk.f32.gmra.mxu0 %vm223_vm1, %v219_v33  ;;  %2561 = vmatmul.msk.f32.gmra.mxu1 %vm223_vm1, %v300_v34 }
  0x55   : > { %2595 = vmatmul.msk.f32.vlgmr.msrb.gmra.mxu2 %vm223_vm1, %v695_v35  ;;  %2603 = vmatmul.msk.f32.vlgmr.msrb.gmra.mxu3 %vm223_vm1, %v775_v36 }
  0x56   : > { %2658 = vmatpush.msk.msrb.mxu2 %vm245_vm0, %v2838_v0  ;;  %2666 = vmatpush.msk.msrb.mxu3 %vm245_vm0, %v2838_v0 }
  0x58   : > { %2579 = vmatmul.msk.f32.vlgmr.msrb.gmra.mxu0 %vm223_vm1, %v542_v37  ;;  %2587 = vmatmul.msk.f32.vlgmr.msrb.gmra.mxu1 %vm223_vm1, %v615_v38  ;;  %v865_v37 = vld [vmem:[%s2879_s21 + $0x88] sm:$0xff]  ;;  %v938_v38 = vld [vmem:[%s2879_s21 + $0x210] sm:$0xff] }
  0x59   : > { %2642 = vmatpush.msk.msrb.mxu0 %vm245_vm0, %v2838_v0  ;;  %2650 = vmatpush.msk.msrb.mxu1 %vm245_vm0, %v2838_v0 }
  0x5a   : > { %1373 = vmatpush.msrb.mxu2 %v2841_v1  ;;  %1453 = vmatpush.msrb.mxu3 %v2841_v1 }
  0x5b   : > { %1220 = vmatpush.msrb.mxu0 %v2841_v1  ;;  %1293 = vmatpush.msrb.mxu1 %v2841_v1 }
  0x5c   : > { %1374 = vmatpush.msrb.mxu2 %v2852_v2  ;;  %1454 = vmatpush.msrb.mxu3 %v2852_v2 }
  0x5d   : > { %2596 = vmatmul.msk.f32.gmra.mxu2 %vm223_vm1, %v696_v39  ;;  %2604 = vmatmul.msk.f32.gmra.mxu3 %vm223_vm1, %v776_v40 }
  0x5e   : > { %1221 = vmatpush.msrb.mxu0 %v2852_v2  ;;  %1294 = vmatpush.msrb.mxu1 %v2852_v2 }
  0x5f   : > { %1375 = vmatpush.msrb.mxu2 %v2859_v3  ;;  %1455 = vmatpush.msrb.mxu3 %v2859_v3 }
  0x60   : > { %2580 = vmatmul.msk.f32.gmra.mxu0 %vm223_vm1, %v543_v41  ;;  %2588 = vmatmul.msk.f32.gmra.mxu1 %vm223_vm1, %v616_v42 }
  0x61   : > { %1222 = vmatpush.msrb.mxu0 %v2859_v3  ;;  %1295 = vmatpush.msrb.mxu1 %v2859_v3 }
  0x62   : > { %1376 = vmatpush.msrb.mxu2 %v2867_v4  ;;  %1456 = vmatpush.msrb.mxu3 %v2867_v4 }
  0x63   : > { %1223 = vmatpush.msrb.mxu0 %v2867_v4  ;;  %1296 = vmatpush.msrb.mxu1 %v2867_v4 }
  0x64   : > { %1377 = vmatpush.msrb.mxu2 %v2874_v5  ;;  %1457 = vmatpush.msrb.mxu3 %v2874_v5 }
  0x65   : > { %2597 = vmatmul.msk.f32.gmra.mxu2 %vm223_vm1, %v697_v43  ;;  %2605 = vmatmul.msk.f32.gmra.mxu3 %vm223_vm1, %v777_v44 }
  0x66   : > { %1224 = vmatpush.msrb.mxu0 %v2874_v5  ;;  %1297 = vmatpush.msrb.mxu1 %v2874_v5 }
  0x67   : > { %1378 = vmatpush.msrb.mxu2 %v2886_v6  ;;  %1458 = vmatpush.msrb.mxu3 %v2886_v6 }
  0x68   : > { %2581 = vmatmul.msk.f32.gmra.mxu0 %vm223_vm1, %v544_v45  ;;  %2589 = vmatmul.msk.f32.gmra.mxu1 %vm223_vm1, %v617_v46 }
  0x69   : > { %1225 = vmatpush.msrb.mxu0 %v2886_v6  ;;  %1298 = vmatpush.msrb.mxu1 %v2886_v6 }
  0x6d   : > { %2598 = vmatmul.msk.f32.gmra.mxu2 %vm223_vm1, %v698_v47  ;;  %2606 = vmatmul.msk.f32.gmra.mxu3 %vm223_vm1, %v778_v48 }
  0x70   : > { %2582 = vmatmul.msk.f32.gmra.mxu0 %vm223_vm1, %v545_v49  ;;  %2590 = vmatmul.msk.f32.gmra.mxu1 %vm223_vm1, %v618_v50  ;;  %v1019_v49 = vld [vmem:[%s2879_s21 + $0x3a0] sm:$0xff]  ;;  %v1099_v50 = vld [vmem:[%s2879_s21 + $0x528] sm:$0xff] }
  0x75   : > { %2599 = vmatmul.msk.f32.gmra.mxu2 %vm223_vm1, %v699_v51  ;;  %2607 = vmatmul.msk.f32.gmra.mxu3 %vm223_vm1, %v779_v52 }
  0x78   : > { %2583 = vmatmul.msk.f32.gmra.mxu0 %vm223_vm1, %v546_v53  ;;  %2591 = vmatmul.msk.f32.gmra.mxu1 %vm223_vm1, %v619_v54 }
  0x7d   : > { %2600 = vmatmul.msk.f32.gmra.mxu2 %vm223_vm1, %v700_v55  ;;  %2608 = vmatmul.msk.f32.gmra.mxu3 %vm223_vm1, %v780_v56  ;;  %v866_v56 = vld [vmem:[%s2879_s21 + $0x90] sm:$0xff] }
  0x80   : > { %2584 = vmatmul.msk.f32.gmra.mxu0 %vm223_vm1, %v547_v57  ;;  %2592 = vmatmul.msk.f32.gmra.mxu1 %vm223_vm1, %v620_v58  ;;  %v939_v57 = vld [vmem:[%s2879_s21 + $0x218] sm:$0xff] }
  0x85   : > { %2601 = vmatmul.msk.f32.gmra.mxu2 %vm223_vm1, %v701_v59  ;;  %2609 = vmatmul.msk.f32.gmra.mxu3 %vm223_vm1, %v781_v60 }
  0x88   : > { %2585 = vmatmul.msk.f32.gmra.mxu0 %vm223_vm1, %v548_v61  ;;  %2593 = vmatmul.msk.f32.gmra.mxu1 %vm223_vm1, %v621_v62 }
  0x8d   : > { %2627 = vmatmul.msk.f32.vlgmr.msra.gmra.mxu2 %vm223_vm1, %v1015_v63  ;;  %2635 = vmatmul.msk.f32.vlgmr.msra.gmra.mxu3 %vm223_vm1, %v1095_v7 }
  0x8e   : > { %2690 = vmatpush.msk.msra.mxu2 %vm245_vm0, %v2838_v0  ;;  %2698 = vmatpush.msk.msra.mxu3 %vm245_vm0, %v2838_v0 }
  0x90   : > { %2611 = vmatmul.msk.f32.vlgmr.msra.gmra.mxu0 %vm223_vm1, %v862_v8  ;;  %2619 = vmatmul.msk.f32.vlgmr.msra.gmra.mxu1 %vm223_vm1, %v935_v9 }
  0x91   : > { %2674 = vmatpush.msk.msra.mxu0 %vm245_vm0, %v2838_v0  ;;  %2682 = vmatpush.msk.msra.mxu1 %vm245_vm0, %v2838_v0 }
  0x92   : > { %1693 = vmatpush.msra.mxu2 %v2841_v1  ;;  %1773 = vmatpush.msra.mxu3 %v2841_v1 }
  0x93   : > { %1540 = vmatpush.msra.mxu0 %v2841_v1  ;;  %1613 = vmatpush.msra.mxu1 %v2841_v1 }
  0x94   : > { %1694 = vmatpush.msra.mxu2 %v2852_v2  ;;  %1774 = vmatpush.msra.mxu3 %v2852_v2 }
  0x95   : > { %2628 = vmatmul.msk.f32.gmra.mxu2 %vm223_vm1, %v1016_v10  ;;  %2636 = vmatmul.msk.f32.gmra.mxu3 %vm223_vm1, %v1096_v11  ;;  %v1020_v11 = vld [vmem:[%s2879_s21 + $0x3a8] sm:$0xff] }
  0x96   : > { %1541 = vmatpush.msra.mxu0 %v2852_v2  ;;  %1614 = vmatpush.msra.mxu1 %v2852_v2 }
  0x97   : > { %1695 = vmatpush.msra.mxu2 %v2859_v3  ;;  %1775 = vmatpush.msra.mxu3 %v2859_v3 }
  0x98   : > { %2612 = vmatmul.msk.f32.gmra.mxu0 %vm223_vm1, %v863_v12  ;;  %2620 = vmatmul.msk.f32.gmra.mxu1 %vm223_vm1, %v936_v13  ;;  %v1100_v12 = vld [vmem:[%s2879_s21 + $0x530] sm:$0xff] }
  0x99   : > { %1542 = vmatpush.msra.mxu0 %v2859_v3  ;;  %1615 = vmatpush.msra.mxu1 %v2859_v3 }
  0x9a   : > { %1696 = vmatpush.msra.mxu2 %v2867_v4  ;;  %1776 = vmatpush.msra.mxu3 %v2867_v4 }
  0x9b   : > { %1543 = vmatpush.msra.mxu0 %v2867_v4  ;;  %1616 = vmatpush.msra.mxu1 %v2867_v4 }
  0x9c   : > { %1697 = vmatpush.msra.mxu2 %v2874_v5  ;;  %1777 = vmatpush.msra.mxu3 %v2874_v5 }
  0x9d   : > { %2629 = vmatmul.msk.f32.gmra.mxu2 %vm223_vm1, %v1017_v14  ;;  %v266_v17 = vpop.f32.mrf.mxu0  ;;  %v339_v18 = vpop.f32.mrf.mxu1  ;;  %2637 = vmatmul.msk.f32.gmra.mxu3 %vm223_vm1, %v1097_v16 }
  0x9e   : > { %v267_v21 = vadd.f32 %v3148_v15, %v266_v17  ;;  %v340_v22 = vadd.f32 %v3148_v15, %v339_v18  ;;  %1544 = vmatpush.msra.mxu0 %v2874_v5  ;;  %1617 = vmatpush.msra.mxu1 %v2874_v5 }
  0x9f   : > { %1698 = vmatpush.msra.mxu2 %v2886_v6  ;;  %1778 = vmatpush.msra.mxu3 %v2886_v6 }
  0xa0   : > { %v287_v23 = vmax.f32 %v267_v21, 0.0  ;;  %v360_v24 = vmax.f32 %v340_v22, 0.0  ;;  %v419_v25 = vpop.f32.mrf.mxu2  ;;  %2613 = vmatmul.msk.f32.gmra.mxu0 %vm223_vm1, %v864_v19  ;;  %2621 = vmatmul.msk.f32.gmra.mxu1 %vm223_vm1, %v937_v20  ;;  %v499_v26 = vpop.f32.mrf.mxu3  ;;  %v867_v19 = vld [vmem:[%s2879_s21 + $0x98] sm:$0xff]  ;;  %v940_v20 = vld [vmem:[%s2879_s21 + $0x220] sm:$0xff] }
  0xa1   : > { %v420_v27 = vadd.f32 %v3148_v15, %v419_v25  ;;  %v500_v28 = vadd.f32 %v3148_v15, %v499_v26  ;;  %1545 = vmatpush.msra.mxu0 %v2886_v6  ;;  %1618 = vmatpush.msra.mxu1 %v2886_v6 }
  0xa2   : > { %v367_v29 = vmax.f32 %v287_v23, %v360_v24 }
  0xa3   : > { %v440_v32 = vmax.f32 %v420_v27, 0.0  ;;  %v520_v33 = vmax.f32 %v500_v28, 0.0 }
  0xa5   : > { %v447_v34 = vmax.f32 %v367_v29, %v440_v32  ;;  %2630 = vmatmul.msk.f32.gmra.mxu2 %vm223_vm1, %v1018_v30  ;;  %v269_v35 = vpop.f32.mrf.mxu0  ;;  %v342_v36 = vpop.f32.mrf.mxu1  ;;  %2638 = vmatmul.msk.f32.gmra.mxu3 %vm223_vm1, %v1098_v31  ;;  %v1021_v31 = vld [vmem:[%s2879_s21 + $0x3b0] sm:$0xff]  ;;  %v1101_v32 = vld [vmem:[%s2879_s21 + $0x538] sm:$0xff] }
  0xa6   : > { %v270_v39 = vadd.f32 %v3148_v15, %v269_v35  ;;  %v343_v40 = vadd.f32 %v3148_v15, %v342_v36 }
  0xa7   : > { %v527_v41 = vmax.f32 %v447_v34, %v520_v33 }
  0xa8   : > { %v288_v42 = vmax.f32 %v270_v39, 0.0  ;;  %v361_v43 = vmax.f32 %v343_v40, 0.0  ;;  %v422_v44 = vpop.f32.mrf.mxu2  ;;  %2614 = vmatmul.msk.f32.gmra.mxu0 %vm223_vm1, %v865_v37  ;;  %2622 = vmatmul.msk.f32.gmra.mxu1 %vm223_vm1, %v938_v38  ;;  %v502_v45 = vpop.f32.mrf.mxu3  ;;  %v868_v38 = vld [vmem:[%s2879_s21 + $0xa0] sm:$0xff]  ;;  %v941_v39 = vld [vmem:[%s2879_s21 + $0x228] sm:$0xff] }
  0xa9   : > { %535 = vst.msk [vmem:[%s3183_s28] sm:$0xff] %vm534_vm2, %v527_v41  ;;  %v423_v46 = vadd.f32 %v3148_v15, %v422_v44  ;;  %v503_v47 = vadd.f32 %v3148_v15, %v502_v45 }
  0xaa   : > { %v368_v48 = vmax.f32 %v288_v42, %v361_v43 }
  0xab   : > { %v441_v51 = vmax.f32 %v423_v46, 0.0  ;;  %v521_v52 = vmax.f32 %v503_v47, 0.0 }
  0xad   : > { %v448_v53 = vmax.f32 %v368_v48, %v441_v51  ;;  %2631 = vmatmul.msk.f32.gmra.mxu2 %vm223_vm1, %v1019_v49  ;;  %v272_v54 = vpop.f32.mrf.mxu0  ;;  %v345_v55 = vpop.f32.mrf.mxu1  ;;  %2639 = vmatmul.msk.f32.gmra.mxu3 %vm223_vm1, %v1099_v50  ;;  %v1335_v50 = vld [vmem:[%s2879_s21 + $0x3b8] sm:$0xff]  ;;  %v1415_v51 = vld [vmem:[%s2879_s21 + $0x540] sm:$0xff] }
  0xae   : > { %v273_v58 = vadd.f32 %v3148_v15, %v272_v54  ;;  %v346_v59 = vadd.f32 %v3148_v15, %v345_v55 }
  0xaf   : > { %v528_v60 = vmax.f32 %v448_v53, %v521_v52 }
  0xb0   : > { %v289_v61 = vmax.f32 %v273_v58, 0.0  ;;  %v362_v62 = vmax.f32 %v346_v59, 0.0  ;;  %v425_v63 = vpop.f32.mrf.mxu2  ;;  %2615 = vmatmul.msk.f32.gmra.mxu0 %vm223_vm1, %v866_v56  ;;  %2623 = vmatmul.msk.f32.gmra.mxu1 %vm223_vm1, %v939_v57  ;;  %v505_v7 = vpop.f32.mrf.mxu3  ;;  %v1182_v57 = vld [vmem:[%s2879_s21 + $0xa8] sm:$0xff]  ;;  %v1255_v58 = vld [vmem:[%s2879_s21 + $0x230] sm:$0xff] }
  0xb1   : > { %536 = vst.msk [vmem:[%s3183_s28 + $0x8] sm:$0xff] %vm534_vm2, %v528_v60  ;;  %v426_v8 = vadd.f32 %v3148_v15, %v425_v63  ;;  %v506_v9 = vadd.f32 %v3148_v15, %v505_v7 }
  0xb2   : > { %v369_v10 = vmax.f32 %v289_v61, %v362_v62 }
  0xb3   : > { %v442_v13 = vmax.f32 %v426_v8, 0.0  ;;  %v522_v14 = vmax.f32 %v506_v9, 0.0 }
  0xb5   : > { %v449_v16 = vmax.f32 %v369_v10, %v442_v13  ;;  %2632 = vmatmul.msk.f32.gmra.mxu2 %vm223_vm1, %v1020_v11  ;;  %v275_v17 = vpop.f32.mrf.mxu0  ;;  %v348_v18 = vpop.f32.mrf.mxu1  ;;  %2640 = vmatmul.msk.f32.gmra.mxu3 %vm223_vm1, %v1100_v12  ;;  %v1336_v12 = vld [vmem:[%s2879_s21 + $0x3c0] sm:$0xff]  ;;  %v1416_v13 = vld [vmem:[%s2879_s21 + $0x548] sm:$0xff] }
  0xb6   : > { %v276_v21 = vadd.f32 %v3148_v15, %v275_v17  ;;  %v349_v22 = vadd.f32 %v3148_v15, %v348_v18 }
  0xb7   : > { %v529_v23 = vmax.f32 %v449_v16, %v522_v14 }
  0xb8   : > { %v290_v24 = vmax.f32 %v276_v21, 0.0  ;;  %v363_v25 = vmax.f32 %v349_v22, 0.0  ;;  %v428_v26 = vpop.f32.mrf.mxu2  ;;  %2616 = vmatmul.msk.f32.gmra.mxu0 %vm223_vm1, %v867_v19  ;;  %2624 = vmatmul.msk.f32.gmra.mxu1 %vm223_vm1, %v940_v20  ;;  %v508_v27 = vpop.f32.mrf.mxu3  ;;  %v1183_v19 = vld [vmem:[%s2879_s21 + $0xb0] sm:$0xff]  ;;  %v1256_v20 = vld [vmem:[%s2879_s21 + $0x238] sm:$0xff] }
  0xb9   : > { %537 = vst.msk [vmem:[%s3183_s28 + $0x10] sm:$0xff] %vm534_vm2, %v529_v23  ;;  %v429_v28 = vadd.f32 %v3148_v15, %v428_v26  ;;  %v509_v29 = vadd.f32 %v3148_v15, %v508_v27 }
  0xba   : > { %v370_v30 = vmax.f32 %v290_v24, %v363_v25 }
  0xbb   : > { %v443_v33 = vmax.f32 %v429_v28, 0.0  ;;  %v523_v34 = vmax.f32 %v509_v29, 0.0  ;;  %v1337_v29 = vld [vmem:[%s2879_s21 + $0x3c8] sm:$0xff] }
  0xbd   : > { %v450_v35 = vmax.f32 %v370_v30, %v443_v33  ;;  %2633 = vmatmul.msk.f32.gmra.mxu2 %vm223_vm1, %v1021_v31  ;;  %v278_v36 = vpop.f32.mrf.mxu0  ;;  %v351_v37 = vpop.f32.mrf.mxu1  ;;  %2641 = vmatmul.msk.f32.gmra.mxu3 %vm223_vm1, %v1101_v32  ;;  %v1417_v30 = vld [vmem:[%s2879_s21 + $0x550] sm:$0xff] }
  0xbe   : > { %v279_v40 = vadd.f32 %v3148_v15, %v278_v36  ;;  %v352_v41 = vadd.f32 %v3148_v15, %v351_v37  ;;  %v1257_v36 = vld [vmem:[%s2879_s21 + $0x240] sm:$0xff] }
  0xbf   : > { %v530_v42 = vmax.f32 %v450_v35, %v523_v34  ;;  %v1184_v35 = vld [vmem:[%s2879_s21 + $0xb8] sm:$0xff] }
  0xc0   : > { %v291_v43 = vmax.f32 %v279_v40, 0.0  ;;  %v364_v44 = vmax.f32 %v352_v41, 0.0  ;;  %v431_v45 = vpop.f32.mrf.mxu2  ;;  %2617 = vmatmul.msk.f32.gmra.mxu0 %vm223_vm1, %v868_v38  ;;  %2625 = vmatmul.msk.f32.gmra.mxu1 %vm223_vm1, %v941_v39  ;;  %v511_v46 = vpop.f32.mrf.mxu3 }
  0xc1   : > { %538 = vst.msk [vmem:[%s3183_s28 + $0x18] sm:$0xff] %vm534_vm2, %v530_v42  ;;  %v432_v47 = vadd.f32 %v3148_v15, %v431_v45  ;;  %v512_v48 = vadd.f32 %v3148_v15, %v511_v46  ;;  %v1338_v45 = vld [vmem:[%s2879_s21 + $0x3d0] sm:$0xff]  ;;  %v1418_v46 = vld [vmem:[%s2879_s21 + $0x558] sm:$0xff] }
  0xc2   : > { %v371_v49 = vmax.f32 %v291_v43, %v364_v44 }
  0xc3   : > { %v444_v52 = vmax.f32 %v432_v47, 0.0  ;;  %v524_v53 = vmax.f32 %v512_v48, 0.0 }
  0xc5   : > { %v451_v54 = vmax.f32 %v371_v49, %v444_v52  ;;  %2659 = vmatmul.msk.f32.vlgmr.msrb.gmra.mxu2 %vm223_vm1, %v1335_v50  ;;  %v281_v55 = vpop.f32.mrf.mxu0  ;;  %v354_v56 = vpop.f32.mrf.mxu1  ;;  %2667 = vmatmul.msk.f32.vlgmr.msrb.gmra.mxu3 %vm223_vm1, %v1415_v51  ;;  %v1185_v52 = vld [vmem:[%s2879_s21 + $0xc0] sm:$0xff] }
  0xc6   : > { %v282_v59 = vadd.f32 %v3148_v15, %v281_v55  ;;  %v355_v60 = vadd.f32 %v3148_v15, %v354_v56  ;;  %2722 = vmatpush.msk.msrb.mxu2 %vm245_vm0, %v2838_v0  ;;  %2730 = vmatpush.msk.msrb.mxu3 %vm245_vm0, %v2838_v0 }
  0xc7   : > { %v531_v61 = vmax.f32 %v451_v54, %v524_v53  ;;  %v1258_v53 = vld [vmem:[%s2879_s21 + $0x248] sm:$0xff] }
  0xc8   : > { %v292_v62 = vmax.f32 %v282_v59, 0.0  ;;  %v365_v63 = vmax.f32 %v355_v60, 0.0  ;;  %v434_v7 = vpop.f32.mrf.mxu2  ;;  %2643 = vmatmul.msk.f32.vlgmr.msrb.gmra.mxu0 %vm223_vm1, %v1182_v57  ;;  %2651 = vmatmul.msk.f32.vlgmr.msrb.gmra.mxu1 %vm223_vm1, %v1255_v58  ;;  %v514_v8 = vpop.f32.mrf.mxu3 }
  0xc9   : > { %539 = vst.msk [vmem:[%s3183_s28 + $0x20] sm:$0xff] %vm534_vm2, %v531_v61  ;;  %v435_v9 = vadd.f32 %v3148_v15, %v434_v7  ;;  %v515_v10 = vadd.f32 %v3148_v15, %v514_v8  ;;  %2706 = vmatpush.msk.msrb.mxu0 %vm245_vm0, %v2838_v0  ;;  %2714 = vmatpush.msk.msrb.mxu1 %vm245_vm0, %v2838_v0  ;;  %v1419_v7 = vld [vmem:[%s2879_s21 + $0x560] sm:$0xff] }
  0xca   : > { %v372_v11 = vmax.f32 %v292_v62, %v365_v63  ;;  %2013 = vmatpush.msrb.mxu2 %v2841_v1  ;;  %2093 = vmatpush.msrb.mxu3 %v2841_v1  ;;  %v1339_v63 = vld [vmem:[%s2879_s21 + $0x3d8] sm:$0xff] }
  0xcb   : > { %v445_v14 = vmax.f32 %v435_v9, 0.0  ;;  %v525_v16 = vmax.f32 %v515_v10, 0.0  ;;  %1860 = vmatpush.msrb.mxu0 %v2841_v1  ;;  %1933 = vmatpush.msrb.mxu1 %v2841_v1 }
  0xcc   : > { %2014 = vmatpush.msrb.mxu2 %v2852_v2  ;;  %2094 = vmatpush.msrb.mxu3 %v2852_v2 }
  0xcd   : > { %v452_v0 = vmax.f32 %v372_v11, %v445_v14  ;;  %2660 = vmatmul.msk.f32.gmra.mxu2 %vm223_vm1, %v1336_v12  ;;  %v284_v17 = vpop.f32.mrf.mxu0  ;;  %v357_v18 = vpop.f32.mrf.mxu1  ;;  %2668 = vmatmul.msk.f32.gmra.mxu3 %vm223_vm1, %v1416_v13  ;;  %v1186_v13 = vld [vmem:[%s2879_s21 + $0xc8] sm:$0xff]  ;;  %v1259_v14 = vld [vmem:[%s2879_s21 + $0x250] sm:$0xff] }
  0xce   : > { %v285_v21 = vadd.f32 %v3148_v15, %v284_v17  ;;  %v358_v22 = vadd.f32 %v3148_v15, %v357_v18  ;;  %1861 = vmatpush.msrb.mxu0 %v2852_v2  ;;  %1934 = vmatpush.msrb.mxu1 %v2852_v2 }
  0xcf   : > { %v532_v1 = vmax.f32 %v452_v0, %v525_v16  ;;  %2015 = vmatpush.msrb.mxu2 %v2859_v3  ;;  %2095 = vmatpush.msrb.mxu3 %v2859_v3 }
  0xd0   : > { %v293_v23 = vmax.f32 %v285_v21, 0.0  ;;  %v366_v24 = vmax.f32 %v358_v22, 0.0  ;;  %v437_v25 = vpop.f32.mrf.mxu2  ;;  %2644 = vmatmul.msk.f32.gmra.mxu0 %vm223_vm1, %v1183_v19  ;;  %2652 = vmatmul.msk.f32.gmra.mxu1 %vm223_vm1, %v1256_v20  ;;  %v517_v26 = vpop.f32.mrf.mxu3 }
  0xd1   : > { %540 = vst.msk [vmem:[%s3183_s28 + $0x28] sm:$0xff] %vm534_vm2, %v532_v1  ;;  %v438_v27 = vadd.f32 %v3148_v15, %v437_v25  ;;  %v518_v2 = vadd.f32 %v3148_v15, %v517_v26  ;;  %1862 = vmatpush.msrb.mxu0 %v2859_v3  ;;  %1935 = vmatpush.msrb.mxu1 %v2859_v3  ;;  %v1420_v25 = vld [vmem:[%s2879_s21 + $0x568] sm:$0xff] }
  0xd2   : > { %v373_v28 = vmax.f32 %v293_v23, %v366_v24  ;;  %2016 = vmatpush.msrb.mxu2 %v2867_v4  ;;  %2096 = vmatpush.msrb.mxu3 %v2867_v4  ;;  %v1340_v24 = vld [vmem:[%s2879_s21 + $0x3e0] sm:$0xff] }
  0xd3   : > { %v446_v31 = vmax.f32 %v438_v27, 0.0  ;;  %v526_v32 = vmax.f32 %v518_v2, 0.0  ;;  %1863 = vmatpush.msrb.mxu0 %v2867_v4  ;;  %1936 = vmatpush.msrb.mxu1 %v2867_v4 }
  0xd4   : > { %2017 = vmatpush.msrb.mxu2 %v2874_v5  ;;  %2097 = vmatpush.msrb.mxu3 %v2874_v5 }
  0xd5   : > { %v453_v3 = vmax.f32 %v373_v28, %v446_v31  ;;  %2661 = vmatmul.msk.f32.gmra.mxu2 %vm223_vm1, %v1337_v29  ;;  %v587_v33 = vpop.f32.mrf.mxu0  ;;  %v660_v34 = vpop.f32.mrf.mxu1  ;;  %2669 = vmatmul.msk.f32.gmra.mxu3 %vm223_vm1, %v1417_v30  ;;  %v1187_v30 = vld [vmem:[%s2879_s21 + $0xd0] sm:$0xff]  ;;  %v1260_v31 = vld [vmem:[%s2879_s21 + $0x258] sm:$0xff] }
  0xd6   : > { %v588_v37 = vadd.f32 %v3148_v15, %v587_v33  ;;  %v661_v38 = vadd.f32 %v3148_v15, %v660_v34  ;;  %1864 = vmatpush.msrb.mxu0 %v2874_v5  ;;  %1937 = vmatpush.msrb.mxu1 %v2874_v5 }
  0xd7   : > { %v533_v4 = vmax.f32 %v453_v3, %v526_v32  ;;  %2018 = vmatpush.msrb.mxu2 %v2886_v6  ;;  %2098 = vmatpush.msrb.mxu3 %v2886_v6 }
  0xd8   : > { %v608_v39 = vmax.f32 %v588_v37, 0.0  ;;  %v681_v40 = vmax.f32 %v661_v38, 0.0  ;;  %v740_v41 = vpop.f32.mrf.mxu2  ;;  %2645 = vmatmul.msk.f32.gmra.mxu0 %vm223_vm1, %v1184_v35  ;;  %2653 = vmatmul.msk.f32.gmra.mxu1 %vm223_vm1, %v1257_v36  ;;  %v820_v42 = vpop.f32.mrf.mxu3 }
  0xd9   : > { %541 = vst.msk [vmem:[%s3183_s28 + $0x30] sm:$0xff] %vm534_vm2, %v533_v4  ;;  %v741_v5 = vadd.f32 %v3148_v15, %v740_v41  ;;  %v821_v43 = vadd.f32 %v3148_v15, %v820_v42  ;;  %1865 = vmatpush.msrb.mxu0 %v2886_v6  ;;  %1938 = vmatpush.msrb.mxu1 %v2886_v6  ;;  %v1421_v41 = vld [vmem:[%s2879_s21 + $0x570] sm:$0xff] }
  0xda   : > { %v688_v44 = vmax.f32 %v608_v39, %v681_v40  ;;  %v1341_v40 = vld [vmem:[%s2879_s21 + $0x3e8] sm:$0xff] }
  0xdb   : > { %v761_v47 = vmax.f32 %v741_v5, 0.0  ;;  %v841_v48 = vmax.f32 %v821_v43, 0.0 }
  0xdd   : > { %v768_v49 = vmax.f32 %v688_v44, %v761_v47  ;;  %2662 = vmatmul.msk.f32.gmra.mxu2 %vm223_vm1, %v1338_v45  ;;  %v590_v50 = vpop.f32.mrf.mxu0  ;;  %v663_v51 = vpop.f32.mrf.mxu1  ;;  %2670 = vmatmul.msk.f32.gmra.mxu3 %vm223_vm1, %v1418_v46  ;;  %v1188_v46 = vld [vmem:[%s2879_s21 + $0xd8] sm:$0xff]  ;;  %v1261_v47 = vld [vmem:[%s2879_s21 + $0x260] sm:$0xff] }
  0xde   : > { %v591_v54 = vadd.f32 %v3148_v15, %v590_v50  ;;  %v664_v6 = vadd.f32 %v3148_v15, %v663_v51 }
  0xdf   : > { %v848_v55 = vmax.f32 %v768_v49, %v841_v48 }
  0xe0   : > { %v609_v56 = vmax.f32 %v591_v54, 0.0  ;;  %v682_v57 = vmax.f32 %v664_v6, 0.0  ;;  %v743_v58 = vpop.f32.mrf.mxu2  ;;  %2646 = vmatmul.msk.f32.gmra.mxu0 %vm223_vm1, %v1185_v52  ;;  %2654 = vmatmul.msk.f32.gmra.mxu1 %vm223_vm1, %v1258_v53  ;;  %v823_v59 = vpop.f32.mrf.mxu3 }
  0xe1   : > { %855 = vst.msk [vmem:[%s3183_s28 + $0x38] sm:$0xff] %vm534_vm2, %v848_v55  ;;  %v744_v60 = vadd.f32 %v3148_v15, %v743_v58  ;;  %v824_v61 = vadd.f32 %v3148_v15, %v823_v59  ;;  %v1735_v58 = vld [vmem:[%s2879_s21 + $0x578] sm:$0xff] }
  0xe2   : > { %v689_v62 = vmax.f32 %v609_v56, %v682_v57  ;;  %v1655_v57 = vld [vmem:[%s2879_s21 + $0x3f0] sm:$0xff] }
  0xe3   : > { %v762_v8 = vmax.f32 %v744_v60, 0.0  ;;  %v842_v9 = vmax.f32 %v824_v61, 0.0 }
  0xe5   : > { %v769_v10 = vmax.f32 %v689_v62, %v762_v8  ;;  %2663 = vmatmul.msk.f32.gmra.mxu2 %vm223_vm1, %v1339_v63  ;;  %v593_v11 = vpop.f32.mrf.mxu0  ;;  %v666_v12 = vpop.f32.mrf.mxu1  ;;  %2671 = vmatmul.msk.f32.gmra.mxu3 %vm223_vm1, %v1419_v7  ;;  %v1502_v7 = vld [vmem:[%s2879_s21 + $0xe0] sm:$0xff]  ;;  %v1575_v8 = vld [vmem:[%s2879_s21 + $0x268] sm:$0xff] }
  0xe6   : > { %v594_v16 = vadd.f32 %v3148_v15, %v593_v11  ;;  %v667_v0 = vadd.f32 %v3148_v15, %v666_v12  ;;  %v2784_v11 = vld [vmem:[%s2835_s17 + $0x30] sm:$0x3] }
  0xe7   : > { %v849_v17 = vmax.f32 %v769_v10, %v842_v9 }
  0xe8   : > { %v610_v18 = vmax.f32 %v594_v16, 0.0  ;;  %v683_v19 = vmax.f32 %v667_v0, 0.0  ;;  %v746_v20 = vpop.f32.mrf.mxu2  ;;  %2647 = vmatmul.msk.f32.gmra.mxu0 %vm223_vm1, %v1186_v13  ;;  %2655 = vmatmul.msk.f32.gmra.mxu1 %vm223_vm1, %v1259_v14  ;;  %v826_v21 = vpop.f32.mrf.mxu3 }
  0xe9   : > { %856 = vst.msk [vmem:[%s3183_s28 + $0x40] sm:$0xff] %vm534_vm2, %v849_v17  ;;  %v747_v22 = vadd.f32 %v3148_v15, %v746_v20  ;;  %v827_v1 = vadd.f32 %v3148_v15, %v826_v21  ;;  %v1656_v20 = vld [vmem:[%s2879_s21 + $0x3f8] sm:$0xff]  ;;  %v1736_v21 = vld [vmem:[%s2879_s21 + $0x580] sm:$0xff] }
  0xea   : > { %v690_v23 = vmax.f32 %v610_v18, %v683_v19 }
  0xeb   : > { %v763_v26 = vmax.f32 %v747_v22, 0.0  ;;  %v843_v27 = vmax.f32 %v827_v1, 0.0  ;;  %v2785_v22 = vld [vmem:[%s2835_s17 + $0x28] sm:$0xff] }
  0xed   : > { %v770_v2 = vmax.f32 %v690_v23, %v763_v26  ;;  %2664 = vmatmul.msk.f32.gmra.mxu2 %vm223_vm1, %v1340_v24  ;;  %v596_v28 = vpop.f32.mrf.mxu0  ;;  %v669_v29 = vpop.f32.mrf.mxu1  ;;  %2672 = vmatmul.msk.f32.gmra.mxu3 %vm223_vm1, %v1420_v25  ;;  %v2786_v24 = vld [vmem:[%s2835_s17 + $0x20] sm:$0xff] }
  0xee   : > { %v597_v32 = vadd.f32 %v3148_v15, %v596_v28  ;;  %v670_v3 = vadd.f32 %v3148_v15, %v669_v29  ;;  %v1576_v28 = vld [vmem:[%s2879_s21 + $0x270] sm:$0xff] }
  0xef   : > { %v850_v33 = vmax.f32 %v770_v2, %v843_v27  ;;  %v1503_v2 = vld [vmem:[%s2879_s21 + $0xe8] sm:$0xff] }
  0xf0   : > { %v611_v34 = vmax.f32 %v597_v32, 0.0  ;;  %v684_v35 = vmax.f32 %v670_v3, 0.0  ;;  %v749_v36 = vpop.f32.mrf.mxu2  ;;  %2648 = vmatmul.msk.f32.gmra.mxu0 %vm223_vm1, %v1187_v30  ;;  %2656 = vmatmul.msk.f32.gmra.mxu1 %vm223_vm1, %v1260_v31  ;;  %v829_v37 = vpop.f32.mrf.mxu3  ;;  %v2787_v32 = vld [vmem:[%s2835_s17 + $0x18] sm:$0xff] }
  0xf1   : > { %857 = vst.msk [vmem:[%s3183_s28 + $0x48] sm:$0xff] %vm534_vm2, %v850_v33  ;;  %v750_v38 = vadd.f32 %v3148_v15, %v749_v36  ;;  %v830_v4 = vadd.f32 %v3148_v15, %v829_v37 }
  0xf2   : > { %v691_v39 = vmax.f32 %v611_v34, %v684_v35 }
  0xf3   : > { %v764_v42 = vmax.f32 %v750_v38, 0.0  ;;  %v844_v5 = vmax.f32 %v830_v4, 0.0  ;;  %v1657_v4 = vld [vmem:[%s2879_s21 + $0x400] sm:$0xff] }
  0xf5   : > { %v771_v43 = vmax.f32 %v691_v39, %v764_v42  ;;  %2665 = vmatmul.msk.f32.gmra.mxu2 %vm223_vm1, %v1341_v40  ;;  %v599_v44 = vpop.f32.mrf.mxu0  ;;  %v672_v45 = vpop.f32.mrf.mxu1  ;;  %2673 = vmatmul.msk.f32.gmra.mxu3 %vm223_vm1, %v1421_v41  ;;  %v1737_v39 = vld [vmem:[%s2879_s21 + $0x588] sm:$0xff]  ;;  %v2788_v40 = vld [vmem:[%s2835_s17 + $0x10] sm:$0xff] }
  0xf6   : > { %v600_v48 = vadd.f32 %v3148_v15, %v599_v44  ;;  %v673_v49 = vadd.f32 %v3148_v15, %v672_v45 }
  0xf7   : > { %v851_v50 = vmax.f32 %v771_v43, %v844_v5  ;;  %v2789_v5 = vld [vmem:[%s2835_s17 + $0x8] sm:$0xff] }
  0xf8   : > { %v612_v51 = vmax.f32 %v600_v48, 0.0  ;;  %v685_v52 = vmax.f32 %v673_v49, 0.0  ;;  %v752_v53 = vpop.f32.mrf.mxu2  ;;  %2649 = vmatmul.msk.f32.gmra.mxu0 %vm223_vm1, %v1188_v46  ;;  %2657 = vmatmul.msk.f32.gmra.mxu1 %vm223_vm1, %v1261_v47  ;;  %v832_v54 = vpop.f32.mrf.mxu3  ;;  %v1504_v46 = vld [vmem:[%s2879_s21 + $0xf0] sm:$0xff]  ;;  %v1577_v47 = vld [vmem:[%s2879_s21 + $0x278] sm:$0xff] }
  0xf9   : > { %858 = vst.msk [vmem:[%s3183_s28 + $0x50] sm:$0xff] %vm534_vm2, %v851_v50  ;;  %v753_v6 = vadd.f32 %v3148_v15, %v752_v53  ;;  %v833_v55 = vadd.f32 %v3148_v15, %v832_v54 }
  0xfa   : > { %v692_v56 = vmax.f32 %v612_v51, %v685_v52  ;;  %v2790_v51 = vld [vmem:[%s2835_s17] sm:$0xff] }
  0xfb   : > { %v765_v59 = vmax.f32 %v753_v6, 0.0  ;;  %v845_v60 = vmax.f32 %v833_v55, 0.0 }
  0xfd   : > { %v772_v61 = vmax.f32 %v692_v56, %v765_v59  ;;  %2691 = vmatmul.msk.f32.vlgmr.msra.gmra.mxu2 %vm223_vm1, %v1655_v57  ;;  %v602_v62 = vpop.f32.mrf.mxu0  ;;  %v675_v63 = vpop.f32.mrf.mxu1  ;;  %2699 = vmatmul.msk.f32.vlgmr.msra.gmra.mxu3 %vm223_vm1, %v1735_v58  ;;  %v1658_v58 = vld [vmem:[%s2879_s21 + $0x408] sm:$0xff]  ;;  %v1738_v59 = vld [vmem:[%s2879_s21 + $0x590] sm:$0xff] }
  0xfe   : > { %v603_v9 = vadd.f32 %v3148_v15, %v602_v62  ;;  %v676_v10 = vadd.f32 %v3148_v15, %v675_v63  ;;  %2754 = vmatpush.msk.msra.mxu2 %vm245_vm0, %v2784_v11  ;;  %2762 = vmatpush.msk.msra.mxu3 %vm245_vm0, %v2784_v11 }
  0xff   : > { %v852_v12 = vmax.f32 %v772_v61, %v845_v60 }
 0x100   : > { %v613_v13 = vmax.f32 %v603_v9, 0.0  ;;  %v686_v14 = vmax.f32 %v676_v10, 0.0  ;;  %v755_v16 = vpop.f32.mrf.mxu2  ;;  %2675 = vmatmul.msk.f32.vlgmr.msra.gmra.mxu0 %vm223_vm1, %v1502_v7  ;;  %2683 = vmatmul.msk.f32.vlgmr.msra.gmra.mxu1 %vm223_vm1, %v1575_v8  ;;  %v835_v0 = vpop.f32.mrf.mxu3  ;;  %v1505_v8 = vld [vmem:[%s2879_s21 + $0xf8] sm:$0xff]  ;;  %v1578_v9 = vld [vmem:[%s2879_s21 + $0x280] sm:$0xff] }
 0x101   : > { %859 = vst.msk [vmem:[%s3183_s28 + $0x58] sm:$0xff] %vm534_vm2, %v852_v12  ;;  %v756_v17 = vadd.f32 %v3148_v15, %v755_v16  ;;  %v836_v18 = vadd.f32 %v3148_v15, %v835_v0  ;;  %2738 = vmatpush.msk.msra.mxu0 %vm245_vm0, %v2784_v11  ;;  %2746 = vmatpush.msk.msra.mxu1 %vm245_vm0, %v2784_v11 }
 0x102   : > { %v693_v19 = vmax.f32 %v613_v13, %v686_v14  ;;  %2333 = vmatpush.msra.mxu2 %v2785_v22  ;;  %2413 = vmatpush.msra.mxu3 %v2785_v22 }
 0x103   : > { %v766_v1 = vmax.f32 %v756_v17, 0.0  ;;  %v846_v23 = vmax.f32 %v836_v18, 0.0  ;;  %2180 = vmatpush.msra.mxu0 %v2785_v22  ;;  %2253 = vmatpush.msra.mxu1 %v2785_v22 }
 0x104   : > { %2334 = vmatpush.msra.mxu2 %v2786_v24  ;;  %2414 = vmatpush.msra.mxu3 %v2786_v24 }
 0x105   : > { %v773_v25 = vmax.f32 %v693_v19, %v766_v1  ;;  %2692 = vmatmul.msk.f32.gmra.mxu2 %vm223_vm1, %v1656_v20  ;;  %v605_v26 = vpop.f32.mrf.mxu0  ;;  %v678_v27 = vpop.f32.mrf.mxu1  ;;  %2700 = vmatmul.msk.f32.gmra.mxu3 %vm223_vm1, %v1736_v21  ;;  %v1659_v20 = vld [vmem:[%s2879_s21 + $0x410] sm:$0xff]  ;;  %v1739_v21 = vld [vmem:[%s2879_s21 + $0x598] sm:$0xff] }
 0x106   : > { %v606_v29 = vadd.f32 %v3148_v15, %v605_v26  ;;  %v679_v30 = vadd.f32 %v3148_v15, %v678_v27  ;;  %2181 = vmatpush.msra.mxu0 %v2786_v24  ;;  %2254 = vmatpush.msra.mxu1 %v2786_v24  ;;  %v1506_v26 = vld [vmem:[%s2879_s21 + $0x100] sm:$0xff]  ;;  %v1579_v27 = vld [vmem:[%s2879_s21 + $0x288] sm:$0xff] }
 0x107   : > { %v853_v31 = vmax.f32 %v773_v25, %v846_v23  ;;  %2335 = vmatpush.msra.mxu2 %v2787_v32  ;;  %2415 = vmatpush.msra.mxu3 %v2787_v32 }
 0x108   : > { %v614_v3 = vmax.f32 %v606_v29, 0.0  ;;  %v687_v33 = vmax.f32 %v679_v30, 0.0  ;;  %v758_v34 = vpop.f32.mrf.mxu2  ;;  %2676 = vmatmul.msk.f32.gmra.mxu0 %vm223_vm1, %v1503_v2  ;;  %2684 = vmatmul.msk.f32.gmra.mxu1 %vm223_vm1, %v1576_v28  ;;  %v838_v35 = vpop.f32.mrf.mxu3 }
 0x109   : > { %860 = vst.msk [vmem:[%s3183_s28 + $0x60] sm:$0xff] %vm534_vm2, %v853_v31  ;;  %v759_v36 = vadd.f32 %v3148_v15, %v758_v34  ;;  %v839_v37 = vadd.f32 %v3148_v15, %v838_v35  ;;  %2182 = vmatpush.msra.mxu0 %v2787_v32  ;;  %2255 = vmatpush.msra.mxu1 %v2787_v32 }
 0x10a   : > { %v694_v38 = vmax.f32 %v614_v3, %v687_v33  ;;  %2336 = vmatpush.msra.mxu2 %v2788_v40  ;;  %2416 = vmatpush.msra.mxu3 %v2788_v40 }
 0x10b   : > { %v767_v41 = vmax.f32 %v759_v36, 0.0  ;;  %v847_v42 = vmax.f32 %v839_v37, 0.0  ;;  %2183 = vmatpush.msra.mxu0 %v2788_v40  ;;  %2256 = vmatpush.msra.mxu1 %v2788_v40  ;;  %v1660_v36 = vld [vmem:[%s2879_s21 + $0x418] sm:$0xff]  ;;  %v1740_v37 = vld [vmem:[%s2879_s21 + $0x5a0] sm:$0xff] }
 0x10c   : > { %2337 = vmatpush.msra.mxu2 %v2789_v5  ;;  %2417 = vmatpush.msra.mxu3 %v2789_v5 }
 0x10d   : > { %v774_v43 = vmax.f32 %v694_v38, %v767_v41  ;;  %2693 = vmatmul.msk.f32.gmra.mxu2 %vm223_vm1, %v1657_v4  ;;  %v907_v44 = vpop.f32.mrf.mxu0  ;;  %v980_v45 = vpop.f32.mrf.mxu1  ;;  %2701 = vmatmul.msk.f32.gmra.mxu3 %vm223_vm1, %v1737_v39 }
 0x10e   : > { %v908_v48 = vadd.f32 %v3148_v15, %v907_v44  ;;  %v981_v49 = vadd.f32 %v3148_v15, %v980_v45  ;;  %2184 = vmatpush.msra.mxu0 %v2789_v5  ;;  %2257 = vmatpush.msra.mxu1 %v2789_v5  ;;  %v1580_v5 = vld [vmem:[%s2879_s21 + $0x290] sm:$0xff] }
 0x10f   : > { %v854_v50 = vmax.f32 %v774_v43, %v847_v42  ;;  %2338 = vmatpush.msra.mxu2 %v2790_v51  ;;  %2418 = vmatpush.msra.mxu3 %v2790_v51  ;;  %v1507_v42 = vld [vmem:[%s2879_s21 + $0x108] sm:$0xff] }
 0x110   : > { %v928_v52 = vmax.f32 %v908_v48, 0.0  ;;  %v1001_v53 = vmax.f32 %v981_v49, 0.0  ;;  %v1060_v54 = vpop.f32.mrf.mxu2  ;;  %2677 = vmatmul.msk.f32.gmra.mxu0 %vm223_vm1, %v1504_v46  ;;  %2685 = vmatmul.msk.f32.gmra.mxu1 %vm223_vm1, %v1577_v47  ;;  %v1140_v6 = vpop.f32.mrf.mxu3 }
 0x111   : > { %861 = vst.msk [vmem:[%s3183_s28 + $0x68] sm:$0xff] %vm534_vm2, %v854_v50  ;;  %v1061_v55 = vadd.f32 %v3148_v15, %v1060_v54  ;;  %v1141_v56 = vadd.f32 %v3148_v15, %v1140_v6  ;;  %2185 = vmatpush.msra.mxu0 %v2790_v51  ;;  %2258 = vmatpush.msra.mxu1 %v2790_v51  ;;  %v1741_v54 = vld [vmem:[%s2879_s21 + $0x5a8] sm:$0xff] }
 0x112   : > { %v1008_v57 = vmax.f32 %v928_v52, %v1001_v53  ;;  %v1661_v53 = vld [vmem:[%s2879_s21 + $0x420] sm:$0xff] }
 0x113   : > { %v1081_v60 = vmax.f32 %v1061_v55, 0.0  ;;  %v1161_v61 = vmax.f32 %v1141_v56, 0.0 }
 0x115   : > { %v1088_v62 = vmax.f32 %v1008_v57, %v1081_v60  ;;  %2694 = vmatmul.msk.f32.gmra.mxu2 %vm223_vm1, %v1658_v58  ;;  %v910_v63 = vpop.f32.mrf.mxu0  ;;  %v983_v7 = vpop.f32.mrf.mxu1  ;;  %2702 = vmatmul.msk.f32.gmra.mxu3 %vm223_vm1, %v1738_v59  ;;  %v1508_v59 = vld [vmem:[%s2879_s21 + $0x110] sm:$0xff]  ;;  %v1581_v60 = vld [vmem:[%s2879_s21 + $0x298] sm:$0xff] }
 0x116   : > { %v911_v10 = vadd.f32 %v3148_v15, %v910_v63  ;;  %v984_v11 = vadd.f32 %v3148_v15, %v983_v7 }
 0x117   : > { %v1168_v12 = vmax.f32 %v1088_v62, %v1161_v61 }
 0x118   : > { %v929_v13 = vmax.f32 %v911_v10, 0.0  ;;  %v1002_v14 = vmax.f32 %v984_v11, 0.0  ;;  %v1063_v16 = vpop.f32.mrf.mxu2  ;;  %2678 = vmatmul.msk.f32.gmra.mxu0 %vm223_vm1, %v1505_v8  ;;  %2686 = vmatmul.msk.f32.gmra.mxu1 %vm223_vm1, %v1578_v9  ;;  %v1143_v0 = vpop.f32.mrf.mxu3  ;;  %v3473_v11 = vld [vmem:[%s2900_s24] ss:$0 sm:$0xff] }
 0x119   : > { %1175 = vst.msk [vmem:[%s3183_s28 + $0x70] sm:$0xff] %vm534_vm2, %v1168_v12  ;;  %v1064_v17 = vadd.f32 %v3148_v15, %v1063_v16  ;;  %v1144_v18 = vadd.f32 %v3148_v15, %v1143_v0  ;;  %v2055_v16 = vld [vmem:[%s2879_s21 + $0x5b0] sm:$0xff] }
 0x11a   : > { %v1009_v19 = vmax.f32 %v929_v13, %v1002_v14  ;;  %v1975_v14 = vld [vmem:[%s2879_s21 + $0x428] sm:$0xff] }
 0x11b   : > { %v1082_v22 = vmax.f32 %v1064_v17, 0.0  ;;  %v1162_v1 = vmax.f32 %v1144_v18, 0.0 }
 0x11d   : > { %v1089_v23 = vmax.f32 %v1009_v19, %v1082_v22  ;;  %2695 = vmatmul.msk.f32.gmra.mxu2 %vm223_vm1, %v1659_v20  ;;  %v913_v24 = vpop.f32.mrf.mxu0  ;;  %v986_v25 = vpop.f32.mrf.mxu1  ;;  %2703 = vmatmul.msk.f32.gmra.mxu3 %vm223_vm1, %v1739_v21  ;;  %v1822_v21 = vld [vmem:[%s2879_s21 + $0x118] sm:$0xff]  ;;  %v1895_v22 = vld [vmem:[%s2879_s21 + $0x2a0] sm:$0xff] }
 0x11e   : > { %v914_v2 = vadd.f32 %v3148_v15, %v913_v24  ;;  %v987_v28 = vadd.f32 %v3148_v15, %v986_v25 }
 0x11f   : > { %v1169_v29 = vmax.f32 %v1089_v23, %v1162_v1 }
 0x120   : > { %v930_v30 = vmax.f32 %v914_v2, 0.0  ;;  %v1003_v31 = vmax.f32 %v987_v28, 0.0  ;;  %v1066_v32 = vpop.f32.mrf.mxu2  ;;  %2679 = vmatmul.msk.f32.gmra.mxu0 %vm223_vm1, %v1506_v26  ;;  %2687 = vmatmul.msk.f32.gmra.mxu1 %vm223_vm1, %v1579_v27  ;;  %v1146_v3 = vpop.f32.mrf.mxu3 }
 0x121   : > { %1176 = vst.msk [vmem:[%s3183_s28 + $0x78] sm:$0xff] %vm534_vm2, %v1169_v29  ;;  %v1067_v33 = vadd.f32 %v3148_v15, %v1066_v32  ;;  %v1147_v34 = vadd.f32 %v3148_v15, %v1146_v3  ;;  %v2056_v32 = vld [vmem:[%s2879_s21 + $0x5b8] sm:$0xff] }
 0x122   : > { %v1010_v35 = vmax.f32 %v930_v30, %v1003_v31  ;;  %v1976_v31 = vld [vmem:[%s2879_s21 + $0x430] sm:$0xff] }
 0x123   : > { %v1083_v38 = vmax.f32 %v1067_v33, 0.0  ;;  %v1163_v4 = vmax.f32 %v1147_v34, 0.0 }
 0x125   : > { %v1090_v39 = vmax.f32 %v1010_v35, %v1083_v38  ;;  %2696 = vmatmul.msk.f32.gmra.mxu2 %vm223_vm1, %v1660_v36  ;;  %v916_v40 = vpop.f32.mrf.mxu0  ;;  %v989_v41 = vpop.f32.mrf.mxu1  ;;  %2704 = vmatmul.msk.f32.gmra.mxu3 %vm223_vm1, %v1740_v37  ;;  %v1823_v37 = vld [vmem:[%s2879_s21 + $0x120] sm:$0xff]  ;;  %v1896_v38 = vld [vmem:[%s2879_s21 + $0x2a8] sm:$0xff] }
 0x126   : > { %v917_v43 = vadd.f32 %v3148_v15, %v916_v40  ;;  %v990_v44 = vadd.f32 %v3148_v15, %v989_v41 }
 0x127   : > { %v1170_v45 = vmax.f32 %v1090_v39, %v1163_v4 }
 0x128   : > { %v931_v46 = vmax.f32 %v917_v43, 0.0  ;;  %v1004_v47 = vmax.f32 %v990_v44, 0.0  ;;  %v1069_v48 = vpop.f32.mrf.mxu2  ;;  %2680 = vmatmul.msk.f32.gmra.mxu0 %vm223_vm1, %v1507_v42  ;;  %2688 = vmatmul.msk.f32.gmra.mxu1 %vm223_vm1, %v1580_v5  ;;  %v1149_v49 = vpop.f32.mrf.mxu3 }
 0x129   : > { %1177 = vst.msk [vmem:[%s3183_s28 + $0x80] sm:$0xff] %vm534_vm2, %v1170_v45  ;;  %v1070_v50 = vadd.f32 %v3148_v15, %v1069_v48  ;;  %v1150_v51 = vadd.f32 %v3148_v15, %v1149_v49  ;;  %v2057_v48 = vld [vmem:[%s2879_s21 + $0x5c0] sm:$0xff] }
 0x12a   : > { %v1011_v52 = vmax.f32 %v931_v46, %v1004_v47  ;;  %v1977_v47 = vld [vmem:[%s2879_s21 + $0x438] sm:$0xff] }
 0x12b   : > { %v1084_v6 = vmax.f32 %v1070_v50, 0.0  ;;  %v1164_v55 = vmax.f32 %v1150_v51, 0.0 }
 0x12d   : > { %v1091_v56 = vmax.f32 %v1011_v52, %v1084_v6  ;;  %2697 = vmatmul.msk.f32.gmra.mxu2 %vm223_vm1, %v1661_v53  ;;  %v919_v57 = vpop.f32.mrf.mxu0  ;;  %v992_v58 = vpop.f32.mrf.mxu1  ;;  %2705 = vmatmul.msk.f32.gmra.mxu3 %vm223_vm1, %v1741_v54  ;;  %v1824_v54 = vld [vmem:[%s2879_s21 + $0x128] sm:$0xff]  ;;  %v1897_v6 = vld [vmem:[%s2879_s21 + $0x2b0] sm:$0xff] }
 0x12e   : > { %v920_v61 = vadd.f32 %v3148_v15, %v919_v57  ;;  %v993_v62 = vadd.f32 %v3148_v15, %v992_v58 }
 0x12f   : > { %v1171_v63 = vmax.f32 %v1091_v56, %v1164_v55 }
 0x130   : > { %v932_v7 = vmax.f32 %v920_v61, 0.0  ;;  %v1005_v8 = vmax.f32 %v993_v62, 0.0  ;;  %v1072_v9 = vpop.f32.mrf.mxu2  ;;  %2681 = vmatmul.msk.f32.gmra.mxu0 %vm223_vm1, %v1508_v59  ;;  %2689 = vmatmul.msk.f32.gmra.mxu1 %vm223_vm1, %v1581_v60  ;;  %v1152_v10 = vpop.f32.mrf.mxu3 }
 0x131   : > { %1178 = vst.msk [vmem:[%s3183_s28 + $0x88] sm:$0xff] %vm534_vm2, %v1171_v63  ;;  %v1073_v12 = vadd.f32 %v3473_v11, %v1072_v9  ;;  %v1153_v13 = vadd.f32 %v3473_v11, %v1152_v10  ;;  %v2058_v9 = vld [vmem:[%s2879_s21 + $0x5c8] sm:$0xff] }
 0x132   : > { %v1012_v15 = vmax.f32 %v932_v7, %v1005_v8  ;;  %v1978_v8 = vld [vmem:[%s2879_s21 + $0x440] sm:$0xff] }
 0x133   : > { %v1085_v0 = vmax.f32 %v1073_v12, 0.0  ;;  %v1165_v17 = vmax.f32 %v1153_v13, 0.0 }
 0x135   : > { %v1092_v18 = vmax.f32 %v1012_v15, %v1085_v0  ;;  %2723 = vmatmul.msk.f32.vlgmr.msrb.gmra.mxu2 %vm223_vm1, %v1975_v14  ;;  %v922_v19 = vpop.f32.mrf.mxu0  ;;  %v995_v20 = vpop.f32.mrf.mxu1  ;;  %2731 = vmatmul.msk.f32.vlgmr.msrb.gmra.mxu3 %vm223_vm1, %v2055_v16  ;;  %v1825_v16 = vld [vmem:[%s2879_s21 + $0x130] sm:$0xff]  ;;  %v1898_v0 = vld [vmem:[%s2879_s21 + $0x2b8] sm:$0xff] }
 0x136   : > { %v923_v1 = vadd.f32 %v3473_v11, %v922_v19  ;;  %v996_v23 = vadd.f32 %v3473_v11, %v995_v20 }
 0x137   : > { %v1172_v24 = vmax.f32 %v1092_v18, %v1165_v17 }
 0x138   : > { %v933_v25 = vmax.f32 %v923_v1, 0.0  ;;  %v1006_v26 = vmax.f32 %v996_v23, 0.0  ;;  %v1075_v27 = vpop.f32.mrf.mxu2  ;;  %2707 = vmatmul.msk.f32.vlgmr.msrb.gmra.mxu0 %vm223_vm1, %v1822_v21  ;;  %2715 = vmatmul.msk.f32.vlgmr.msrb.gmra.mxu1 %vm223_vm1, %v1895_v22  ;;  %v1155_v2 = vpop.f32.mrf.mxu3 }
 0x139   : > { %1179 = vst.msk [vmem:[%s3183_s28 + $0x90] sm:$0xff] %vm534_vm2, %v1172_v24  ;;  %v1076_v28 = vadd.f32 %v3473_v11, %v1075_v27  ;;  %v1156_v29 = vadd.f32 %v3473_v11, %v1155_v2  ;;  %v2059_v27 = vld [vmem:[%s2879_s21 + $0x5d0] sm:$0xff] }
 0x13a   : > { %v1013_v30 = vmax.f32 %v933_v25, %v1006_v26  ;;  %v1979_v26 = vld [vmem:[%s2879_s21 + $0x448] sm:$0xff] }
 0x13b   : > { %v1086_v3 = vmax.f32 %v1076_v28, 0.0  ;;  %v1166_v33 = vmax.f32 %v1156_v29, 0.0 }
 0x13d   : > { %v1093_v34 = vmax.f32 %v1013_v30, %v1086_v3  ;;  %2724 = vmatmul.msk.f32.gmra.mxu2 %vm223_vm1, %v1976_v31  ;;  %v925_v35 = vpop.f32.mrf.mxu0  ;;  %v998_v36 = vpop.f32.mrf.mxu1  ;;  %2732 = vmatmul.msk.f32.gmra.mxu3 %vm223_vm1, %v2056_v32  ;;  %v1826_v32 = vld [vmem:[%s2879_s21 + $0x138] sm:$0xff]  ;;  %v1899_v3 = vld [vmem:[%s2879_s21 + $0x2c0] sm:$0xff] }
 0x13e   : > { %v926_v4 = vadd.f32 %v3473_v11, %v925_v35  ;;  %v999_v39 = vadd.f32 %v3473_v11, %v998_v36 }
 0x13f   : > { %v1173_v40 = vmax.f32 %v1093_v34, %v1166_v33 }
 0x140   : > { %v934_v41 = vmax.f32 %v926_v4, 0.0  ;;  %v1007_v42 = vmax.f32 %v999_v39, 0.0  ;;  %v1078_v5 = vpop.f32.mrf.mxu2  ;;  %2708 = vmatmul.msk.f32.gmra.mxu0 %vm223_vm1, %v1823_v37  ;;  %2716 = vmatmul.msk.f32.gmra.mxu1 %vm223_vm1, %v1896_v38  ;;  %v1158_v43 = vpop.f32.mrf.mxu3 }
 0x141   : > { %1180 = vst.msk [vmem:[%s3183_s28 + $0x98] sm:$0xff] %vm534_vm2, %v1173_v40  ;;  %v1079_v44 = vadd.f32 %v3473_v11, %v1078_v5  ;;  %v1159_v45 = vadd.f32 %v3473_v11, %v1158_v43  ;;  %v2060_v5 = vld [vmem:[%s2879_s21 + $0x5d8] sm:$0xff] }
 0x142   : > { %v1014_v46 = vmax.f32 %v934_v41, %v1007_v42  ;;  %v1980_v42 = vld [vmem:[%s2879_s21 + $0x450] sm:$0xff] }
 0x143   : > { %v1087_v49 = vmax.f32 %v1079_v44, 0.0  ;;  %v1167_v50 = vmax.f32 %v1159_v45, 0.0 }
 0x145   : > { %v1094_v51 = vmax.f32 %v1014_v46, %v1087_v49  ;;  %2725 = vmatmul.msk.f32.gmra.mxu2 %vm223_vm1, %v1977_v47  ;;  %v1227_v52 = vpop.f32.mrf.mxu0  ;;  %v1300_v53 = vpop.f32.mrf.mxu1  ;;  %2733 = vmatmul.msk.f32.gmra.mxu3 %vm223_vm1, %v2057_v48  ;;  %v1827_v48 = vld [vmem:[%s2879_s21 + $0x140] sm:$0xff]  ;;  %v1900_v49 = vld [vmem:[%s2879_s21 + $0x2c8] sm:$0xff] }
 0x146   : > { %v1228_v55 = vadd.f32 %v3473_v11, %v1227_v52  ;;  %v1301_v56 = vadd.f32 %v3473_v11, %v1300_v53 }
 0x147   : > { %v1174_v57 = vmax.f32 %v1094_v51, %v1167_v50 }
 0x148   : > { %v1248_v58 = vmax.f32 %v1228_v55, 0.0  ;;  %v1321_v59 = vmax.f32 %v1301_v56, 0.0  ;;  %v1380_v60 = vpop.f32.mrf.mxu2  ;;  %2709 = vmatmul.msk.f32.gmra.mxu0 %vm223_vm1, %v1824_v54  ;;  %2717 = vmatmul.msk.f32.gmra.mxu1 %vm223_vm1, %v1897_v6  ;;  %v1460_v61 = vpop.f32.mrf.mxu3 }
 0x149   : > { %1181 = vst.msk [vmem:[%s3183_s28 + $0xa0] sm:$0xff] %vm534_vm2, %v1174_v57  ;;  %v1381_v62 = vadd.f32 %v3473_v11, %v1380_v60  ;;  %v1461_v63 = vadd.f32 %v3473_v11, %v1460_v61  ;;  %v2061_v60 = vld [vmem:[%s2879_s21 + $0x5e0] sm:$0xff] }
 0x14a   : > { %v1328_v7 = vmax.f32 %v1248_v58, %v1321_v59  ;;  %v1981_v59 = vld [vmem:[%s2879_s21 + $0x458] sm:$0xff] }
 0x14b   : > { %v1401_v10 = vmax.f32 %v1381_v62, 0.0  ;;  %v1481_v12 = vmax.f32 %v1461_v63, 0.0 }
 0x14d   : > { %v1408_v13 = vmax.f32 %v1328_v7, %v1401_v10  ;;  %2726 = vmatmul.msk.f32.gmra.mxu2 %vm223_vm1, %v1978_v8  ;;  %v1230_v15 = vpop.f32.mrf.mxu0  ;;  %v1303_v14 = vpop.f32.mrf.mxu1  ;;  %2734 = vmatmul.msk.f32.gmra.mxu3 %vm223_vm1, %v2058_v9  ;;  %v1828_v9 = vld [vmem:[%s2879_s21 + $0x148] sm:$0xff]  ;;  %v1901_v10 = vld [vmem:[%s2879_s21 + $0x2d0] sm:$0xff] }
 0x14e   : > { %v1231_v17 = vadd.f32 %v3473_v11, %v1230_v15  ;;  %v1304_v18 = vadd.f32 %v3473_v11, %v1303_v14 }
 0x14f   : > { %v1488_v19 = vmax.f32 %v1408_v13, %v1481_v12 }
 0x150   : > { %v1249_v20 = vmax.f32 %v1231_v17, 0.0  ;;  %v1322_v21 = vmax.f32 %v1304_v18, 0.0  ;;  %v1383_v22 = vpop.f32.mrf.mxu2  ;;  %2710 = vmatmul.msk.f32.gmra.mxu0 %vm223_vm1, %v1825_v16  ;;  %2718 = vmatmul.msk.f32.gmra.mxu1 %vm223_vm1, %v1898_v0  ;;  %v1463_v1 = vpop.f32.mrf.mxu3 }
 0x151   : > { %1495 = vst.msk [vmem:[%s3183_s28 + $0xa8] sm:$0xff] %vm534_vm2, %v1488_v19  ;;  %v1384_v23 = vadd.f32 %v3473_v11, %v1383_v22  ;;  %v1464_v24 = vadd.f32 %v3473_v11, %v1463_v1  ;;  %v2375_v22 = vld [vmem:[%s2879_s21 + $0x5e8] sm:$0xff] }
 0x152   : > { %v1329_v25 = vmax.f32 %v1249_v20, %v1322_v21  ;;  %v2295_v21 = vld [vmem:[%s2879_s21 + $0x460] sm:$0xff] }
 0x153   : > { %v1402_v2 = vmax.f32 %v1384_v23, 0.0  ;;  %v1482_v28 = vmax.f32 %v1464_v24, 0.0 }
 0x155   : > { %v1409_v29 = vmax.f32 %v1329_v25, %v1402_v2  ;;  %2727 = vmatmul.msk.f32.gmra.mxu2 %vm223_vm1, %v1979_v26  ;;  %v1233_v30 = vpop.f32.mrf.mxu0  ;;  %v1306_v31 = vpop.f32.mrf.mxu1  ;;  %2735 = vmatmul.msk.f32.gmra.mxu3 %vm223_vm1, %v2059_v27  ;;  %v2142_v27 = vld [vmem:[%s2879_s21 + $0x150] sm:$0xff]  ;;  %v2215_v2 = vld [vmem:[%s2879_s21 + $0x2d8] sm:$0xff] }
 0x156   : > { %v1234_v33 = vadd.f32 %v3473_v11, %v1233_v30  ;;  %v1307_v34 = vadd.f32 %v3473_v11, %v1306_v31 }
 0x157   : > { %v1489_v35 = vmax.f32 %v1409_v29, %v1482_v28 }
 0x158   : > { %v1250_v36 = vmax.f32 %v1234_v33, 0.0  ;;  %v1323_v37 = vmax.f32 %v1307_v34, 0.0  ;;  %v1386_v38 = vpop.f32.mrf.mxu2  ;;  %2711 = vmatmul.msk.f32.gmra.mxu0 %vm223_vm1, %v1826_v32  ;;  %2719 = vmatmul.msk.f32.gmra.mxu1 %vm223_vm1, %v1899_v3  ;;  %v1466_v4 = vpop.f32.mrf.mxu3 }
 0x159   : > { %1496 = vst.msk [vmem:[%s3183_s28 + $0xb0] sm:$0xff] %vm534_vm2, %v1489_v35  ;;  %v1387_v39 = vadd.f32 %v3473_v11, %v1386_v38  ;;  %v1467_v40 = vadd.f32 %v3473_v11, %v1466_v4  ;;  %v2376_v38 = vld [vmem:[%s2879_s21 + $0x5f0] sm:$0xff] }
 0x15a   : > { %v1330_v41 = vmax.f32 %v1250_v36, %v1323_v37  ;;  %v2296_v37 = vld [vmem:[%s2879_s21 + $0x468] sm:$0xff] }
 0x15b   : > { %v1403_v43 = vmax.f32 %v1387_v39, 0.0  ;;  %v1483_v44 = vmax.f32 %v1467_v40, 0.0 }
 0x15d   : > { %v1410_v45 = vmax.f32 %v1330_v41, %v1403_v43  ;;  %2728 = vmatmul.msk.f32.gmra.mxu2 %vm223_vm1, %v1980_v42  ;;  %v1236_v46 = vpop.f32.mrf.mxu0  ;;  %v1309_v47 = vpop.f32.mrf.mxu1  ;;  %2736 = vmatmul.msk.f32.gmra.mxu3 %vm223_vm1, %v2060_v5  ;;  %v2143_v5 = vld [vmem:[%s2879_s21 + $0x158] sm:$0xff]  ;;  %v2216_v43 = vld [vmem:[%s2879_s21 + $0x2e0] sm:$0xff] }
 0x15e   : > { %v1237_v50 = vadd.f32 %v3473_v11, %v1236_v46  ;;  %v1310_v51 = vadd.f32 %v3473_v11, %v1309_v47 }
 0x15f   : > { %v1490_v52 = vmax.f32 %v1410_v45, %v1483_v44 }
 0x160   : > { %v1251_v53 = vmax.f32 %v1237_v50, 0.0  ;;  %v1324_v54 = vmax.f32 %v1310_v51, 0.0  ;;  %v1389_v6 = vpop.f32.mrf.mxu2  ;;  %2712 = vmatmul.msk.f32.gmra.mxu0 %vm223_vm1, %v1827_v48  ;;  %2720 = vmatmul.msk.f32.gmra.mxu1 %vm223_vm1, %v1900_v49  ;;  %v1469_v55 = vpop.f32.mrf.mxu3 }
 0x161   : > { %1497 = vst.msk [vmem:[%s3183_s28 + $0xb8] sm:$0xff] %vm534_vm2, %v1490_v52  ;;  %v1390_v56 = vadd.f32 %v3473_v11, %v1389_v6  ;;  %v1470_v57 = vadd.f32 %v3473_v11, %v1469_v55  ;;  %v2377_v6 = vld [vmem:[%s2879_s21 + $0x5f8] sm:$0xff] }
 0x162   : > { %v1331_v58 = vmax.f32 %v1251_v53, %v1324_v54  ;;  %v2297_v54 = vld [vmem:[%s2879_s21 + $0x470] sm:$0xff] }
 0x163   : > { %v1404_v61 = vmax.f32 %v1390_v56, 0.0  ;;  %v1484_v62 = vmax.f32 %v1470_v57, 0.0 }
 0x165   : > { %v1411_v63 = vmax.f32 %v1331_v58, %v1404_v61  ;;  %2729 = vmatmul.msk.f32.gmra.mxu2 %vm223_vm1, %v1981_v59  ;;  %v1239_v7 = vpop.f32.mrf.mxu0  ;;  %v1312_v8 = vpop.f32.mrf.mxu1  ;;  %2737 = vmatmul.msk.f32.gmra.mxu3 %vm223_vm1, %v2061_v60  ;;  %v2144_v60 = vld [vmem:[%s2879_s21 + $0x160] sm:$0xff]  ;;  %v2217_v61 = vld [vmem:[%s2879_s21 + $0x2e8] sm:$0xff] }
 0x166   : > { %v1240_v12 = vadd.f32 %v3473_v11, %v1239_v7  ;;  %v1313_v13 = vadd.f32 %v3473_v11, %v1312_v8 }
 0x167   : > { %v1491_v15 = vmax.f32 %v1411_v63, %v1484_v62 }
 0x168   : > { %v1252_v14 = vmax.f32 %v1240_v12, 0.0  ;;  %v1325_v16 = vmax.f32 %v1313_v13, 0.0  ;;  %v1392_v0 = vpop.f32.mrf.mxu2  ;;  %2713 = vmatmul.msk.f32.gmra.mxu0 %vm223_vm1, %v1828_v9  ;;  %2721 = vmatmul.msk.f32.gmra.mxu1 %vm223_vm1, %v1901_v10  ;;  %v1472_v17 = vpop.f32.mrf.mxu3 }
 0x169   : > { %1498 = vst.msk [vmem:[%s3183_s28 + $0xc0] sm:$0xff] %vm534_vm2, %v1491_v15  ;;  %v1393_v18 = vadd.f32 %v3473_v11, %v1392_v0  ;;  %v1473_v19 = vadd.f32 %v3473_v11, %v1472_v17  ;;  %v2378_v0 = vld [vmem:[%s2879_s21 + $0x600] sm:$0xff] }
 0x16a   : > { %v1332_v20 = vmax.f32 %v1252_v14, %v1325_v16  ;;  %v2298_v16 = vld [vmem:[%s2879_s21 + $0x478] sm:$0xff] }
 0x16b   : > { %v1405_v1 = vmax.f32 %v1393_v18, 0.0  ;;  %v1485_v23 = vmax.f32 %v1473_v19, 0.0 }
 0x16d   : > { %v1412_v24 = vmax.f32 %v1332_v20, %v1405_v1  ;;  %2755 = vmatmul.msk.f32.vlgmr.msra.gmra.mxu2 %vm223_vm1, %v2295_v21  ;;  %v1242_v25 = vpop.f32.mrf.mxu0  ;;  %v1315_v26 = vpop.f32.mrf.mxu1  ;;  %2763 = vmatmul.msk.f32.vlgmr.msra.gmra.mxu3 %vm223_vm1, %v2375_v22  ;;  %v2145_v22 = vld [vmem:[%s2879_s21 + $0x168] sm:$0xff]  ;;  %v2218_v1 = vld [vmem:[%s2879_s21 + $0x2f0] sm:$0xff] }
 0x16e   : > { %v1243_v28 = vadd.f32 %v3473_v11, %v1242_v25  ;;  %v1316_v29 = vadd.f32 %v3473_v11, %v1315_v26 }
 0x16f   : > { %v1492_v30 = vmax.f32 %v1412_v24, %v1485_v23 }
 0x170   : > { %v1253_v31 = vmax.f32 %v1243_v28, 0.0  ;;  %v1326_v32 = vmax.f32 %v1316_v29, 0.0  ;;  %v1395_v3 = vpop.f32.mrf.mxu2  ;;  %2739 = vmatmul.msk.f32.vlgmr.msra.gmra.mxu0 %vm223_vm1, %v2142_v27  ;;  %2747 = vmatmul.msk.f32.vlgmr.msra.gmra.mxu1 %vm223_vm1, %v2215_v2  ;;  %v1475_v33 = vpop.f32.mrf.mxu3 }
 0x171   : > { %1499 = vst.msk [vmem:[%s3183_s28 + $0xc8] sm:$0xff] %vm534_vm2, %v1492_v30  ;;  %v1396_v34 = vadd.f32 %v3473_v11, %v1395_v3  ;;  %v1476_v35 = vadd.f32 %v3473_v11, %v1475_v33  ;;  %v2379_v3 = vld [vmem:[%s2879_s21 + $0x608] sm:$0xff] }
 0x172   : > { %v1333_v36 = vmax.f32 %v1253_v31, %v1326_v32  ;;  %v2299_v32 = vld [vmem:[%s2879_s21 + $0x480] sm:$0xff] }
 0x173   : > { %v1406_v4 = vmax.f32 %v1396_v34, 0.0  ;;  %v1486_v39 = vmax.f32 %v1476_v35, 0.0 }
 0x175   : > { %v1413_v40 = vmax.f32 %v1333_v36, %v1406_v4  ;;  %2756 = vmatmul.msk.f32.gmra.mxu2 %vm223_vm1, %v2296_v37  ;;  %v1245_v41 = vpop.f32.mrf.mxu0  ;;  %v1318_v42 = vpop.f32.mrf.mxu1  ;;  %2764 = vmatmul.msk.f32.gmra.mxu3 %vm223_vm1, %v2376_v38  ;;  %v2146_v38 = vld [vmem:[%s2879_s21 + $0x170] sm:$0xff]  ;;  %v2219_v4 = vld [vmem:[%s2879_s21 + $0x2f8] sm:$0xff] }
 0x176   : > { %v1246_v44 = vadd.f32 %v3473_v11, %v1245_v41  ;;  %v1319_v45 = vadd.f32 %v3473_v11, %v1318_v42 }
 0x177   : > { %v1493_v46 = vmax.f32 %v1413_v40, %v1486_v39 }
 0x178   : > { %v1254_v47 = vmax.f32 %v1246_v44, 0.0  ;;  %v1327_v48 = vmax.f32 %v1319_v45, 0.0  ;;  %v1398_v49 = vpop.f32.mrf.mxu2  ;;  %2740 = vmatmul.msk.f32.gmra.mxu0 %vm223_vm1, %v2143_v5  ;;  %2748 = vmatmul.msk.f32.gmra.mxu1 %vm223_vm1, %v2216_v43  ;;  %v1478_v50 = vpop.f32.mrf.mxu3 }
 0x179   : > { %1500 = vst.msk [vmem:[%s3183_s28 + $0xd0] sm:$0xff] %vm534_vm2, %v1493_v46  ;;  %v1399_v51 = vadd.f32 %v3473_v11, %v1398_v49  ;;  %v1479_v52 = vadd.f32 %v3473_v11, %v1478_v50  ;;  %v2380_v49 = vld [vmem:[%s2879_s21 + $0x610] sm:$0xff] }
 0x17a   : > { %v1334_v53 = vmax.f32 %v1254_v47, %v1327_v48  ;;  %v2300_v48 = vld [vmem:[%s2879_s21 + $0x488] sm:$0xff] }
 0x17b   : > { %v1407_v55 = vmax.f32 %v1399_v51, 0.0  ;;  %v1487_v56 = vmax.f32 %v1479_v52, 0.0 }
 0x17d   : > { %v1414_v57 = vmax.f32 %v1334_v53, %v1407_v55  ;;  %2757 = vmatmul.msk.f32.gmra.mxu2 %vm223_vm1, %v2297_v54  ;;  %v1547_v58 = vpop.f32.mrf.mxu0  ;;  %v1620_v59 = vpop.f32.mrf.mxu1  ;;  %2765 = vmatmul.msk.f32.gmra.mxu3 %vm223_vm1, %v2377_v6  ;;  %v2147_v6 = vld [vmem:[%s2879_s21 + $0x178] sm:$0xff]  ;;  %v2220_v55 = vld [vmem:[%s2879_s21 + $0x300] sm:$0xff] }
 0x17e   : > { %v1548_v62 = vadd.f32 %v3473_v11, %v1547_v58  ;;  %v1621_v63 = vadd.f32 %v3473_v11, %v1620_v59 }
 0x17f   : > { %v1494_v7 = vmax.f32 %v1414_v57, %v1487_v56 }
 0x180   : > { %v1568_v8 = vmax.f32 %v1548_v62, 0.0  ;;  %v1641_v9 = vmax.f32 %v1621_v63, 0.0  ;;  %v1700_v10 = vpop.f32.mrf.mxu2  ;;  %2741 = vmatmul.msk.f32.gmra.mxu0 %vm223_vm1, %v2144_v60  ;;  %2749 = vmatmul.msk.f32.gmra.mxu1 %vm223_vm1, %v2217_v61  ;;  %v1780_v12 = vpop.f32.mrf.mxu3 }
 0x181   : > { %1501 = vst.msk [vmem:[%s3183_s28 + $0xd8] sm:$0xff] %vm534_vm2, %v1494_v7  ;;  %v1701_v13 = vadd.f32 %v3473_v11, %v1700_v10  ;;  %v1781_v15 = vadd.f32 %v3473_v11, %v1780_v12  ;;  %v2381_v10 = vld [vmem:[%s2879_s21 + $0x618] sm:$0xff] }
 0x182   : > { %v1648_v14 = vmax.f32 %v1568_v8, %v1641_v9  ;;  %v2301_v9 = vld [vmem:[%s2879_s21 + $0x490] sm:$0xff] }
 0x183   : > { %v1721_v17 = vmax.f32 %v1701_v13, 0.0  ;;  %v1801_v18 = vmax.f32 %v1781_v15, 0.0 }
 0x185   : > { %v1728_v19 = vmax.f32 %v1648_v14, %v1721_v17  ;;  %2758 = vmatmul.msk.f32.gmra.mxu2 %vm223_vm1, %v2298_v16  ;;  %v1550_v20 = vpop.f32.mrf.mxu0  ;;  %v1623_v21 = vpop.f32.mrf.mxu1  ;;  %2766 = vmatmul.msk.f32.gmra.mxu3 %vm223_vm1, %v2378_v0  ;;  %v2148_v0 = vld [vmem:[%s2879_s21 + $0x180] sm:$0xff]  ;;  %v2221_v17 = vld [vmem:[%s2879_s21 + $0x308] sm:$0xff] }
 0x186   : > { %v1551_v23 = vadd.f32 %v3473_v11, %v1550_v20  ;;  %v1624_v24 = vadd.f32 %v3473_v11, %v1623_v21 }
 0x187   : > { %v1808_v25 = vmax.f32 %v1728_v19, %v1801_v18 }
 0x188   : > { %v1569_v26 = vmax.f32 %v1551_v23, 0.0  ;;  %v1642_v27 = vmax.f32 %v1624_v24, 0.0  ;;  %v1703_v2 = vpop.f32.mrf.mxu2  ;;  %2742 = vmatmul.msk.f32.gmra.mxu0 %vm223_vm1, %v2145_v22  ;;  %2750 = vmatmul.msk.f32.gmra.mxu1 %vm223_vm1, %v2218_v1  ;;  %v1783_v28 = vpop.f32.mrf.mxu3 }
 0x189   : > { %1815 = vst.msk [vmem:[%s3183_s28 + $0xe0] sm:$0xff] %vm534_vm2, %v1808_v25  ;;  %v1704_v29 = vadd.f32 %v3473_v11, %v1703_v2  ;;  %v1784_v30 = vadd.f32 %v3473_v11, %v1783_v28 }
 0x18a   : > { %v1649_v31 = vmax.f32 %v1569_v26, %v1642_v27 }
 0x18b   : > { %v1722_v33 = vmax.f32 %v1704_v29, 0.0  ;;  %v1802_v34 = vmax.f32 %v1784_v30, 0.0 }
 0x18d   : > { %v1729_v35 = vmax.f32 %v1649_v31, %v1722_v33  ;;  %2759 = vmatmul.msk.f32.gmra.mxu2 %vm223_vm1, %v2299_v32  ;;  %v1553_v36 = vpop.f32.mrf.mxu0  ;;  %v1626_v37 = vpop.f32.mrf.mxu1  ;;  %2767 = vmatmul.msk.f32.gmra.mxu3 %vm223_vm1, %v2379_v3 }
 0x18e   : > { %v1554_v39 = vadd.f32 %v3473_v11, %v1553_v36  ;;  %v1627_v40 = vadd.f32 %v3473_v11, %v1626_v37 }
 0x18f   : > { %v1809_v41 = vmax.f32 %v1729_v35, %v1802_v34 }
 0x190   : > { %v1570_v42 = vmax.f32 %v1554_v39, 0.0  ;;  %v1643_v5 = vmax.f32 %v1627_v40, 0.0  ;;  %v1706_v43 = vpop.f32.mrf.mxu2  ;;  %2743 = vmatmul.msk.f32.gmra.mxu0 %vm223_vm1, %v2146_v38  ;;  %2751 = vmatmul.msk.f32.gmra.mxu1 %vm223_vm1, %v2219_v4  ;;  %v1786_v44 = vpop.f32.mrf.mxu3 }
 0x191   : > { %1816 = vst.msk [vmem:[%s3183_s28 + $0xe8] sm:$0xff] %vm534_vm2, %v1809_v41  ;;  %v1707_v45 = vadd.f32 %v3473_v11, %v1706_v43  ;;  %v1787_v46 = vadd.f32 %v3473_v11, %v1786_v44 }
 0x192   : > { %v1650_v47 = vmax.f32 %v1570_v42, %v1643_v5 }
 0x193   : > { %v1723_v50 = vmax.f32 %v1707_v45, 0.0  ;;  %v1803_v51 = vmax.f32 %v1787_v46, 0.0 }
 0x195   : > { %v1730_v52 = vmax.f32 %v1650_v47, %v1723_v50  ;;  %2760 = vmatmul.msk.f32.gmra.mxu2 %vm223_vm1, %v2300_v48  ;;  %v1556_v53 = vpop.f32.mrf.mxu0  ;;  %v1629_v54 = vpop.f32.mrf.mxu1  ;;  %2768 = vmatmul.msk.f32.gmra.mxu3 %vm223_vm1, %v2380_v49 }
 0x196   : > { %v1557_v56 = vadd.f32 %v3473_v11, %v1556_v53  ;;  %v1630_v57 = vadd.f32 %v3473_v11, %v1629_v54 }
 0x197   : > { %v1810_v58 = vmax.f32 %v1730_v52, %v1803_v51 }
 0x198   : > { %v1571_v59 = vmax.f32 %v1557_v56, 0.0  ;;  %v1644_v60 = vmax.f32 %v1630_v57, 0.0  ;;  %v1709_v61 = vpop.f32.mrf.mxu2  ;;  %2744 = vmatmul.msk.f32.gmra.mxu0 %vm223_vm1, %v2147_v6  ;;  %2752 = vmatmul.msk.f32.gmra.mxu1 %vm223_vm1, %v2220_v55  ;;  %v1789_v62 = vpop.f32.mrf.mxu3 }
 0x199   : > { %1817 = vst.msk [vmem:[%s3183_s28 + $0xf0] sm:$0xff] %vm534_vm2, %v1810_v58  ;;  %v1710_v63 = vadd.f32 %v3473_v11, %v1709_v61  ;;  %v1790_v7 = vadd.f32 %v3473_v11, %v1789_v62 }
 0x19a   : > { %v1651_v8 = vmax.f32 %v1571_v59, %v1644_v60 }
 0x19b   : > { %v1724_v12 = vmax.f32 %v1710_v63, 0.0  ;;  %v1804_v13 = vmax.f32 %v1790_v7, 0.0 }
 0x19d   : > { %v1731_v15 = vmax.f32 %v1651_v8, %v1724_v12  ;;  %2761 = vmatmul.msk.f32.gmra.mxu2 %vm223_vm1, %v2301_v9  ;;  %v1559_v14 = vpop.f32.mrf.mxu0  ;;  %v1632_v16 = vpop.f32.mrf.mxu1  ;;  %2769 = vmatmul.msk.f32.gmra.mxu3 %vm223_vm1, %v2381_v10 }
 0x19e   : > { %v1560_v18 = vadd.f32 %v3473_v11, %v1559_v14  ;;  %v1633_v19 = vadd.f32 %v3473_v11, %v1632_v16 }
 0x19f   : > { %v1811_v20 = vmax.f32 %v1731_v15, %v1804_v13 }
 0x1a0   : > { %v1572_v21 = vmax.f32 %v1560_v18, 0.0  ;;  %v1645_v22 = vmax.f32 %v1633_v19, 0.0  ;;  %v1712_v1 = vpop.f32.mrf.mxu2  ;;  %2745 = vmatmul.msk.f32.gmra.mxu0 %vm223_vm1, %v2148_v0  ;;  %2753 = vmatmul.msk.f32.gmra.mxu1 %vm223_vm1, %v2221_v17  ;;  %v1792_v23 = vpop.f32.mrf.mxu3 }
 0x1a1   : > { %1818 = vst.msk [vmem:[%s3183_s28 + $0xf8] sm:$0xff] %vm534_vm2, %v1811_v20  ;;  %v1713_v24 = vadd.f32 %v3473_v11, %v1712_v1  ;;  %v1793_v25 = vadd.f32 %v3473_v11, %v1792_v23 }
 0x1a2   : > { %v1652_v26 = vmax.f32 %v1572_v21, %v1645_v22 }
 0x1a3   : > { %v1725_v27 = vmax.f32 %v1713_v24, 0.0  ;;  %v1805_v2 = vmax.f32 %v1793_v25, 0.0 }
 0x1a5   : > { %v1732_v28 = vmax.f32 %v1652_v26, %v1725_v27  ;;  %v1562_v29 = vpop.f32.mrf.mxu0  ;;  %v1635_v30 = vpop.f32.mrf.mxu1 }
 0x1a6   : > { %v1563_v31 = vadd.f32 %v3473_v11, %v1562_v29  ;;  %v1636_v32 = vadd.f32 %v3473_v11, %v1635_v30 }
 0x1a7   : > { %v1812_v3 = vmax.f32 %v1732_v28, %v1805_v2 }
 0x1a8   : > { %v1573_v33 = vmax.f32 %v1563_v31, 0.0  ;;  %v1646_v34 = vmax.f32 %v1636_v32, 0.0  ;;  %v1715_v35 = vpop.f32.mrf.mxu2  ;;  %v1795_v36 = vpop.f32.mrf.mxu3 }
 0x1a9   : > { %1819 = vst.msk [vmem:[%s3183_s28 + $0x100] sm:$0xff] %vm534_vm2, %v1812_v3  ;;  %v1716_v37 = vadd.f32 %v3473_v11, %v1715_v35  ;;  %v1796_v38 = vadd.f32 %v3473_v11, %v1795_v36 }
 0x1aa   : > { %v1653_v4 = vmax.f32 %v1573_v33, %v1646_v34 }
 0x1ab   : > { %v1726_v39 = vmax.f32 %v1716_v37, 0.0  ;;  %v1806_v40 = vmax.f32 %v1796_v38, 0.0 }
 0x1ad   : > { %v1733_v41 = vmax.f32 %v1653_v4, %v1726_v39  ;;  %v1565_v42 = vpop.f32.mrf.mxu0  ;;  %v1638_v5 = vpop.f32.mrf.mxu1 }
 0x1ae   : > { %v1566_v43 = vadd.f32 %v3473_v11, %v1565_v42  ;;  %v1639_v44 = vadd.f32 %v3473_v11, %v1638_v5 }
 0x1af   : > { %v1813_v45 = vmax.f32 %v1733_v41, %v1806_v40 }
 0x1b0   : > { %v1574_v46 = vmax.f32 %v1566_v43, 0.0  ;;  %v1647_v47 = vmax.f32 %v1639_v44, 0.0  ;;  %v1718_v48 = vpop.f32.mrf.mxu2  ;;  %v1798_v49 = vpop.f32.mrf.mxu3 }
 0x1b1   : > { %1820 = vst.msk [vmem:[%s3183_s28 + $0x108] sm:$0xff] %vm534_vm2, %v1813_v45  ;;  %v1719_v50 = vadd.f32 %v3473_v11, %v1718_v48  ;;  %v1799_v51 = vadd.f32 %v3473_v11, %v1798_v49 }
 0x1b2   : > { %v1654_v52 = vmax.f32 %v1574_v46, %v1647_v47 }
 0x1b3   : > { %v1727_v53 = vmax.f32 %v1719_v50, 0.0  ;;  %v1807_v54 = vmax.f32 %v1799_v51, 0.0 }
 0x1b5   : > { %v1734_v6 = vmax.f32 %v1654_v52, %v1727_v53  ;;  %v1867_v55 = vpop.f32.mrf.mxu0  ;;  %v1940_v56 = vpop.f32.mrf.mxu1 }
 0x1b6   : > { %v1868_v57 = vadd.f32 %v3473_v11, %v1867_v55  ;;  %v1941_v58 = vadd.f32 %v3473_v11, %v1940_v56 }
 0x1b7   : > { %v1814_v59 = vmax.f32 %v1734_v6, %v1807_v54 }
 0x1b8   : > { %v1888_v60 = vmax.f32 %v1868_v57, 0.0  ;;  %v1961_v61 = vmax.f32 %v1941_v58, 0.0  ;;  %v2020_v62 = vpop.f32.mrf.mxu2  ;;  %v2100_v63 = vpop.f32.mrf.mxu3 }
 0x1b9   : > { %1821 = vst.msk [vmem:[%s3183_s28 + $0x110] sm:$0xff] %vm534_vm2, %v1814_v59  ;;  %v2021_v7 = vadd.f32 %v3473_v11, %v2020_v62  ;;  %v2101_v8 = vadd.f32 %v3473_v11, %v2100_v63 }
 0x1ba   : > { %v1968_v9 = vmax.f32 %v1888_v60, %v1961_v61 }
 0x1bb   : > { %v2041_v10 = vmax.f32 %v2021_v7, 0.0  ;;  %v2121_v12 = vmax.f32 %v2101_v8, 0.0 }
 0x1bd   : > { %v2048_v13 = vmax.f32 %v1968_v9, %v2041_v10  ;;  %v1870_v15 = vpop.f32.mrf.mxu0  ;;  %v1943_v14 = vpop.f32.mrf.mxu1 }
 0x1be   : > { %v1871_v16 = vadd.f32 %v3473_v11, %v1870_v15  ;;  %v1944_v0 = vadd.f32 %v3473_v11, %v1943_v14 }
 0x1bf   : > { %v2128_v17 = vmax.f32 %v2048_v13, %v2121_v12 }
 0x1c0   : > { %v1889_v18 = vmax.f32 %v1871_v16, 0.0  ;;  %v1962_v19 = vmax.f32 %v1944_v0, 0.0  ;;  %v2023_v20 = vpop.f32.mrf.mxu2  ;;  %v2103_v21 = vpop.f32.mrf.mxu3 }
 0x1c1   : > { %2135 = vst.msk [vmem:[%s3183_s28 + $0x118] sm:$0xff] %vm534_vm2, %v2128_v17  ;;  %v2024_v22 = vadd.f32 %v3473_v11, %v2023_v20  ;;  %v2104_v1 = vadd.f32 %v3473_v11, %v2103_v21 }
 0x1c2   : > { %v1969_v23 = vmax.f32 %v1889_v18, %v1962_v19 }
 0x1c3   : > { %v2042_v24 = vmax.f32 %v2024_v22, 0.0  ;;  %v2122_v25 = vmax.f32 %v2104_v1, 0.0 }
 0x1c5   : > { %v2049_v26 = vmax.f32 %v1969_v23, %v2042_v24  ;;  %v1873_v27 = vpop.f32.mrf.mxu0  ;;  %v1946_v2 = vpop.f32.mrf.mxu1 }
 0x1c6   : > { %v1874_v28 = vadd.f32 %v3473_v11, %v1873_v27  ;;  %v1947_v29 = vadd.f32 %v3473_v11, %v1946_v2 }
 0x1c7   : > { %v2129_v30 = vmax.f32 %v2049_v26, %v2122_v25 }
 0x1c8   : > { %v1890_v31 = vmax.f32 %v1874_v28, 0.0  ;;  %v1963_v32 = vmax.f32 %v1947_v29, 0.0  ;;  %v2026_v3 = vpop.f32.mrf.mxu2  ;;  %v2106_v33 = vpop.f32.mrf.mxu3 }
 0x1c9   : > { %2136 = vst.msk [vmem:[%s3183_s28 + $0x120] sm:$0xff] %vm534_vm2, %v2129_v30  ;;  %v2027_v34 = vadd.f32 %v3473_v11, %v2026_v3  ;;  %v2107_v35 = vadd.f32 %v3473_v11, %v2106_v33 }
 0x1ca   : > { %v1970_v36 = vmax.f32 %v1890_v31, %v1963_v32 }
 0x1cb   : > { %v2043_v37 = vmax.f32 %v2027_v34, 0.0  ;;  %v2123_v38 = vmax.f32 %v2107_v35, 0.0 }
 0x1cd   : > { %v2050_v4 = vmax.f32 %v1970_v36, %v2043_v37  ;;  %v1876_v39 = vpop.f32.mrf.mxu0  ;;  %v1949_v40 = vpop.f32.mrf.mxu1 }
 0x1ce   : > { %v1877_v41 = vadd.f32 %v3473_v11, %v1876_v39  ;;  %v1950_v42 = vadd.f32 %v3473_v11, %v1949_v40 }
 0x1cf   : > { %v2130_v5 = vmax.f32 %v2050_v4, %v2123_v38 }
 0x1d0   : > { %v1891_v43 = vmax.f32 %v1877_v41, 0.0  ;;  %v1964_v44 = vmax.f32 %v1950_v42, 0.0  ;;  %v2029_v45 = vpop.f32.mrf.mxu2  ;;  %v2109_v46 = vpop.f32.mrf.mxu3 }
 0x1d1   : > { %2137 = vst.msk [vmem:[%s3183_s28 + $0x128] sm:$0xff] %vm534_vm2, %v2130_v5  ;;  %v2030_v47 = vadd.f32 %v3473_v11, %v2029_v45  ;;  %v2110_v48 = vadd.f32 %v3473_v11, %v2109_v46 }
 0x1d2   : > { %v1971_v49 = vmax.f32 %v1891_v43, %v1964_v44 }
 0x1d3   : > { %v2044_v50 = vmax.f32 %v2030_v47, 0.0  ;;  %v2124_v51 = vmax.f32 %v2110_v48, 0.0 }
 0x1d5   : > { %v2051_v52 = vmax.f32 %v1971_v49, %v2044_v50  ;;  %v1879_v53 = vpop.f32.mrf.mxu0  ;;  %v1952_v54 = vpop.f32.mrf.mxu1 }
 0x1d6   : > { %v1880_v6 = vadd.f32 %v3473_v11, %v1879_v53  ;;  %v1953_v55 = vadd.f32 %v3473_v11, %v1952_v54 }
 0x1d7   : > { %v2131_v56 = vmax.f32 %v2051_v52, %v2124_v51 }
 0x1d8   : > { %v1892_v57 = vmax.f32 %v1880_v6, 0.0  ;;  %v1965_v58 = vmax.f32 %v1953_v55, 0.0  ;;  %v2032_v59 = vpop.f32.mrf.mxu2  ;;  %v2112_v60 = vpop.f32.mrf.mxu3 }
 0x1d9   : > { %2138 = vst.msk [vmem:[%s3183_s28 + $0x130] sm:$0xff] %vm534_vm2, %v2131_v56  ;;  %v2033_v61 = vadd.f32 %v3473_v11, %v2032_v59  ;;  %v2113_v62 = vadd.f32 %v3473_v11, %v2112_v60 }
 0x1da   : > { %v1972_v63 = vmax.f32 %v1892_v57, %v1965_v58  ;;  %v3738_v58 = vld [vmem:[%s2900_s24] ss:$0 sm:$0xff] }
 0x1db   : > { %v2045_v7 = vmax.f32 %v2033_v61, 0.0  ;;  %v2125_v8 = vmax.f32 %v2113_v62, 0.0 }
 0x1dd   : > { %v2052_v9 = vmax.f32 %v1972_v63, %v2045_v7  ;;  %v1882_v10 = vpop.f32.mrf.mxu0  ;;  %v1955_v12 = vpop.f32.mrf.mxu1 }
 0x1de   : > { %v1883_v13 = vadd.f32 %v3473_v11, %v1882_v10  ;;  %v1956_v15 = vadd.f32 %v3473_v11, %v1955_v12 }
 0x1df   : > { %v2132_v14 = vmax.f32 %v2052_v9, %v2125_v8 }
 0x1e0   : > { %v1893_v16 = vmax.f32 %v1883_v13, 0.0  ;;  %v1966_v0 = vmax.f32 %v1956_v15, 0.0  ;;  %v2035_v17 = vpop.f32.mrf.mxu2  ;;  %v2115_v18 = vpop.f32.mrf.mxu3 }
 0x1e1   : > { %2139 = vst.msk [vmem:[%s3183_s28 + $0x138] sm:$0xff] %vm534_vm2, %v2132_v14  ;;  %v2036_v19 = vadd.f32 %v3473_v11, %v2035_v17  ;;  %v2116_v20 = vadd.f32 %v3473_v11, %v2115_v18 }
 0x1e2   : > { %v1973_v21 = vmax.f32 %v1893_v16, %v1966_v0 }
 0x1e3   : > { %v2046_v22 = vmax.f32 %v2036_v19, 0.0  ;;  %v2126_v1 = vmax.f32 %v2116_v20, 0.0 }
 0x1e5   : > { %v2053_v23 = vmax.f32 %v1973_v21, %v2046_v22  ;;  %v1885_v24 = vpop.f32.mrf.mxu0  ;;  %v1958_v25 = vpop.f32.mrf.mxu1 }
 0x1e6   : > { %v1886_v26 = vadd.f32 %v3473_v11, %v1885_v24  ;;  %v1959_v27 = vadd.f32 %v3473_v11, %v1958_v25 }
 0x1e7   : > { %v2133_v2 = vmax.f32 %v2053_v23, %v2126_v1 }
 0x1e8   : > { %v1894_v28 = vmax.f32 %v1886_v26, 0.0  ;;  %v1967_v29 = vmax.f32 %v1959_v27, 0.0  ;;  %v2038_v30 = vpop.f32.mrf.mxu2  ;;  %v2118_v31 = vpop.f32.mrf.mxu3 }
 0x1e9   : > { %2140 = vst.msk [vmem:[%s3183_s28 + $0x140] sm:$0xff] %vm534_vm2, %v2133_v2  ;;  %v2039_v32 = vadd.f32 %v3473_v11, %v2038_v30  ;;  %v2119_v3 = vadd.f32 %v3473_v11, %v2118_v31 }
 0x1ea   : > { %v1974_v33 = vmax.f32 %v1894_v28, %v1967_v29 }
 0x1eb   : > { %v2047_v34 = vmax.f32 %v2039_v32, 0.0  ;;  %v2127_v35 = vmax.f32 %v2119_v3, 0.0 }
 0x1ed   : > { %v2054_v36 = vmax.f32 %v1974_v33, %v2047_v34  ;;  %v2187_v37 = vpop.f32.mrf.mxu0  ;;  %v2260_v38 = vpop.f32.mrf.mxu1 }
 0x1ee   : > { %v2188_v4 = vadd.f32 %v3473_v11, %v2187_v37  ;;  %v2261_v39 = vadd.f32 %v3473_v11, %v2260_v38 }
 0x1ef   : > { %v2134_v40 = vmax.f32 %v2054_v36, %v2127_v35 }
 0x1f0   : > { %v2208_v41 = vmax.f32 %v2188_v4, 0.0  ;;  %v2281_v42 = vmax.f32 %v2261_v39, 0.0  ;;  %v2340_v5 = vpop.f32.mrf.mxu2  ;;  %v2420_v43 = vpop.f32.mrf.mxu3 }
 0x1f1   : > { %2141 = vst.msk [vmem:[%s3183_s28 + $0x148] sm:$0xff] %vm534_vm2, %v2134_v40  ;;  %v2341_v44 = vadd.f32 %v3473_v11, %v2340_v5  ;;  %v2421_v45 = vadd.f32 %v3473_v11, %v2420_v43 }
 0x1f2   : > { %v2288_v46 = vmax.f32 %v2208_v41, %v2281_v42 }
 0x1f3   : > { %v2361_v47 = vmax.f32 %v2341_v44, 0.0  ;;  %v2441_v48 = vmax.f32 %v2421_v45, 0.0 }
 0x1f5   : > { %v2368_v49 = vmax.f32 %v2288_v46, %v2361_v47  ;;  %v2190_v50 = vpop.f32.mrf.mxu0  ;;  %v2263_v51 = vpop.f32.mrf.mxu1 }
 0x1f6   : > { %v2191_v52 = vadd.f32 %v3473_v11, %v2190_v50  ;;  %v2264_v53 = vadd.f32 %v3473_v11, %v2263_v51 }
 0x1f7   : > { %v2448_v54 = vmax.f32 %v2368_v49, %v2441_v48 }
 0x1f8   : > { %v2209_v6 = vmax.f32 %v2191_v52, 0.0  ;;  %v2282_v55 = vmax.f32 %v2264_v53, 0.0  ;;  %v2343_v56 = vpop.f32.mrf.mxu2  ;;  %v2423_v57 = vpop.f32.mrf.mxu3 }
 0x1f9   : > { %2455 = vst.msk [vmem:[%s3183_s28 + $0x150] sm:$0xff] %vm534_vm2, %v2448_v54  ;;  %v2344_v59 = vadd.f32 %v3738_v58, %v2343_v56  ;;  %v2424_v60 = vadd.f32 %v3738_v58, %v2423_v57 }
 0x1fa   : > { %v2289_v61 = vmax.f32 %v2209_v6, %v2282_v55 }
 0x1fb   : > { %v2362_v62 = vmax.f32 %v2344_v59, 0.0  ;;  %v2442_v63 = vmax.f32 %v2424_v60, 0.0 }
 0x1fd   : > { %v2369_v7 = vmax.f32 %v2289_v61, %v2362_v62  ;;  %v2193_v8 = vpop.f32.mrf.mxu0  ;;  %v2266_v11 = vpop.f32.mrf.mxu1 }
 0x1fe   : > { %v2194_v9 = vadd.f32 %v3738_v58, %v2193_v8  ;;  %v2267_v10 = vadd.f32 %v3738_v58, %v2266_v11 }
 0x1ff   : > { %v2449_v12 = vmax.f32 %v2369_v7, %v2442_v63 }
 0x200   : > { %v2210_v13 = vmax.f32 %v2194_v9, 0.0  ;;  %v2283_v15 = vmax.f32 %v2267_v10, 0.0  ;;  %v2346_v14 = vpop.f32.mrf.mxu2  ;;  %v2426_v16 = vpop.f32.mrf.mxu3 }
 0x201   : > { %2456 = vst.msk [vmem:[%s3183_s28 + $0x158] sm:$0xff] %vm534_vm2, %v2449_v12  ;;  %v2347_v0 = vadd.f32 %v3738_v58, %v2346_v14  ;;  %v2427_v17 = vadd.f32 %v3738_v58, %v2426_v16 }
 0x202   : > { %v2290_v18 = vmax.f32 %v2210_v13, %v2283_v15 }
 0x203   : > { %v2363_v19 = vmax.f32 %v2347_v0, 0.0  ;;  %v2443_v20 = vmax.f32 %v2427_v17, 0.0 }
 0x205   : > { %v2370_v21 = vmax.f32 %v2290_v18, %v2363_v19  ;;  %v2196_v22 = vpop.f32.mrf.mxu0  ;;  %v2269_v1 = vpop.f32.mrf.mxu1 }
 0x206   : > { %v2197_v23 = vadd.f32 %v3738_v58, %v2196_v22  ;;  %v2270_v24 = vadd.f32 %v3738_v58, %v2269_v1 }
 0x207   : > { %v2450_v25 = vmax.f32 %v2370_v21, %v2443_v20 }
 0x208   : > { %v2211_v26 = vmax.f32 %v2197_v23, 0.0  ;;  %v2284_v27 = vmax.f32 %v2270_v24, 0.0  ;;  %v2349_v2 = vpop.f32.mrf.mxu2  ;;  %v2429_v28 = vpop.f32.mrf.mxu3 }
 0x209   : > { %2457 = vst.msk [vmem:[%s3183_s28 + $0x160] sm:$0xff] %vm534_vm2, %v2450_v25  ;;  %v2350_v29 = vadd.f32 %v3738_v58, %v2349_v2  ;;  %v2430_v30 = vadd.f32 %v3738_v58, %v2429_v28 }
 0x20a   : > { %v2291_v31 = vmax.f32 %v2211_v26, %v2284_v27 }
 0x20b   : > { %v2364_v32 = vmax.f32 %v2350_v29, 0.0  ;;  %v2444_v3 = vmax.f32 %v2430_v30, 0.0 }
 0x20d   : > { %v2371_v33 = vmax.f32 %v2291_v31, %v2364_v32  ;;  %v2199_v34 = vpop.f32.mrf.mxu0  ;;  %v2272_v35 = vpop.f32.mrf.mxu1 }
 0x20e   : > { %v2200_v36 = vadd.f32 %v3738_v58, %v2199_v34  ;;  %v2273_v37 = vadd.f32 %v3738_v58, %v2272_v35 }
 0x20f   : > { %v2451_v38 = vmax.f32 %v2371_v33, %v2444_v3 }
 0x210   : > { %v2212_v4 = vmax.f32 %v2200_v36, 0.0  ;;  %v2285_v39 = vmax.f32 %v2273_v37, 0.0  ;;  %v2352_v40 = vpop.f32.mrf.mxu2  ;;  %v2432_v41 = vpop.f32.mrf.mxu3 }
 0x211   : > { %2458 = vst.msk [vmem:[%s3183_s28 + $0x168] sm:$0xff] %vm534_vm2, %v2451_v38  ;;  %v2353_v42 = vadd.f32 %v3738_v58, %v2352_v40  ;;  %v2433_v5 = vadd.f32 %v3738_v58, %v2432_v41 }
 0x212   : > { %v2292_v43 = vmax.f32 %v2212_v4, %v2285_v39 }
 0x213   : > { %v2365_v44 = vmax.f32 %v2353_v42, 0.0  ;;  %v2445_v45 = vmax.f32 %v2433_v5, 0.0 }
 0x215   : > { %v2372_v46 = vmax.f32 %v2292_v43, %v2365_v44  ;;  %v2202_v47 = vpop.f32.mrf.mxu0  ;;  %v2275_v48 = vpop.f32.mrf.mxu1 }
 0x216   : > { %v2203_v49 = vadd.f32 %v3738_v58, %v2202_v47  ;;  %v2276_v50 = vadd.f32 %v3738_v58, %v2275_v48 }
 0x217   : > { %v2452_v51 = vmax.f32 %v2372_v46, %v2445_v45 }
 0x218   : > { %v2213_v52 = vmax.f32 %v2203_v49, 0.0  ;;  %v2286_v53 = vmax.f32 %v2276_v50, 0.0  ;;  %v2355_v54 = vpop.f32.mrf.mxu2  ;;  %v2435_v6 = vpop.f32.mrf.mxu3 }
 0x219   : > { %2459 = vst.msk [vmem:[%s3183_s28 + $0x170] sm:$0xff] %vm534_vm2, %v2452_v51  ;;  %v2356_v55 = vadd.f32 %v3738_v58, %v2355_v54  ;;  %v2436_v56 = vadd.f32 %v3738_v58, %v2435_v6 }
 0x21a   : > { %v2293_v57 = vmax.f32 %v2213_v52, %v2286_v53 }
 0x21b   : > { %v2366_v59 = vmax.f32 %v2356_v55, 0.0  ;;  %v2446_v60 = vmax.f32 %v2436_v56, 0.0 }
 0x21d   : > { %v2373_v61 = vmax.f32 %v2293_v57, %v2366_v59  ;;  %v2205_v62 = vpop.f32.mrf.mxu0  ;;  %v2278_v63 = vpop.f32.mrf.mxu1 }
 0x21e   : > { %v2206_v7 = vadd.f32 %v3738_v58, %v2205_v62  ;;  %v2279_v8 = vadd.f32 %v3738_v58, %v2278_v63 }
 0x21f   : > { %v2453_v11 = vmax.f32 %v2373_v61, %v2446_v60 }
 0x220   : > { %v2214_v9 = vmax.f32 %v2206_v7, 0.0  ;;  %v2287_v10 = vmax.f32 %v2279_v8, 0.0  ;;  %v2358_v12 = vpop.f32.mrf.mxu2  ;;  %v2438_v13 = vpop.f32.mrf.mxu3 }
 0x221   : > { %2460 = vst.msk [vmem:[%s3183_s28 + $0x178] sm:$0xff] %vm534_vm2, %v2453_v11  ;;  %v2359_v15 = vadd.f32 %v3738_v58, %v2358_v12  ;;  %v2439_v14 = vadd.f32 %v3738_v58, %v2438_v13 }
 0x222   : > { %v2294_v16 = vmax.f32 %v2214_v9, %v2287_v10 }
 0x223   : > { %v2367_v0 = vmax.f32 %v2359_v15, 0.0  ;;  %v2447_v17 = vmax.f32 %v2439_v14, 0.0 }
 0x225   : > { %v2374_v18 = vmax.f32 %v2294_v16, %v2367_v0 }
 0x227   : > { %v2454_v19 = vmax.f32 %v2374_v18, %v2447_v17 }
 0x229   : > { %2461 = vst.msk [vmem:[%s3183_s28 + $0x180] sm:$0xff] %vm534_vm2, %v2454_v19 }
 0x22a PF: > { %s13_s12 = sadd.s32 1, %s2799_s12  }
 0x22b   : > { %p10_p4 = scmp.ge.s32.totalorder %s13_s12, 11  }
 0x22d   :  { %12 = sbr.rel (!%p10_p4) target bundleno = 1 (0x1), region = 68 }

// kernel: multistream_cnn_forward.4
= control target key start
LH: loop header
LB: loop body
LE: loop exit
PB: predicated region body
PF: predicated region fallthrough
CT: control target
= control target key end

     0   :  { %s2322_s18 = smov 0   ;;  %s2846_s0 = inlined_call_operand.vmem [shape: f32[9,200,500], index: 0, kind: input, shape index: {}]   ;;  %s2847_s1 = inlined_call_operand.vmem [shape: f32[9,500,50], index: 1, kind: input, shape index: {}]   ;;  %s2848_s2 = inlined_call_operand.vmem [shape: f32[9,1,50], index: 2, kind: input, shape index: {}]   ;;  %s2849_s3 = inlined_call_operand.vmem [shape: f32[9,25,50,32], index: 3, kind: input, shape index: {}]   ;;  %s2850_s4 = inlined_call_operand.vmem [shape: f32[9,1,32], index: 4, kind: input, shape index: {}]   ;;  %s2851_s5 = inlined_call_operand.vmem [shape: f32[9,2,32], index: 5, kind: output, shape index: {}]  }
   0x1 LB: > { %s2016_s19 = sadd.s32 4294967295, %s2290_s18   ;;  %p2020_p0 = scmp.ge.s32.totalorder %s2290_s18, 1  ;;  %s2290_s18 = sphi %s2322_s18, %s15_s18  }
   0x2   : > { %p223_p1 = scmp.lt.s32.totalorder %s2290_s18, 10 }
   0x4   : > { %p224_p2 = pnand %p2020_p0, %p223_p1 }
   0x5   : > { %p266_p3 = scmp.lt.s32.totalorder (!%p224_p2), %s2016_s19, 8 }
   0x6   : > { %227 = sbr.rel (%p224_p2) target bundleno = 575 (0x23f), region = 40 }
   0xb   : > { %s2853_s19 = smov (!%p266_p3, %s2016_s19), 8  ;;  %vm534_vm0 = vcmask 1043456   ;;  %vm458_vm1 = vcmask 949248   ;;  %vm1029_vm2 = vcmask 1041408   ;;  %vm931_vm3 = vcmask 408576  }
   0xc   : > { %s2272_s20 = smul.u32 504, %s2853_s19  ;;  %s278_s30 = scalar_lea.vmem %s2848_s2, %s2853_s19  ;;  %vm1012_vm4 = vcmask 402432   ;;  %vm1919_vm5 = vcmask 254976  }
   0xd   : > { %s2271_s24 = smul.u32 800, %s2853_s19  ;;  %s286_s14 = scalar_lea.vmem %s2850_s4, %s2853_s19 }
   0xe   : > { %s2336_s23 = scalar_lea.vmem %s2847_s1, %s2272_s20  ;;  %s2273_s6 = smul.u32 1400, %s2853_s19 }
   0xf   : > { %v438_v0 = vld [vmem:[%s2336_s23 + $0x178] sm:$0xff]  ;;  %v437_v2 = vld [vmem:[%s2336_s23 + $0x170] sm:$0xff]  ;;  %v436_v5 = vld [vmem:[%s2336_s23 + $0x168] sm:$0xff]  ;;  %s2397_s27 = scalar_lea.vmem %s2846_s0, %s2271_s24  ;;  %s2024_s17 = sshll.u32 %s2853_s19, 1 }
  0x10   : > { %v406_v1 = vld [vmem:[%s2336_s23 + $0x78] sm:$0xff]  ;;  %722 = vmatpush.msra.mxu2 %v438_v0  ;;  %v405_v3 = vld [vmem:[%s2336_s23 + $0x70] sm:$0xff]  ;;  %v404_v7 = vld [vmem:[%s2336_s23 + $0x68] sm:$0xff]  ;;  %s2475_s9 = scalar_lea.vmem %s2849_s3, %s2273_s6  ;;  %s290_s22 = scalar_lea.vmem %s2851_s5, %s2024_s17 }
  0x11   : > { %538 = vmatpush.msra.mxu0 %v406_v1  ;;  %v422_v4 = vld [vmem:[%s2336_s23 + $0xf8] sm:$0xff]  ;;  %v453_v6 = vld [vmem:[%s2336_s23 + $0x1f0] sm:$0xf]  ;;  %v452_v9 = vld [vmem:[%s2336_s23 + $0x1e8] sm:$0xff] }
  0x12   : > { %630 = vmatpush.msra.mxu1 %v422_v4  ;;  %v421_v8 = vld [vmem:[%s2336_s23 + $0xf0] sm:$0xff]  ;;  %723 = vmatpush.msra.mxu2 %v437_v2  ;;  %v435_v10 = vld [vmem:[%s2336_s23 + $0x160] sm:$0xff]  ;;  %v420_v12 = vld [vmem:[%s2336_s23 + $0xe8] sm:$0xff] }
  0x13   : > { %539 = vmatpush.msra.mxu0 %v405_v3  ;;  %2025 = vmatpush.msk.msra.mxu3 %vm534_vm0, %v453_v6  ;;  %v403_v11 = vld [vmem:[%s2336_s23 + $0x60] sm:$0xff]  ;;  %v434_v15 = vld [vmem:[%s2336_s23 + $0x158] sm:$0xff]  ;;  %v433_v19 = vld [vmem:[%s2336_s23 + $0x150] sm:$0xff] }
  0x14   : > { %631 = vmatpush.msra.mxu1 %v421_v8  ;;  %724 = vmatpush.msra.mxu2 %v436_v5  ;;  %v451_v13 = vld [vmem:[%s2336_s23 + $0x1e0] sm:$0xff]  ;;  %v402_v16 = vld [vmem:[%s2336_s23 + $0x58] sm:$0xff]  ;;  %v401_v20 = vld [vmem:[%s2336_s23 + $0x50] sm:$0xff] }
  0x15   : > { %540 = vmatpush.msra.mxu0 %v404_v7  ;;  %v419_v14 = vld [vmem:[%s2336_s23 + $0xe0] sm:$0xff]  ;;  %816 = vmatpush.msra.mxu3 %v452_v9  ;;  %v450_v17 = vld [vmem:[%s2336_s23 + $0x1d8] sm:$0xff]  ;;  %v449_v21 = vld [vmem:[%s2336_s23 + $0x1d0] sm:$0xff] }
  0x16   : > { %632 = vmatpush.msra.mxu1 %v420_v12  ;;  %725 = vmatpush.msra.mxu2 %v435_v10  ;;  %v418_v18 = vld [vmem:[%s2336_s23 + $0xd8] sm:$0xff]  ;;  %v417_v22 = vld [vmem:[%s2336_s23 + $0xd0] sm:$0xff]  ;;  %v432_v23 = vld [vmem:[%s2336_s23 + $0x148] sm:$0xff] }
  0x17   : > { %541 = vmatpush.msra.mxu0 %v403_v11  ;;  %817 = vmatpush.msra.mxu3 %v451_v13  ;;  %v400_v24 = vld [vmem:[%s2336_s23 + $0x48] sm:$0xff]  ;;  %v431_v27 = vld [vmem:[%s2336_s23 + $0x140] sm:$0xff]  ;;  %v430_v31 = vld [vmem:[%s2336_s23 + $0x138] sm:$0xff] }
  0x18   : > { %633 = vmatpush.msra.mxu1 %v419_v14  ;;  %726 = vmatpush.msra.mxu2 %v434_v15  ;;  %v448_v25 = vld [vmem:[%s2336_s23 + $0x1c8] sm:$0xff]  ;;  %v399_v28 = vld [vmem:[%s2336_s23 + $0x40] sm:$0xff]  ;;  %v398_v32 = vld [vmem:[%s2336_s23 + $0x38] sm:$0xff] }
  0x19   : > { %542 = vmatpush.msra.mxu0 %v402_v16  ;;  %818 = vmatpush.msra.mxu3 %v450_v17  ;;  %v416_v26 = vld [vmem:[%s2336_s23 + $0xc8] sm:$0xff]  ;;  %v447_v29 = vld [vmem:[%s2336_s23 + $0x1c0] sm:$0xff]  ;;  %v446_v33 = vld [vmem:[%s2336_s23 + $0x1b8] sm:$0xff] }
  0x1a   : > { %634 = vmatpush.msra.mxu1 %v418_v18  ;;  %727 = vmatpush.msra.mxu2 %v433_v19  ;;  %v415_v30 = vld [vmem:[%s2336_s23 + $0xc0] sm:$0xff]  ;;  %v414_v34 = vld [vmem:[%s2336_s23 + $0xb8] sm:$0xff]  ;;  %v429_v35 = vld [vmem:[%s2336_s23 + $0x130] sm:$0xff] }
  0x1b   : > { %543 = vmatpush.msra.mxu0 %v401_v20  ;;  %819 = vmatpush.msra.mxu3 %v449_v21  ;;  %v397_v36 = vld [vmem:[%s2336_s23 + $0x30] sm:$0xff]  ;;  %v428_v39 = vld [vmem:[%s2336_s23 + $0x128] sm:$0xff]  ;;  %v427_v43 = vld [vmem:[%s2336_s23 + $0x120] sm:$0xff] }
  0x1c   : > { %635 = vmatpush.msra.mxu1 %v417_v22  ;;  %728 = vmatpush.msra.mxu2 %v432_v23  ;;  %v445_v37 = vld [vmem:[%s2336_s23 + $0x1b0] sm:$0xff]  ;;  %v396_v40 = vld [vmem:[%s2336_s23 + $0x28] sm:$0xff]  ;;  %v395_v44 = vld [vmem:[%s2336_s23 + $0x20] sm:$0xff] }
  0x1d   : > { %544 = vmatpush.msra.mxu0 %v400_v24  ;;  %820 = vmatpush.msra.mxu3 %v448_v25  ;;  %v413_v38 = vld [vmem:[%s2336_s23 + $0xb0] sm:$0xff]  ;;  %v444_v41 = vld [vmem:[%s2336_s23 + $0x1a8] sm:$0xff]  ;;  %v443_v45 = vld [vmem:[%s2336_s23 + $0x1a0] sm:$0xff] }
  0x1e   : > { %636 = vmatpush.msra.mxu1 %v416_v26  ;;  %729 = vmatpush.msra.mxu2 %v431_v27  ;;  %v412_v42 = vld [vmem:[%s2336_s23 + $0xa8] sm:$0xff]  ;;  %v411_v46 = vld [vmem:[%s2336_s23 + $0xa0] sm:$0xff]  ;;  %v426_v47 = vld [vmem:[%s2336_s23 + $0x118] sm:$0xff] }
  0x1f   : > { %545 = vmatpush.msra.mxu0 %v399_v28  ;;  %821 = vmatpush.msra.mxu3 %v447_v29  ;;  %v394_v48 = vld [vmem:[%s2336_s23 + $0x18] sm:$0xff]  ;;  %v425_v51 = vld [vmem:[%s2336_s23 + $0x110] sm:$0xff]  ;;  %v424_v55 = vld [vmem:[%s2336_s23 + $0x108] sm:$0xff] }
  0x20   : > { %637 = vmatpush.msra.mxu1 %v415_v30  ;;  %730 = vmatpush.msra.mxu2 %v430_v31  ;;  %v442_v49 = vld [vmem:[%s2336_s23 + $0x198] sm:$0xff]  ;;  %v393_v52 = vld [vmem:[%s2336_s23 + $0x10] sm:$0xff]  ;;  %v392_v56 = vld [vmem:[%s2336_s23 + $0x8] sm:$0xff] }
  0x21   : > { %546 = vmatpush.msra.mxu0 %v398_v32  ;;  %822 = vmatpush.msra.mxu3 %v446_v33  ;;  %v410_v50 = vld [vmem:[%s2336_s23 + $0x98] sm:$0xff]  ;;  %v441_v53 = vld [vmem:[%s2336_s23 + $0x190] sm:$0xff]  ;;  %v440_v57 = vld [vmem:[%s2336_s23 + $0x188] sm:$0xff] }
  0x22   : > { %638 = vmatpush.msra.mxu1 %v414_v34  ;;  %731 = vmatpush.msra.mxu2 %v429_v35  ;;  %v409_v54 = vld [vmem:[%s2336_s23 + $0x90] sm:$0xff]  ;;  %v408_v58 = vld [vmem:[%s2336_s23 + $0x88] sm:$0xff]  ;;  %v423_v59 = vld [vmem:[%s2336_s23 + $0x100] sm:$0xff] }
  0x23   : > { %547 = vmatpush.msra.mxu0 %v397_v36  ;;  %823 = vmatpush.msra.mxu3 %v445_v37  ;;  %v391_v60 = vld [vmem:[%s2336_s23] sm:$0xff]  ;;  %v293_v61 = vld [vmem:[%s2397_s27 + $0x10] sm:$0xff]  ;;  %v294_v0 = vld [vmem:[%s2397_s27 + $0x18] sm:$0xff] }
  0x24   : > { %639 = vmatpush.msra.mxu1 %v413_v38  ;;  %732 = vmatpush.msra.mxu2 %v428_v39  ;;  %v439_v62 = vld [vmem:[%s2336_s23 + $0x180] sm:$0xff]  ;;  %v292_v2 = vld [vmem:[%s2397_s27 + $0x8] sm:$0xff]  ;;  %v297_v3 = vld [vmem:[%s2397_s27 + $0x30] sm:$0xff] }
  0x25   : > { %548 = vmatpush.msra.mxu0 %v396_v40  ;;  %824 = vmatpush.msra.mxu3 %v444_v41  ;;  %v291_v63 = vld [vmem:[%s2397_s27] sm:$0xff]  ;;  %v298_v5 = vld [vmem:[%s2397_s27 + $0x38] sm:$0xff]  ;;  %v296_v6 = vld [vmem:[%s2397_s27 + $0x28] sm:$0xff] }
  0x26   : > { %640 = vmatpush.msra.mxu1 %v412_v42  ;;  %733 = vmatpush.msra.mxu2 %v427_v43  ;;  %v407_v1 = vld [vmem:[%s2336_s23 + $0x80] sm:$0xff]  ;;  %v301_v7 = vld [vmem:[%s2397_s27 + $0x50] sm:$0xff]  ;;  %v302_v9 = vld [vmem:[%s2397_s27 + $0x58] sm:$0xff] }
  0x27   : > { %549 = vmatpush.msra.mxu0 %v395_v44  ;;  %825 = vmatpush.msra.mxu3 %v443_v45  ;;  %v295_v4 = vld [vmem:[%s2397_s27 + $0x20] sm:$0xff]  ;;  %v300_v10 = vld [vmem:[%s2397_s27 + $0x48] sm:$0xff]  ;;  %v305_v11 = vld [vmem:[%s2397_s27 + $0x70] sm:$0xff] }
  0x28   : > { %641 = vmatpush.msra.mxu1 %v411_v46  ;;  %734 = vmatpush.msra.mxu2 %v426_v47  ;;  %v299_v8 = vld [vmem:[%s2397_s27 + $0x40] sm:$0xff]  ;;  %v306_v13 = vld [vmem:[%s2397_s27 + $0x78] sm:$0xff]  ;;  %v304_v14 = vld [vmem:[%s2397_s27 + $0x68] sm:$0xff] }
  0x29   : > { %550 = vmatpush.msra.mxu0 %v394_v48  ;;  %826 = vmatpush.msra.mxu3 %v442_v49  ;;  %v303_v12 = vld [vmem:[%s2397_s27 + $0x60] sm:$0xff]  ;;  %v309_v15 = vld [vmem:[%s2397_s27 + $0x90] sm:$0xff]  ;;  %v310_v17 = vld [vmem:[%s2397_s27 + $0x98] sm:$0xff] }
  0x2a   : > { %642 = vmatpush.msra.mxu1 %v410_v50  ;;  %735 = vmatpush.msra.mxu2 %v425_v51  ;;  %v307_v16 = vld [vmem:[%s2397_s27 + $0x80] sm:$0xff]  ;;  %v308_v18 = vld [vmem:[%s2397_s27 + $0x88] sm:$0xff]  ;;  %v313_v19 = vld [vmem:[%s2397_s27 + $0xb0] sm:$0xff] }
  0x2b   : > { %551 = vmatpush.msra.mxu0 %v393_v52  ;;  %827 = vmatpush.msra.mxu3 %v441_v53  ;;  %v311_v20 = vld [vmem:[%s2397_s27 + $0xa0] sm:$0xff]  ;;  %v314_v21 = vld [vmem:[%s2397_s27 + $0xb8] sm:$0xff]  ;;  %v312_v22 = vld [vmem:[%s2397_s27 + $0xa8] sm:$0xff] }
  0x2c   : > { %643 = vmatpush.msra.mxu1 %v409_v54  ;;  %736 = vmatpush.msra.mxu2 %v424_v55  ;;  %v317_v23 = vld [vmem:[%s2397_s27 + $0xd0] sm:$0xff]  ;;  %v315_v24 = vld [vmem:[%s2397_s27 + $0xc0] sm:$0xff]  ;;  %v318_v25 = vld [vmem:[%s2397_s27 + $0xd8] sm:$0xff] }
  0x2d   : > { %552 = vmatpush.msra.mxu0 %v392_v56  ;;  %828 = vmatpush.msra.mxu3 %v440_v57  ;;  %v316_v26 = vld [vmem:[%s2397_s27 + $0xc8] sm:$0xff]  ;;  %v321_v27 = vld [vmem:[%s2397_s27 + $0xf0] sm:$0xff]  ;;  %v319_v28 = vld [vmem:[%s2397_s27 + $0xe0] sm:$0xff] }
  0x2e   : > { %644 = vmatpush.msra.mxu1 %v408_v58  ;;  %737 = vmatpush.msra.mxu2 %v423_v59  ;;  %v322_v29 = vld [vmem:[%s2397_s27 + $0xf8] sm:$0xff]  ;;  %v320_v30 = vld [vmem:[%s2397_s27 + $0xe8] sm:$0xff]  ;;  %v325_v31 = vld [vmem:[%s2397_s27 + $0x110] sm:$0xff] }
  0x2f   : > { %553 = vmatpush.msra.mxu0 %v391_v60  ;;  %738 = vmatmul.f32.vlgmr.msra.gmra.mxu2 %v293_v61  ;;  %v323_v32 = vld [vmem:[%s2397_s27 + $0x100] sm:$0xff]  ;;  %v326_v33 = vld [vmem:[%s2397_s27 + $0x118] sm:$0xff]  ;;  %v324_v34 = vld [vmem:[%s2397_s27 + $0x108] sm:$0xff] }
  0x30   : > { %829 = vmatpush.msra.mxu3 %v439_v62  ;;  %554 = vmatmul.f32.vlgmr.msra.gmra.mxu0 %v291_v63  ;;  %v329_v35 = vld [vmem:[%s2397_s27 + $0x130] sm:$0xff]  ;;  %v327_v36 = vld [vmem:[%s2397_s27 + $0x120] sm:$0xff]  ;;  %v330_v37 = vld [vmem:[%s2397_s27 + $0x138] sm:$0xff] }
  0x31   : > { %2026 = vmatmul.msk.f32.vlgmr.msra.gmra.mxu3 %vm458_vm1, %v294_v0  ;;  %645 = vmatpush.msra.mxu1 %v407_v1  ;;  %v328_v38 = vld [vmem:[%s2397_s27 + $0x128] sm:$0xff]  ;;  %v333_v39 = vld [vmem:[%s2397_s27 + $0x150] sm:$0xff]  ;;  %v331_v40 = vld [vmem:[%s2397_s27 + $0x140] sm:$0xff] }
  0x32   : > { %646 = vmatmul.f32.vlgmr.msra.gmra.mxu1 %v292_v2  ;;  %v334_v41 = vld [vmem:[%s2397_s27 + $0x158] sm:$0xff]  ;;  %v332_v42 = vld [vmem:[%s2397_s27 + $0x148] sm:$0xff]  ;;  %v337_v43 = vld [vmem:[%s2397_s27 + $0x170] sm:$0xff] }
  0x33   : > { %v335_v44 = vld [vmem:[%s2397_s27 + $0x160] sm:$0xff]  ;;  %v338_v45 = vld [vmem:[%s2397_s27 + $0x178] sm:$0xff]  ;;  %v336_v46 = vld [vmem:[%s2397_s27 + $0x168] sm:$0xff] }
  0x34   : > { %v341_v47 = vld [vmem:[%s2397_s27 + $0x190] sm:$0xff]  ;;  %v339_v48 = vld [vmem:[%s2397_s27 + $0x180] sm:$0xff]  ;;  %v342_v49 = vld [vmem:[%s2397_s27 + $0x198] sm:$0xff] }
  0x35   : > { %v1025_v50 = vld [vmem:[%s2475_s9 + $0x30] sm:$0x3]  ;;  %v340_v51 = vld [vmem:[%s2397_s27 + $0x188] sm:$0xff]  ;;  %v343_v53 = vld [vmem:[%s2397_s27 + $0x1a0] sm:$0xff] }
  0x36   : > { %2051 = vmatpush.msk.msrb.mxu3 %vm1029_vm2, %v1025_v50  ;;  %v345_v52 = vld [vmem:[%s2397_s27 + $0x1b0] sm:$0xff]  ;;  %v346_v54 = vld [vmem:[%s2397_s27 + $0x1b8] sm:$0xff]  ;;  %v344_v55 = vld [vmem:[%s2397_s27 + $0x1a8] sm:$0xff] }
  0x37   : > { %741 = vmatmul.f32.gmra.mxu2 %v297_v3  ;;  %v349_v56 = vld [vmem:[%s2397_s27 + $0x1d0] sm:$0xff]  ;;  %v347_v57 = vld [vmem:[%s2397_s27 + $0x1c0] sm:$0xff]  ;;  %v350_v58 = vld [vmem:[%s2397_s27 + $0x1d8] sm:$0xff] }
  0x38   : > { %557 = vmatmul.f32.gmra.mxu0 %v295_v4  ;;  %v348_v59 = vld [vmem:[%s2397_s27 + $0x1c8] sm:$0xff]  ;;  %v2077_v60 = vld [vmem:[%s2475_s9 + $0xd8] sm:$0x3]  ;;  %v2068_v62 = vld [vmem:[%s2475_s9 + $0xa0] sm:$0x3] }
  0x39   : > { %2027 = vmatmul.msk.f32.gmra.mxu3 %vm458_vm1, %v298_v5  ;;  %v2059_v61 = vld [vmem:[%s2475_s9 + $0x68] sm:$0x3]  ;;  %2078 = vmatpush.msk.msrb.mxu2 %vm1029_vm2, %v2077_v60  ;;  %v353_v63 = vld [vmem:[%s2397_s27 + $0x1f0] sm:$0xff]  ;;  %v351_v0 = vld [vmem:[%s2397_s27 + $0x1e0] sm:$0xff] }
  0x3a   : > { %649 = vmatmul.f32.gmra.mxu1 %v296_v6  ;;  %2060 = vmatpush.msk.msrb.mxu0 %vm1029_vm2, %v2059_v61  ;;  %v354_v1 = vld [vmem:[%s2397_s27 + $0x1f8] sm:$0xff]  ;;  %v352_v2 = vld [vmem:[%s2397_s27 + $0x1e8] sm:$0xff]  ;;  %v2510_v3 = vld [vmem:[%s278_s30] ss:$0 sm:$0xff] }
  0x3b   : > { %2069 = vmatpush.msk.msrb.mxu1 %vm1029_vm2, %v2068_v62  ;;  %v357_v4 = vld [vmem:[%s2397_s27 + $0x210] sm:$0xff]  ;;  %v355_v6 = vld [vmem:[%s2397_s27 + $0x200] sm:$0xff]  ;;  %v374_v62 = vld [vmem:[%s2397_s27 + $0x298] sm:$0xff] }
  0x3c   : > { %v371_v61 = vld [vmem:[%s2397_s27 + $0x280] sm:$0xff] }
  0x3f   : > { %744 = vmatmul.f32.gmra.mxu2 %v301_v7  ;;  %v358_v7 = vld [vmem:[%s2397_s27 + $0x218] sm:$0xff] }
  0x40   : > { %560 = vmatmul.f32.gmra.mxu0 %v299_v8 }
  0x41   : > { %2028 = vmatmul.msk.f32.gmra.mxu3 %vm458_vm1, %v302_v9 }
  0x42   : > { %652 = vmatmul.f32.gmra.mxu1 %v300_v10  ;;  %v356_v10 = vld [vmem:[%s2397_s27 + $0x208] sm:$0xff] }
  0x47   : > { %747 = vmatmul.f32.gmra.mxu2 %v305_v11 }
  0x48   : > { %563 = vmatmul.f32.gmra.mxu0 %v303_v12  ;;  %v1024_v12 = vld [vmem:[%s2475_s9 + $0x28] sm:$0xff] }
  0x49   : > { %2029 = vmatmul.msk.f32.gmra.mxu3 %vm458_vm1, %v306_v13 }
  0x4a   : > { %655 = vmatmul.f32.gmra.mxu1 %v304_v14  ;;  %1043 = vmatpush.msrb.mxu3 %v1024_v12  ;;  %v375_v12 = vld [vmem:[%s2397_s27 + $0x2a0] sm:$0xff] }
  0x4f   : > { %750 = vmatmul.f32.gmra.mxu2 %v309_v15 }
  0x50   : > { %566 = vmatmul.f32.gmra.mxu0 %v307_v16  ;;  %v361_v16 = vld [vmem:[%s2397_s27 + $0x230] sm:$0xff] }
  0x51   : > { %2030 = vmatmul.msk.f32.gmra.mxu3 %vm458_vm1, %v310_v17 }
  0x52   : > { %658 = vmatmul.f32.gmra.mxu1 %v308_v18 }
  0x57   : > { %753 = vmatmul.f32.gmra.mxu2 %v313_v19  ;;  %v359_v19 = vld [vmem:[%s2397_s27 + $0x220] sm:$0xff] }
  0x58   : > { %569 = vmatmul.f32.gmra.mxu0 %v311_v20  ;;  %v362_v20 = vld [vmem:[%s2397_s27 + $0x238] sm:$0xff] }
  0x59   : > { %2031 = vmatmul.msk.f32.gmra.mxu3 %vm458_vm1, %v314_v21 }
  0x5a   : > { %661 = vmatmul.f32.gmra.mxu1 %v312_v22 }
  0x5f   : > { %756 = vmatmul.f32.gmra.mxu2 %v317_v23 }
  0x60   : > { %572 = vmatmul.f32.gmra.mxu0 %v315_v24  ;;  %v360_v24 = vld [vmem:[%s2397_s27 + $0x228] sm:$0xff] }
  0x61   : > { %2032 = vmatmul.msk.f32.gmra.mxu3 %vm458_vm1, %v318_v25 }
  0x62   : > { %664 = vmatmul.f32.gmra.mxu1 %v316_v26  ;;  %v2076_v26 = vld [vmem:[%s2475_s9 + $0xd0] sm:$0xff] }
  0x63   : > { %1151 = vmatpush.msrb.mxu2 %v2076_v26 }
  0x67   : > { %759 = vmatmul.f32.gmra.mxu2 %v321_v27  ;;  %v2058_v27 = vld [vmem:[%s2475_s9 + $0x60] sm:$0xff] }
  0x68   : > { %575 = vmatmul.f32.gmra.mxu0 %v319_v28 }
  0x69   : > { %2033 = vmatmul.msk.f32.gmra.mxu3 %vm458_vm1, %v322_v29  ;;  %1079 = vmatpush.msrb.mxu0 %v2058_v27 }
  0x6a   : > { %667 = vmatmul.f32.gmra.mxu1 %v320_v30 }
  0x6f   : > { %762 = vmatmul.f32.gmra.mxu2 %v325_v31  ;;  %v365_v31 = vld [vmem:[%s2397_s27 + $0x250] sm:$0xff] }
  0x70   : > { %578 = vmatmul.f32.gmra.mxu0 %v323_v32 }
  0x71   : > { %2034 = vmatmul.msk.f32.gmra.mxu3 %vm458_vm1, %v326_v33 }
  0x72   : > { %670 = vmatmul.f32.gmra.mxu1 %v324_v34  ;;  %v363_v34 = vld [vmem:[%s2397_s27 + $0x240] sm:$0xff] }
  0x77   : > { %765 = vmatmul.f32.gmra.mxu2 %v329_v35  ;;  %v366_v35 = vld [vmem:[%s2397_s27 + $0x258] sm:$0xff] }
  0x78   : > { %581 = vmatmul.f32.gmra.mxu0 %v327_v36 }
  0x79   : > { %2035 = vmatmul.msk.f32.gmra.mxu3 %vm458_vm1, %v330_v37 }
  0x7a   : > { %673 = vmatmul.f32.gmra.mxu1 %v328_v38 }
  0x7f   : > { %768 = vmatmul.f32.gmra.mxu2 %v333_v39  ;;  %v364_v39 = vld [vmem:[%s2397_s27 + $0x248] sm:$0xff] }
  0x80   : > { %584 = vmatmul.f32.gmra.mxu0 %v331_v40 }
  0x81   : > { %2036 = vmatmul.msk.f32.gmra.mxu3 %vm458_vm1, %v334_v41  ;;  %v2067_v41 = vld [vmem:[%s2475_s9 + $0x98] sm:$0xff] }
  0x82   : > { %676 = vmatmul.f32.gmra.mxu1 %v332_v42 }
  0x83   : > { %1115 = vmatpush.msrb.mxu1 %v2067_v41  ;;  %v383_v41 = vld [vmem:[%s2397_s27 + $0x2e0] sm:$0xff] }
  0x87   : > { %771 = vmatmul.f32.gmra.mxu2 %v337_v43 }
  0x88   : > { %587 = vmatmul.f32.gmra.mxu0 %v335_v44 }
  0x89   : > { %2037 = vmatmul.msk.f32.gmra.mxu3 %vm458_vm1, %v338_v45  ;;  %v369_v45 = vld [vmem:[%s2397_s27 + $0x270] sm:$0xff] }
  0x8a   : > { %679 = vmatmul.f32.gmra.mxu1 %v336_v46 }
  0x8f   : > { %774 = vmatmul.f32.gmra.mxu2 %v341_v47 }
  0x90   : > { %590 = vmatmul.f32.gmra.mxu0 %v339_v48  ;;  %v367_v48 = vld [vmem:[%s2397_s27 + $0x260] sm:$0xff] }
  0x91   : > { %2038 = vmatmul.msk.f32.gmra.mxu3 %vm458_vm1, %v342_v49  ;;  %v370_v49 = vld [vmem:[%s2397_s27 + $0x278] sm:$0xff] }
  0x92   : > { %682 = vmatmul.f32.gmra.mxu1 %v340_v51 }
  0x97   : > { %777 = vmatmul.f32.gmra.mxu2 %v345_v52 }
  0x98   : > { %593 = vmatmul.f32.gmra.mxu0 %v343_v53  ;;  %v368_v53 = vld [vmem:[%s2397_s27 + $0x268] sm:$0xff] }
  0x99   : > { %2039 = vmatmul.msk.f32.gmra.mxu3 %vm458_vm1, %v346_v54 }
  0x9a   : > { %685 = vmatmul.f32.gmra.mxu1 %v344_v55 }
  0x9f   : > { %780 = vmatmul.f32.gmra.mxu2 %v349_v56 }
  0xa0   : > { %596 = vmatmul.f32.gmra.mxu0 %v347_v57 }
  0xa1   : > { %2040 = vmatmul.msk.f32.gmra.mxu3 %vm458_vm1, %v350_v58  ;;  %v373_v58 = vld [vmem:[%s2397_s27 + $0x290] sm:$0xff] }
  0xa2   : > { %688 = vmatmul.f32.gmra.mxu1 %v348_v59 }
  0xa7   : > { %783 = vmatmul.f32.gmra.mxu2 %v353_v63 }
  0xa8   : > { %599 = vmatmul.f32.gmra.mxu0 %v351_v0 }
  0xa9   : > { %2041 = vmatmul.msk.f32.gmra.mxu3 %vm458_vm1, %v354_v1 }
  0xaa   : > { %691 = vmatmul.f32.gmra.mxu1 %v352_v2  ;;  %v372_v2 = vld [vmem:[%s2397_s27 + $0x288] sm:$0xff] }
  0xad   : > { %v555_v5 = vpop.f32.mrf.mxu0 }
  0xae   : > { %v556_v8 = vadd.f32 %v2510_v3, %v555_v5  ;;  %v1023_v5 = vld [vmem:[%s2475_s9 + $0x20] sm:$0xff] }
  0xaf   : > { %786 = vmatmul.f32.gmra.mxu2 %v357_v4  ;;  %v647_v9 = vpop.f32.mrf.mxu1  ;;  %1044 = vmatpush.msrb.mxu3 %v1023_v5 }
  0xb0   : > { %v648_v11 = vadd.f32 %v647_v9, %v556_v8  ;;  %602 = vmatmul.f32.gmra.mxu0 %v355_v6  ;;  %v377_v9 = vld [vmem:[%s2397_s27 + $0x2b0] sm:$0xff] }
  0xb1   : > { %2042 = vmatmul.msk.f32.gmra.mxu3 %vm458_vm1, %v358_v7 }
  0xb2   : > { %v739_v13 = vpop.f32.mrf.mxu2  ;;  %694 = vmatmul.f32.gmra.mxu1 %v356_v10 }
  0xb3   : > { %v740_v14 = vadd.f32 %v739_v13, %v648_v11  ;;  %v378_v13 = vld [vmem:[%s2397_s27 + $0x2b8] sm:$0xff] }
  0xb4   : > { %v831_v15 = vpop.f32.mrf.mxu3 }
  0xb5   : > { %v832_v17 = vadd.f32 %v831_v15, %v740_v14  ;;  %v558_v18 = vpop.f32.mrf.mxu0 }
  0xb6   : > { %v559_v21 = vadd.f32 %v2510_v3, %v558_v18 }
  0xb7   : > { %v906_v22 = vmax.f32 %v832_v17, 0.0  ;;  %789 = vmatmul.f32.gmra.mxu2 %v361_v16  ;;  %v650_v23 = vpop.f32.mrf.mxu1  ;;  %v376_v17 = vld [vmem:[%s2397_s27 + $0x2a8] sm:$0xff] }
  0xb8   : > { %v651_v25 = vadd.f32 %v650_v23, %v559_v21  ;;  %605 = vmatmul.f32.gmra.mxu0 %v359_v19  ;;  %v2075_v19 = vld [vmem:[%s2475_s9 + $0xc8] sm:$0xff]  ;;  %v2066_v21 = vld [vmem:[%s2475_s9 + $0x90] sm:$0xff] }
  0xb9   : > { %2043 = vmatmul.msk.f32.gmra.mxu3 %vm458_vm1, %v362_v20  ;;  %932 = vst.msk [vmem:[#allocation2] sm:$0xff] %vm931_vm3, %v906_v22  ;;  %v2057_v20 = vld [vmem:[%s2475_s9 + $0x58] sm:$0xff]  ;;  %1152 = vmatpush.msrb.mxu2 %v2075_v19 }
  0xba   : > { %v742_v28 = vpop.f32.mrf.mxu2  ;;  %697 = vmatmul.f32.gmra.mxu1 %v360_v24  ;;  %1080 = vmatpush.msrb.mxu0 %v2057_v20 }
  0xbb   : > { %v743_v29 = vadd.f32 %v742_v28, %v651_v25  ;;  %1116 = vmatpush.msrb.mxu1 %v2066_v21  ;;  %v381_v25 = vld [vmem:[%s2397_s27 + $0x2d0] sm:$0xff]  ;;  %v379_v28 = vld [vmem:[%s2397_s27 + $0x2c0] sm:$0xff] }
  0xbc   : > { %v834_v30 = vpop.f32.mrf.mxu3 }
  0xbd   : > { %v835_v32 = vadd.f32 %v834_v30, %v743_v29  ;;  %v561_v33 = vpop.f32.mrf.mxu0  ;;  %v382_v29 = vld [vmem:[%s2397_s27 + $0x2d8] sm:$0xff] }
  0xbe   : > { %v562_v36 = vadd.f32 %v2510_v3, %v561_v33  ;;  %v380_v33 = vld [vmem:[%s2397_s27 + $0x2c8] sm:$0xff] }
  0xbf   : > { %v907_v37 = vmax.f32 %v835_v32, 0.0  ;;  %792 = vmatmul.f32.gmra.mxu2 %v365_v31  ;;  %v653_v38 = vpop.f32.mrf.mxu1 }
  0xc0   : > { %v654_v40 = vadd.f32 %v653_v38, %v562_v36  ;;  %608 = vmatmul.f32.gmra.mxu0 %v363_v34  ;;  %v385_v38 = vld [vmem:[%s2397_s27 + $0x2f0] sm:$0xff] }
  0xc1   : > { %2044 = vmatmul.msk.f32.gmra.mxu3 %vm458_vm1, %v366_v35  ;;  %933 = vst.msk [vmem:[#allocation2 + $0x8] sm:$0xff] %vm931_vm3, %v907_v37 }
  0xc2   : > { %v745_v42 = vpop.f32.mrf.mxu2  ;;  %700 = vmatmul.f32.gmra.mxu1 %v364_v39 }
  0xc3   : > { %v746_v43 = vadd.f32 %v745_v42, %v654_v40  ;;  %v386_v42 = vld [vmem:[%s2397_s27 + $0x2f8] sm:$0xff] }
  0xc4   : > { %v837_v44 = vpop.f32.mrf.mxu3 }
  0xc5   : > { %v838_v46 = vadd.f32 %v837_v44, %v746_v43  ;;  %v564_v47 = vpop.f32.mrf.mxu0 }
  0xc6   : > { %v565_v50 = vadd.f32 %v2510_v3, %v564_v47 }
  0xc7   : > { %v908_v51 = vmax.f32 %v838_v46, 0.0  ;;  %795 = vmatmul.f32.gmra.mxu2 %v369_v45  ;;  %v656_v52 = vpop.f32.mrf.mxu1  ;;  %v384_v46 = vld [vmem:[%s2397_s27 + $0x2e8] sm:$0xff] }
  0xc8   : > { %v657_v54 = vadd.f32 %v656_v52, %v565_v50  ;;  %611 = vmatmul.f32.gmra.mxu0 %v367_v48 }
  0xc9   : > { %2045 = vmatmul.msk.f32.gmra.mxu3 %vm458_vm1, %v370_v49  ;;  %934 = vst.msk [vmem:[#allocation2 + $0x10] sm:$0xff] %vm931_vm3, %v908_v51  ;;  %v389_v51 = vld [vmem:[%s2397_s27 + $0x310] sm:$0xff] }
  0xca   : > { %v748_v55 = vpop.f32.mrf.mxu2  ;;  %703 = vmatmul.f32.gmra.mxu1 %v368_v53 }
  0xcb   : > { %v749_v56 = vadd.f32 %v748_v55, %v657_v54  ;;  %v387_v54 = vld [vmem:[%s2397_s27 + $0x300] sm:$0xff]  ;;  %v390_v55 = vld [vmem:[%s2397_s27 + $0x318] sm:$0xff] }
  0xcc   : > { %v840_v57 = vpop.f32.mrf.mxu3 }
  0xcd   : > { %v841_v59 = vadd.f32 %v840_v57, %v749_v56  ;;  %v567_v60 = vpop.f32.mrf.mxu0 }
  0xce   : > { %v568_v63 = vadd.f32 %v2510_v3, %v567_v60 }
  0xcf   : > { %v909_v0 = vmax.f32 %v841_v59, 0.0  ;;  %798 = vmatmul.f32.gmra.mxu2 %v373_v58  ;;  %v659_v1 = vpop.f32.mrf.mxu1  ;;  %v388_v59 = vld [vmem:[%s2397_s27 + $0x308] sm:$0xff] }
  0xd0   : > { %v660_v4 = vadd.f32 %v659_v1, %v568_v63  ;;  %614 = vmatmul.f32.gmra.mxu0 %v371_v61  ;;  %v1022_v61 = vld [vmem:[%s2475_s9 + $0x18] sm:$0xff] }
  0xd1   : > { %2046 = vmatmul.msk.f32.gmra.mxu3 %vm458_vm1, %v374_v62  ;;  %935 = vst.msk [vmem:[#allocation2 + $0x18] sm:$0xff] %vm931_vm3, %v909_v0  ;;  %v2074_v62 = vld [vmem:[%s2475_s9 + $0xc0] sm:$0xff] }
  0xd2   : > { %v751_v6 = vpop.f32.mrf.mxu2  ;;  %706 = vmatmul.f32.gmra.mxu1 %v372_v2  ;;  %1045 = vmatpush.msrb.mxu3 %v1022_v61 }
  0xd3   : > { %v752_v7 = vadd.f32 %v751_v6, %v660_v4  ;;  %1153 = vmatpush.msrb.mxu2 %v2074_v62 }
  0xd4   : > { %v843_v8 = vpop.f32.mrf.mxu3 }
  0xd5   : > { %v844_v10 = vadd.f32 %v843_v8, %v752_v7  ;;  %v570_v11 = vpop.f32.mrf.mxu0 }
  0xd6   : > { %v571_v14 = vadd.f32 %v2510_v3, %v570_v11 }
  0xd7   : > { %v910_v15 = vmax.f32 %v844_v10, 0.0  ;;  %801 = vmatmul.f32.gmra.mxu2 %v377_v9  ;;  %v662_v16 = vpop.f32.mrf.mxu1  ;;  %v2056_v9 = vld [vmem:[%s2475_s9 + $0x50] sm:$0xff]  ;;  %v2065_v10 = vld [vmem:[%s2475_s9 + $0x88] sm:$0xff] }
  0xd8   : > { %v663_v18 = vadd.f32 %v662_v16, %v571_v14  ;;  %617 = vmatmul.f32.gmra.mxu0 %v375_v12  ;;  %1117 = vmatpush.msrb.mxu1 %v2065_v10 }
  0xd9   : > { %2047 = vmatmul.msk.f32.gmra.mxu3 %vm458_vm1, %v378_v13  ;;  %936 = vst.msk [vmem:[#allocation2 + $0x20] sm:$0xff] %vm931_vm3, %v910_v15  ;;  %1081 = vmatpush.msrb.mxu0 %v2056_v9 }
  0xda   : > { %v754_v22 = vpop.f32.mrf.mxu2  ;;  %709 = vmatmul.f32.gmra.mxu1 %v376_v17 }
  0xdb   : > { %v755_v23 = vadd.f32 %v754_v22, %v663_v18 }
  0xdc   : > { %v846_v24 = vpop.f32.mrf.mxu3 }
  0xdd   : > { %v847_v26 = vadd.f32 %v846_v24, %v755_v23  ;;  %v573_v27 = vpop.f32.mrf.mxu0 }
  0xde   : > { %v574_v30 = vadd.f32 %v2510_v3, %v573_v27 }
  0xdf   : > { %v911_v31 = vmax.f32 %v847_v26, 0.0  ;;  %804 = vmatmul.f32.gmra.mxu2 %v381_v25  ;;  %v665_v32 = vpop.f32.mrf.mxu1 }
  0xe0   : > { %v666_v34 = vadd.f32 %v665_v32, %v574_v30  ;;  %620 = vmatmul.f32.gmra.mxu0 %v379_v28 }
  0xe1   : > { %2048 = vmatmul.msk.f32.gmra.mxu3 %vm458_vm1, %v382_v29  ;;  %937 = vst.msk [vmem:[#allocation2 + $0x28] sm:$0xff] %vm931_vm3, %v911_v31  ;;  %v1021_v29 = vld [vmem:[%s2475_s9 + $0x10] sm:$0xff] }
  0xe2   : > { %v757_v35 = vpop.f32.mrf.mxu2  ;;  %712 = vmatmul.f32.gmra.mxu1 %v380_v33  ;;  %1046 = vmatpush.msrb.mxu3 %v1021_v29 }
  0xe3   : > { %v758_v36 = vadd.f32 %v757_v35, %v666_v34 }
  0xe4   : > { %v849_v37 = vpop.f32.mrf.mxu3 }
  0xe5   : > { %v850_v39 = vadd.f32 %v849_v37, %v758_v36  ;;  %v576_v40 = vpop.f32.mrf.mxu0 }
  0xe6   : > { %v577_v43 = vadd.f32 %v2510_v3, %v576_v40  ;;  %v2055_v40 = vld [vmem:[%s2475_s9 + $0x48] sm:$0xff] }
  0xe7   : > { %v912_v44 = vmax.f32 %v850_v39, 0.0  ;;  %807 = vmatmul.f32.gmra.mxu2 %v385_v38  ;;  %v668_v45 = vpop.f32.mrf.mxu1  ;;  %v2073_v39 = vld [vmem:[%s2475_s9 + $0xb8] sm:$0xff]  ;;  %1082 = vmatpush.msrb.mxu0 %v2055_v40  ;;  %v2112_v40 = vld [vmem:[%s2475_s9 + $0x1b0] sm:$0xff] }
  0xe8   : > { %v669_v47 = vadd.f32 %v668_v45, %v577_v43  ;;  %623 = vmatmul.f32.gmra.mxu0 %v383_v41  ;;  %1154 = vmatpush.msrb.mxu2 %v2073_v39  ;;  %v2064_v41 = vld [vmem:[%s2475_s9 + $0x80] sm:$0xff] }
  0xe9   : > { %2049 = vmatmul.msk.f32.gmra.mxu3 %vm458_vm1, %v386_v42  ;;  %938 = vst.msk [vmem:[#allocation2 + $0x30] sm:$0xff] %vm931_vm3, %v912_v44  ;;  %1118 = vmatpush.msrb.mxu1 %v2064_v41 }
  0xea   : > { %v760_v48 = vpop.f32.mrf.mxu2  ;;  %715 = vmatmul.f32.gmra.mxu1 %v384_v46 }
  0xeb   : > { %v761_v49 = vadd.f32 %v760_v48, %v669_v47 }
  0xec   : > { %v852_v50 = vpop.f32.mrf.mxu3 }
  0xed   : > { %v853_v52 = vadd.f32 %v852_v50, %v761_v49  ;;  %v579_v53 = vpop.f32.mrf.mxu0 }
  0xee   : > { %v580_v56 = vadd.f32 %v2510_v3, %v579_v53 }
  0xef   : > { %v913_v57 = vmax.f32 %v853_v52, 0.0  ;;  %810 = vmatmul.f32.gmra.mxu2 %v389_v51  ;;  %v671_v58 = vpop.f32.mrf.mxu1 }
  0xf0   : > { %v672_v60 = vadd.f32 %v671_v58, %v580_v56  ;;  %626 = vmatmul.f32.gmra.mxu0 %v387_v54 }
  0xf1   : > { %2050 = vmatmul.msk.f32.gmra.mxu3 %vm458_vm1, %v390_v55  ;;  %939 = vst.msk [vmem:[#allocation2 + $0x38] sm:$0xff] %vm931_vm3, %v913_v57 }
  0xf2   : > { %v763_v63 = vpop.f32.mrf.mxu2  ;;  %718 = vmatmul.f32.gmra.mxu1 %v388_v59 }
  0xf3   : > { %v764_v0 = vadd.f32 %v763_v63, %v672_v60 }
  0xf4   : > { %v855_v1 = vpop.f32.mrf.mxu3 }
  0xf5   : > { %v856_v2 = vadd.f32 %v855_v1, %v764_v0  ;;  %v582_v4 = vpop.f32.mrf.mxu0 }
  0xf6   : > { %v583_v5 = vadd.f32 %v2510_v3, %v582_v4 }
  0xf7   : > { %v914_v6 = vmax.f32 %v856_v2, 0.0  ;;  %v674_v7 = vpop.f32.mrf.mxu1 }
  0xf8   : > { %v675_v8 = vadd.f32 %v674_v7, %v583_v5  ;;  %v2072_v7 = vld [vmem:[%s2475_s9 + $0xb0] sm:$0xff] }
  0xf9   : > { %940 = vst.msk [vmem:[#allocation2 + $0x40] sm:$0xff] %vm931_vm3, %v914_v6  ;;  %v1020_v6 = vld [vmem:[%s2475_s9 + $0x8] sm:$0xff]  ;;  %1155 = vmatpush.msrb.mxu2 %v2072_v7  ;;  %v2098_v7 = vld [vmem:[%s2475_s9 + $0x150] sm:$0xff] }
  0xfa   : > { %v766_v11 = vpop.f32.mrf.mxu2  ;;  %1047 = vmatpush.msrb.mxu3 %v1020_v6  ;;  %v2089_v6 = vld [vmem:[%s2475_s9 + $0x118] sm:$0xff] }
  0xfb   : > { %v767_v12 = vadd.f32 %v766_v11, %v675_v8 }
  0xfc   : > { %v858_v13 = vpop.f32.mrf.mxu3 }
  0xfd   : > { %v859_v14 = vadd.f32 %v858_v13, %v767_v12  ;;  %v585_v15 = vpop.f32.mrf.mxu0 }
  0xfe   : > { %v586_v16 = vadd.f32 %v2510_v3, %v585_v15 }
  0xff   : > { %v915_v17 = vmax.f32 %v859_v14, 0.0  ;;  %v677_v18 = vpop.f32.mrf.mxu1 }
 0x100   : > { %v678_v19 = vadd.f32 %v677_v18, %v586_v16  ;;  %v2063_v18 = vld [vmem:[%s2475_s9 + $0x78] sm:$0xff] }
 0x101   : > { %941 = vst.msk [vmem:[#allocation2 + $0x48] sm:$0xff] %vm931_vm3, %v915_v17  ;;  %v2054_v17 = vld [vmem:[%s2475_s9 + $0x40] sm:$0xff]  ;;  %1119 = vmatpush.msrb.mxu1 %v2063_v18 }
 0x102   : > { %v769_v20 = vpop.f32.mrf.mxu2  ;;  %1083 = vmatpush.msrb.mxu0 %v2054_v17 }
 0x103   : > { %v770_v21 = vadd.f32 %v769_v20, %v678_v19 }
 0x104   : > { %v861_v22 = vpop.f32.mrf.mxu3 }
 0x105   : > { %v862_v23 = vadd.f32 %v861_v22, %v770_v21  ;;  %v588_v24 = vpop.f32.mrf.mxu0 }
 0x106   : > { %v589_v25 = vadd.f32 %v2510_v3, %v588_v24 }
 0x107   : > { %v916_v26 = vmax.f32 %v862_v23, 0.0  ;;  %v680_v27 = vpop.f32.mrf.mxu1 }
 0x108   : > { %v681_v28 = vadd.f32 %v680_v27, %v589_v25  ;;  %v1019_v25 = vld [vmem:[%s2475_s9] sm:$0xff]  ;;  %v2062_v27 = vld [vmem:[%s2475_s9 + $0x70] sm:$0xff] }
 0x109   : > { %942 = vst.msk [vmem:[#allocation2 + $0x50] sm:$0xff] %vm931_vm3, %v916_v26  ;;  %v2053_v26 = vld [vmem:[%s2475_s9 + $0x38] sm:$0xff]  ;;  %1048 = vmatpush.msrb.mxu3 %v1019_v25  ;;  %1120 = vmatpush.msrb.mxu1 %v2062_v27 }
 0x10a   : > { %v772_v30 = vpop.f32.mrf.mxu2  ;;  %1084 = vmatpush.msrb.mxu0 %v2053_v26 }
 0x10b   : > { %v773_v31 = vadd.f32 %v772_v30, %v681_v28  ;;  %v2071_v30 = vld [vmem:[%s2475_s9 + $0xa8] sm:$0xff] }
 0x10c   : > { %v864_v32 = vpop.f32.mrf.mxu3  ;;  %1156 = vmatpush.msrb.mxu2 %v2071_v30 }
 0x10d   : > { %v865_v33 = vadd.f32 %v864_v32, %v773_v31  ;;  %v591_v34 = vpop.f32.mrf.mxu0  ;;  %v2086_v31 = vld [vmem:[%s2475_s9 + $0x110] sm:$0x3]  ;;  %v2095_v32 = vld [vmem:[%s2475_s9 + $0x148] sm:$0x3] }
 0x10e   : > { %v592_v35 = vadd.f32 %v2510_v3, %v591_v34  ;;  %v2104_v34 = vld [vmem:[%s2475_s9 + $0x180] sm:$0x3]  ;;  %2087 = vmatpush.msk.msra.mxu3 %vm1029_vm2, %v2086_v31  ;;  %2096 = vmatpush.msk.msra.mxu0 %vm1029_vm2, %v2095_v32 }
 0x10f   : > { %v917_v36 = vmax.f32 %v865_v33, 0.0  ;;  %v683_v37 = vpop.f32.mrf.mxu1  ;;  %2105 = vmatpush.msk.msra.mxu1 %vm1029_vm2, %v2104_v34 }
 0x110   : > { %v684_v38 = vadd.f32 %v683_v37, %v592_v35  ;;  %v2113_v35 = vld [vmem:[%s2475_s9 + $0x1b8] sm:$0x3]  ;;  %v2094_v37 = vld [vmem:[%s2475_s9 + $0x140] sm:$0xff] }
 0x111   : > { %943 = vst.msk [vmem:[#allocation2 + $0x58] sm:$0xff] %vm931_vm3, %v917_v36  ;;  %v2085_v36 = vld [vmem:[%s2475_s9 + $0x108] sm:$0xff]  ;;  %2114 = vmatpush.msk.msra.mxu2 %vm1029_vm2, %v2113_v35  ;;  %1223 = vmatpush.msra.mxu0 %v2094_v37 }
 0x112   : > { %v775_v42 = vpop.f32.mrf.mxu2  ;;  %1187 = vmatpush.msra.mxu3 %v2085_v36 }
 0x113   : > { %v776_v43 = vadd.f32 %v775_v42, %v684_v38  ;;  %v2103_v38 = vld [vmem:[%s2475_s9 + $0x178] sm:$0xff]  ;;  %1295 = vmatpush.msra.mxu2 %v2112_v40 }
 0x114   : > { %v867_v44 = vpop.f32.mrf.mxu3  ;;  %1259 = vmatpush.msra.mxu1 %v2103_v38 }
 0x115   : > { %v868_v45 = vadd.f32 %v867_v44, %v776_v43  ;;  %v594_v46 = vpop.f32.mrf.mxu0  ;;  %v2084_v43 = vld [vmem:[%s2475_s9 + $0x100] sm:$0xff]  ;;  %v2093_v44 = vld [vmem:[%s2475_s9 + $0x138] sm:$0xff] }
 0x116   : > { %v595_v47 = vadd.f32 %v2510_v3, %v594_v46  ;;  %v2111_v46 = vld [vmem:[%s2475_s9 + $0x1a8] sm:$0xff]  ;;  %1188 = vmatpush.msra.mxu3 %v2084_v43  ;;  %1224 = vmatpush.msra.mxu0 %v2093_v44 }
 0x117   : > { %v918_v48 = vmax.f32 %v868_v45, 0.0  ;;  %v686_v49 = vpop.f32.mrf.mxu1  ;;  %v2102_v45 = vld [vmem:[%s2475_s9 + $0x170] sm:$0xff]  ;;  %1296 = vmatpush.msra.mxu2 %v2111_v46 }
 0x118   : > { %v687_v50 = vadd.f32 %v686_v49, %v595_v47  ;;  %v2083_v49 = vld [vmem:[%s2475_s9 + $0xf8] sm:$0xff]  ;;  %1260 = vmatpush.msra.mxu1 %v2102_v45 }
 0x119   : > { %944 = vst.msk [vmem:[#allocation2 + $0x60] sm:$0xff] %vm931_vm3, %v918_v48  ;;  %1189 = vmatpush.msra.mxu3 %v2083_v49  ;;  %v965_v45 = vld [vmem:[#allocation2 + $0x3a] sm:$0xff]  ;;  %v958_v49 = vld [vmem:[#allocation2 + $0x8] sm:$0xff] }
 0x11a   : > { %v778_v51 = vpop.f32.mrf.mxu2 }
 0x11b   : > { %v779_v52 = vadd.f32 %v778_v51, %v687_v50  ;;  %v2092_v50 = vld [vmem:[%s2475_s9 + $0x130] sm:$0xff]  ;;  %v2101_v51 = vld [vmem:[%s2475_s9 + $0x168] sm:$0xff] }
 0x11c   : > { %v870_v53 = vpop.f32.mrf.mxu3  ;;  %1225 = vmatpush.msra.mxu0 %v2092_v50  ;;  %1261 = vmatpush.msra.mxu1 %v2101_v51 }
 0x11d   : > { %v871_v54 = vadd.f32 %v870_v53, %v779_v52  ;;  %v597_v55 = vpop.f32.mrf.mxu0  ;;  %v2110_v53 = vld [vmem:[%s2475_s9 + $0x1a0] sm:$0xff] }
 0x11e   : > { %v598_v56 = vadd.f32 %v2510_v3, %v597_v55  ;;  %1297 = vmatpush.msra.mxu2 %v2110_v53  ;;  %v972_v53 = vmax.f32 %v958_v49, %v965_v45  ;;  %v2136_v45 = vld [vmem:[%s2475_s9 + $0x240] sm:$0xff]  ;;  %v2117_v49 = vld [vmem:[%s2475_s9 + $0x1c8] sm:$0xff] }
 0x11f   : > { %v919_v57 = vmax.f32 %v871_v54, 0.0  ;;  %v689_v58 = vpop.f32.mrf.mxu1 }
 0x120   : > { %v690_v59 = vadd.f32 %v689_v58, %v598_v56  ;;  %v2082_v56 = vld [vmem:[%s2475_s9 + $0xf0] sm:$0xff]  ;;  %v2100_v58 = vld [vmem:[%s2475_s9 + $0x160] sm:$0xff] }
 0x121   : > { %945 = vst.msk [vmem:[#allocation2 + $0x68] sm:$0xff] %vm931_vm3, %v919_v57  ;;  %v2091_v57 = vld [vmem:[%s2475_s9 + $0x128] sm:$0xff]  ;;  %1190 = vmatpush.msra.mxu3 %v2082_v56  ;;  %1262 = vmatpush.msra.mxu1 %v2100_v58 }
 0x122   : > { %v781_v60 = vpop.f32.mrf.mxu2  ;;  %1226 = vmatpush.msra.mxu0 %v2091_v57 }
 0x123   : > { %v782_v61 = vadd.f32 %v781_v60, %v690_v59  ;;  %v2109_v60 = vld [vmem:[%s2475_s9 + $0x198] sm:$0xff] }
 0x124   : > { %v873_v62 = vpop.f32.mrf.mxu3  ;;  %1298 = vmatpush.msra.mxu2 %v2109_v60  ;;  %v2131_v60 = vld [vmem:[%s2475_s9 + $0x228] sm:$0x3] }
 0x125   : > { %v874_v63 = vadd.f32 %v873_v62, %v782_v61  ;;  %v600_v0 = vpop.f32.mrf.mxu0  ;;  %v2081_v61 = vld [vmem:[%s2475_s9 + $0xe8] sm:$0xff]  ;;  %v2090_v62 = vld [vmem:[%s2475_s9 + $0x120] sm:$0xff] }
 0x126   : > { %v601_v1 = vadd.f32 %v2510_v3, %v600_v0  ;;  %1191 = vmatpush.msra.mxu3 %v2081_v61  ;;  %1227 = vmatpush.msra.mxu0 %v2090_v62  ;;  %v2140_v61 = vld [vmem:[%s2475_s9 + $0x260] sm:$0x3] }
 0x127   : > { %v920_v2 = vmax.f32 %v874_v63, 0.0  ;;  %v692_v4 = vpop.f32.mrf.mxu1  ;;  %v2099_v63 = vld [vmem:[%s2475_s9 + $0x158] sm:$0xff] }
 0x128   : > { %v693_v5 = vadd.f32 %v692_v4, %v601_v1  ;;  %v2108_v1 = vld [vmem:[%s2475_s9 + $0x190] sm:$0xff]  ;;  %1263 = vmatpush.msra.mxu1 %v2099_v63  ;;  %1228 = vmatpush.msra.mxu0 %v2089_v6  ;;  %v978_v34 = vld [vmem:[#allocation2 + $0x64] sm:$0xff] }
 0x129   : > { %946 = vst.msk [vmem:[#allocation2 + $0x70] sm:$0xff] %vm931_vm3, %v920_v2  ;;  %1299 = vmatpush.msra.mxu2 %v2108_v1  ;;  %v966_v1 = vld [vmem:[#allocation2 + $0x42] sm:$0xff] }
 0x12a   : > { %v784_v8 = vpop.f32.mrf.mxu2  ;;  %1264 = vmatpush.msra.mxu1 %v2098_v7  ;;  %v959_v7 = vld [vmem:[#allocation2 + $0x10] sm:$0xff] }
 0x12b   : > { %v785_v9 = vadd.f32 %v784_v8, %v693_v5  ;;  %v2080_v5 = vld [vmem:[%s2475_s9 + $0xe0] sm:$0xff]  ;;  %v2107_v8 = vld [vmem:[%s2475_s9 + $0x188] sm:$0xff] }
 0x12c   : > { %v876_v10 = vpop.f32.mrf.mxu3  ;;  %1192 = vmatpush.msra.mxu3 %v2080_v5  ;;  %1300 = vmatpush.msra.mxu2 %v2107_v8  ;;  %v2149_v5 = vld [vmem:[%s2475_s9 + $0x298] sm:$0x3] }
 0x12d   : > { %v877_v11 = vadd.f32 %v876_v10, %v785_v9  ;;  %v603_v12 = vpop.f32.mrf.mxu0 }
 0x12e   : > { %v604_v13 = vadd.f32 %v2510_v3, %v603_v12 }
 0x12f   : > { %v921_v14 = vmax.f32 %v877_v11, 0.0  ;;  %v695_v15 = vpop.f32.mrf.mxu1 }
 0x130   : > { %v696_v16 = vadd.f32 %v695_v15, %v604_v13  ;;  %v979_v50 = vld [vmem:[#allocation2 + $0x6c] sm:$0xff] }
 0x131   : > { %947 = vst.msk [vmem:[#allocation2 + $0x78] sm:$0xff] %vm931_vm3, %v921_v14 }
 0x132   : > { %v787_v19 = vpop.f32.mrf.mxu2 }
 0x133   : > { %v788_v20 = vadd.f32 %v787_v19, %v696_v16 }
 0x134   : > { %v879_v21 = vpop.f32.mrf.mxu3 }
 0x135   : > { %v880_v22 = vadd.f32 %v879_v21, %v788_v20  ;;  %v606_v23 = vpop.f32.mrf.mxu0 }
 0x136   : > { %v607_v24 = vadd.f32 %v2510_v3, %v606_v23 }
 0x137   : > { %v922_v28 = vmax.f32 %v880_v22, 0.0  ;;  %v698_v29 = vpop.f32.mrf.mxu1 }
 0x138   : > { %v699_v33 = vadd.f32 %v698_v29, %v607_v24  ;;  %v964_v29 = vld [vmem:[#allocation2 + $0x32] sm:$0xff] }
 0x139   : > { %948 = vst.msk [vmem:[#allocation2 + $0x80] sm:$0xff] %vm931_vm3, %v922_v28  ;;  %v980_v8 = vld [vmem:[#allocation2 + $0x74] sm:$0xff] }
 0x13a   : > { %v790_v39 = vpop.f32.mrf.mxu2 }
 0x13b   : > { %v791_v41 = vadd.f32 %v790_v39, %v699_v33  ;;  %v957_v33 = vld [vmem:[#allocation2] sm:$0xff] }
 0x13c   : > { %v882_v42 = vpop.f32.mrf.mxu3  ;;  %v971_v37 = vmax.f32 %v957_v33, %v964_v29  ;;  %v2137_v29 = vld [vmem:[%s2475_s9 + $0x248] sm:$0xff] }
 0x13d   : > { %v883_v47 = vadd.f32 %v882_v42, %v791_v41  ;;  %v609_v48 = vpop.f32.mrf.mxu0 }
 0x13e   : > { %v610_v52 = vadd.f32 %v2510_v3, %v609_v48 }
 0x13f   : > { %v923_v54 = vmax.f32 %v883_v47, 0.0  ;;  %v701_v55 = vpop.f32.mrf.mxu1 }
 0x140   : > { %v702_v59 = vadd.f32 %v701_v55, %v610_v52 }
 0x141   : > { %949 = vst.msk [vmem:[#allocation2 + $0x88] sm:$0xff] %vm931_vm3, %v923_v54 }
 0x142   : > { %v793_v0 = vpop.f32.mrf.mxu2 }
 0x143   : > { %v794_v2 = vadd.f32 %v793_v0, %v702_v59  ;;  %v2122_v59 = vld [vmem:[%s2475_s9 + $0x1f0] sm:$0x3] }
 0x144   : > { %v885_v4 = vpop.f32.mrf.mxu3 }
 0x145   : > { %v886_v9 = vadd.f32 %v885_v4, %v794_v2  ;;  %v612_v10 = vpop.f32.mrf.mxu0 }
 0x146   : > { %v613_v11 = vadd.f32 %v2510_v3, %v612_v10  ;;  %v2121_v10 = vld [vmem:[%s2475_s9 + $0x1e8] sm:$0xff] }
 0x147   : > { %v924_v12 = vmax.f32 %v886_v9, 0.0  ;;  %v704_v13 = vpop.f32.mrf.mxu1 }
 0x148   : > { %v705_v14 = vadd.f32 %v704_v13, %v613_v11  ;;  %v2130_v11 = vld [vmem:[%s2475_s9 + $0x220] sm:$0xff]  ;;  %v2139_v13 = vld [vmem:[%s2475_s9 + $0x258] sm:$0xff] }
 0x149   : > { %950 = vst.msk [vmem:[#allocation2 + $0x90] sm:$0xff] %vm931_vm3, %v924_v12 }
 0x14a   : > { %v796_v15 = vpop.f32.mrf.mxu2 }
 0x14b   : > { %v797_v16 = vadd.f32 %v796_v15, %v705_v14  ;;  %v2148_v14 = vld [vmem:[%s2475_s9 + $0x290] sm:$0xff] }
 0x14c   : > { %v888_v17 = vpop.f32.mrf.mxu3 }
 0x14d   : > { %v889_v18 = vadd.f32 %v888_v17, %v797_v16  ;;  %v615_v19 = vpop.f32.mrf.mxu0 }
 0x14e   : > { %v616_v20 = vadd.f32 %v2510_v3, %v615_v19  ;;  %v2129_v19 = vld [vmem:[%s2475_s9 + $0x218] sm:$0xff] }
 0x14f   : > { %v925_v21 = vmax.f32 %v889_v18, 0.0  ;;  %v707_v22 = vpop.f32.mrf.mxu1  ;;  %v2120_v18 = vld [vmem:[%s2475_s9 + $0x1e0] sm:$0xff] }
 0x150   : > { %v708_v23 = vadd.f32 %v707_v22, %v616_v20  ;;  %v973_v20 = vmax.f32 %v959_v7, %v966_v1  ;;  %v2138_v22 = vld [vmem:[%s2475_s9 + $0x250] sm:$0xff]  ;;  %v2176_v1 = vld [vmem:[%s2475_s9 + $0x340] sm:$0x3]  ;;  %v2157_v7 = vld [vmem:[%s2475_s9 + $0x2c8] sm:$0xff] }
 0x151   : > { %951 = vst.msk [vmem:[#allocation2 + $0x98] sm:$0xff] %vm931_vm3, %v925_v21 }
 0x152   : > { %v799_v24 = vpop.f32.mrf.mxu2 }
 0x153   : > { %v800_v25 = vadd.f32 %v799_v24, %v708_v23  ;;  %v2147_v23 = vld [vmem:[%s2475_s9 + $0x288] sm:$0xff] }
 0x154   : > { %v891_v26 = vpop.f32.mrf.mxu3 }
 0x155   : > { %v892_v27 = vadd.f32 %v891_v26, %v800_v25  ;;  %v618_v28 = vpop.f32.mrf.mxu0  ;;  %v2119_v25 = vld [vmem:[%s2475_s9 + $0x1d8] sm:$0xff]  ;;  %v2128_v26 = vld [vmem:[%s2475_s9 + $0x210] sm:$0xff] }
 0x156   : > { %v619_v30 = vadd.f32 %v2510_v3, %v618_v28 }
 0x157   : > { %v926_v31 = vmax.f32 %v892_v27, 0.0  ;;  %v710_v32 = vpop.f32.mrf.mxu1 }
 0x158   : > { %v985_v35 = vld [vmem:[#allocation2 + $0x96] sm:$0xff]  ;;  %v711_v36 = vadd.f32 %v710_v32, %v619_v30  ;;  %v2146_v30 = vld [vmem:[%s2475_s9 + $0x280] sm:$0xff] }
 0x159   : > { %v992_v38 = vmax.f32 %v978_v34, %v985_v35  ;;  %952 = vst.msk [vmem:[#allocation2 + $0xa0] sm:$0xff] %vm931_vm3, %v926_v31 }
 0x15a   : > { %v802_v39 = vpop.f32.mrf.mxu2 }
 0x15b   : > { %v999_v40 = vmax.f32 %v971_v37, %v992_v38  ;;  %v803_v41 = vadd.f32 %v802_v39, %v711_v36  ;;  %v960_v38 = vld [vmem:[#allocation2 + $0x18] sm:$0xff]  ;;  %v967_v39 = vld [vmem:[#allocation2 + $0x4a] sm:$0xff] }
 0x15c   : > { %v894_v42 = vpop.f32.mrf.mxu3 }
 0x15d   : > { %1006 = vst.msk [vmem:[#allocation3] sm:$0xff] %vm931_vm3, %v999_v40  ;;  %v895_v43 = vadd.f32 %v894_v42, %v803_v41  ;;  %v621_v44 = vpop.f32.mrf.mxu0  ;;  %v2118_v40 = vld [vmem:[%s2475_s9 + $0x1d0] sm:$0xff]  ;;  %v2127_v41 = vld [vmem:[%s2475_s9 + $0x208] sm:$0xff] }
 0x15e   : > { %v622_v46 = vadd.f32 %v2510_v3, %v621_v44 }
 0x15f   : > { %v927_v47 = vmax.f32 %v895_v43, 0.0  ;;  %v713_v48 = vpop.f32.mrf.mxu1  ;;  %v981_v43 = vld [vmem:[#allocation2 + $0x7c] sm:$0xff] }
 0x160   : > { %v986_v51 = vld [vmem:[#allocation2 + $0x9e] sm:$0xff]  ;;  %v714_v52 = vadd.f32 %v713_v48, %v622_v46 }
 0x161   : > { %v993_v54 = vmax.f32 %v979_v50, %v986_v51  ;;  %953 = vst.msk [vmem:[#allocation2 + $0xa8] sm:$0xff] %vm931_vm3, %v927_v47  ;;  %v2145_v46 = vld [vmem:[%s2475_s9 + $0x278] sm:$0xff]  ;;  %v974_v51 = vmax.f32 %v960_v38, %v967_v39  ;;  %v2153_v39 = vld [vmem:[%s2475_s9 + $0x2a8] sm:$0xff] }
 0x162   : > { %v805_v55 = vpop.f32.mrf.mxu2  ;;  %v2181_v38 = vld [vmem:[%s2475_s9 + $0x358] sm:$0xff] }
 0x163   : > { %v1000_v56 = vmax.f32 %v972_v53, %v993_v54  ;;  %v806_v57 = vadd.f32 %v805_v55, %v714_v52  ;;  %v2135_v53 = vld [vmem:[%s2475_s9 + $0x238] sm:$0xff]  ;;  %v2144_v54 = vld [vmem:[%s2475_s9 + $0x270] sm:$0xff]  ;;  %v2116_v55 = vld [vmem:[%s2475_s9 + $0x1c0] sm:$0xff] }
 0x164   : > { %v897_v58 = vpop.f32.mrf.mxu3  ;;  %v1018_v62 = vld [vmem:[#allocation3] sm:$0x3]  ;;  %v1054_v63 = vld [vmem:[#allocation3 + $0x2] sm:$0x3]  ;;  %v1090_v0 = vld [vmem:[#allocation3 + $0x4] sm:$0x3] }
 0x165   : > { %1007 = vst.msk [vmem:[#allocation3 + $0x8] sm:$0xff] %vm931_vm3, %v1000_v56  ;;  %v898_v2 = vadd.f32 %v897_v58, %v806_v57  ;;  %2052 = vmatmul.msk.f32.vlgmr.msrb.gmra.mxu3 %vm931_vm3, %v1018_v62  ;;  %2061 = vmatmul.msk.f32.vlgmr.msrb.gmra.mxu0 %vm931_vm3, %v1054_v63  ;;  %v1126_v4 = vld [vmem:[#allocation3 + $0x6] sm:$0x3]  ;;  %v624_v6 = vpop.f32.mrf.mxu0  ;;  %v2125_v56 = vld [vmem:[%s2475_s9 + $0x1f8] sm:$0xff]  ;;  %v2158_v63 = vld [vmem:[%s2475_s9 + $0x2d0] sm:$0x3] }
 0x166   : > { %2070 = vmatmul.msk.f32.vlgmr.msrb.gmra.mxu1 %vm931_vm3, %v1090_v0  ;;  %2079 = vmatmul.msk.f32.vlgmr.msrb.gmra.mxu2 %vm931_vm3, %v1126_v4  ;;  %v625_v9 = vadd.f32 %v2510_v3, %v624_v6  ;;  %v2167_v0 = vld [vmem:[%s2475_s9 + $0x308] sm:$0x3]  ;;  %v968_v6 = vld [vmem:[#allocation2 + $0x52] sm:$0xff] }
 0x167   : > { %v928_v12 = vmax.f32 %v898_v2, 0.0  ;;  %2123 = vmatpush.msk.msrb.mxu3 %vm1029_vm2, %v2122_v59  ;;  %2132 = vmatpush.msk.msrb.mxu0 %vm1029_vm2, %v2131_v60  ;;  %v716_v15 = vpop.f32.mrf.mxu1  ;;  %v2134_v59 = vld [vmem:[%s2475_s9 + $0x230] sm:$0xff]  ;;  %v2143_v60 = vld [vmem:[%s2475_s9 + $0x268] sm:$0xff]  ;;  %v2185_v2 = vld [vmem:[%s2475_s9 + $0x378] sm:$0x3] }
 0x168   : > { %v987_v16 = vld [vmem:[#allocation2 + $0xa6] sm:$0xff]  ;;  %2141 = vmatpush.msk.msrb.mxu1 %vm1029_vm2, %v2140_v61  ;;  %2150 = vmatpush.msk.msrb.mxu2 %vm1029_vm2, %v2149_v5  ;;  %v717_v17 = vadd.f32 %v716_v15, %v625_v9 }
 0x169   : > { %v994_v21 = vmax.f32 %v980_v8, %v987_v16  ;;  %954 = vst.msk [vmem:[#allocation2 + $0xb0] sm:$0xff] %vm931_vm3, %v928_v12  ;;  %1331 = vmatpush.msrb.mxu3 %v2121_v10  ;;  %1367 = vmatpush.msrb.mxu0 %v2130_v11  ;;  %v961_v5 = vld [vmem:[#allocation2 + $0x20] sm:$0xff]  ;;  %v2175_v11 = vld [vmem:[%s2475_s9 + $0x338] sm:$0xff]  ;;  %v2184_v12 = vld [vmem:[%s2475_s9 + $0x370] sm:$0xff] }
 0x16a   : > { %1403 = vmatpush.msrb.mxu1 %v2139_v13  ;;  %1439 = vmatpush.msrb.mxu2 %v2148_v14  ;;  %v808_v24 = vpop.f32.mrf.mxu2  ;;  %v2166_v8 = vld [vmem:[%s2475_s9 + $0x300] sm:$0xff]  ;;  %v975_v16 = vmax.f32 %v961_v5, %v968_v6  ;;  %v2210_v5 = vld [vmem:[%s2475_s9 + $0x410] sm:$0xff]  ;;  %v2219_v6 = vld [vmem:[%s2475_s9 + $0x448] sm:$0xff] }
 0x16b   : > { %v1001_v27 = vmax.f32 %v973_v20, %v994_v21  ;;  %1332 = vmatpush.msrb.mxu3 %v2120_v18  ;;  %1368 = vmatpush.msrb.mxu0 %v2129_v19  ;;  %v809_v28 = vadd.f32 %v808_v24, %v717_v17  ;;  %v982_v9 = vld [vmem:[#allocation2 + $0x84] sm:$0xff]  ;;  %v2165_v21 = vld [vmem:[%s2475_s9 + $0x2f8] sm:$0xff] }
 0x16c   : > { %v900_v31 = vpop.f32.mrf.mxu3  ;;  %1404 = vmatpush.msrb.mxu1 %v2138_v22  ;;  %1440 = vmatpush.msrb.mxu2 %v2147_v23  ;;  %v1162_v32 = vld [vmem:[#allocation3 + $0x8] sm:$0x3]  ;;  %v1198_v33 = vld [vmem:[#allocation3 + $0xa] sm:$0x3]  ;;  %v1234_v35 = vld [vmem:[#allocation3 + $0xc] sm:$0x3] }
 0x16d   : > { %1008 = vst.msk [vmem:[#allocation3 + $0x10] sm:$0xff] %vm931_vm3, %v1001_v27  ;;  %1333 = vmatpush.msrb.mxu3 %v2119_v25  ;;  %1369 = vmatpush.msrb.mxu0 %v2128_v26  ;;  %v901_v34 = vadd.f32 %v900_v31, %v809_v28  ;;  %v1270_v36 = vld [vmem:[#allocation3 + $0xe] sm:$0x3]  ;;  %v627_v37 = vpop.f32.mrf.mxu0  ;;  %v2156_v20 = vld [vmem:[%s2475_s9 + $0x2c0] sm:$0xff]  ;;  %v2183_v24 = vld [vmem:[%s2475_s9 + $0x368] sm:$0xff] }
 0x16e   : > { %1405 = vmatpush.msrb.mxu1 %v2137_v29  ;;  %1441 = vmatpush.msrb.mxu2 %v2146_v30  ;;  %v628_v42 = vadd.f32 %v2510_v3, %v627_v37  ;;  %v2126_v3 = vld [vmem:[%s2475_s9 + $0x200] sm:$0xff]  ;;  %v2174_v23 = vld [vmem:[%s2475_s9 + $0x330] sm:$0xff]  ;;  %v2155_v26 = vld [vmem:[%s2475_s9 + $0x2b8] sm:$0xff] }
 0x16f   : > { %v929_v44 = vmax.f32 %v901_v34, 0.0  ;;  %2088 = vmatmul.msk.f32.vlgmr.msra.gmra.mxu3 %vm931_vm3, %v1162_v32  ;;  %2097 = vmatmul.msk.f32.vlgmr.msra.gmra.mxu0 %vm931_vm3, %v1198_v33  ;;  %v719_v47 = vpop.f32.mrf.mxu1  ;;  %v969_v25 = vld [vmem:[#allocation2 + $0x5a] sm:$0xff]  ;;  %v2164_v27 = vld [vmem:[%s2475_s9 + $0x2f0] sm:$0xff]  ;;  %v962_v28 = vld [vmem:[#allocation2 + $0x28] sm:$0xff] }
 0x170   : > { %v988_v48 = vld [vmem:[#allocation2 + $0xae] sm:$0xff]  ;;  %2106 = vmatmul.msk.f32.vlgmr.msra.gmra.mxu1 %vm931_vm3, %v1234_v35  ;;  %2115 = vmatmul.msk.f32.vlgmr.msra.gmra.mxu2 %vm931_vm3, %v1270_v36  ;;  %v720_v50 = vadd.f32 %v719_v47, %v628_v42  ;;  %v970_v29 = vld [vmem:[#allocation2 + $0x62] sm:$0x3]  ;;  %v2171_v47 = vld [vmem:[%s2475_s9 + $0x318] sm:$0xff] }
 0x171   : > { %v995_v52 = vmax.f32 %v981_v43, %v988_v48  ;;  %955 = vst.msk [vmem:[#allocation2 + $0xb8] sm:$0xff] %vm931_vm3, %v929_v44  ;;  %1334 = vmatpush.msrb.mxu3 %v2118_v40  ;;  %1370 = vmatpush.msrb.mxu0 %v2127_v41  ;;  %v2173_v30 = vld [vmem:[%s2475_s9 + $0x328] sm:$0xff]  ;;  %v2182_v31 = vld [vmem:[%s2475_s9 + $0x360] sm:$0xff]  ;;  %v963_v32 = vld [vmem:[#allocation2 + $0x30] sm:$0x3]  ;;  %v976_v40 = vmax.f32 %v962_v28, %v969_v25 }
 0x172   : > { %1406 = vmatpush.msrb.mxu1 %v2136_v45  ;;  %1442 = vmatpush.msrb.mxu2 %v2145_v46  ;;  %v811_v57 = vpop.f32.mrf.mxu2  ;;  %v983_v33 = vld [vmem:[#allocation2 + $0x8c] sm:$0xff]  ;;  %v984_v34 = vld [vmem:[#allocation2 + $0x94] sm:$0x3]  ;;  %v2172_v37 = vld [vmem:[%s2475_s9 + $0x320] sm:$0xff]  ;;  %v977_v44 = vmax.f32 %v963_v32, %v970_v29 }
 0x173   : > { %v1002_v58 = vmax.f32 %v974_v51, %v995_v52  ;;  %1335 = vmatpush.msrb.mxu3 %v2117_v49  ;;  %1371 = vmatpush.msrb.mxu0 %v2126_v3  ;;  %v812_v61 = vadd.f32 %v811_v57, %v720_v50  ;;  %v2154_v35 = vld [vmem:[%s2475_s9 + $0x2b0] sm:$0xff]  ;;  %v2163_v36 = vld [vmem:[%s2475_s9 + $0x2e8] sm:$0xff]  ;;  %v2162_v43 = vld [vmem:[%s2475_s9 + $0x2e0] sm:$0xff] }
 0x174   : > { %v903_v62 = vpop.f32.mrf.mxu3  ;;  %1407 = vmatpush.msrb.mxu1 %v2135_v53  ;;  %1443 = vmatpush.msrb.mxu2 %v2144_v54  ;;  %v1306_v14 = vld [vmem:[#allocation3 + $0x10] sm:$0x3]  ;;  %v1342_v15 = vld [vmem:[#allocation3 + $0x12] sm:$0x3]  ;;  %v1378_v18 = vld [vmem:[#allocation3 + $0x14] sm:$0x3] }
 0x175   : > { %1009 = vst.msk [vmem:[#allocation3 + $0x18] sm:$0xff] %vm931_vm3, %v1002_v58  ;;  %1336 = vmatpush.msrb.mxu3 %v2116_v55  ;;  %1372 = vmatpush.msrb.mxu0 %v2125_v56  ;;  %v904_v4 = vadd.f32 %v903_v62, %v812_v61  ;;  %v1414_v19 = vld [vmem:[#allocation3 + $0x16] sm:$0x3]  ;;  %v2180_v48 = vld [vmem:[%s2475_s9 + $0x350] sm:$0xff]  ;;  %v2152_v49 = vld [vmem:[%s2475_s9 + $0x2a0] sm:$0xff] }
 0x176   : > { %1408 = vmatpush.msrb.mxu1 %v2134_v59  ;;  %1444 = vmatpush.msrb.mxu2 %v2143_v60  ;;  %v2161_v3 = vld [vmem:[%s2475_s9 + $0x2d8] sm:$0xff]  ;;  %v2170_v52 = vld [vmem:[%s2475_s9 + $0x310] sm:$0xff]  ;;  %v2179_v53 = vld [vmem:[%s2475_s9 + $0x348] sm:$0xff] }
 0x177   : > { %2159 = vmatpush.msk.msra.mxu3 %vm1029_vm2, %v2158_v63  ;;  %2168 = vmatpush.msk.msra.mxu0 %vm1029_vm2, %v2167_v0  ;;  %v930_v10 = vmax.f32 %v904_v4, 0.0  ;;  %v2194_v54 = vld [vmem:[%s2475_s9 + $0x3b0] sm:$0x3]  ;;  %v2203_v55 = vld [vmem:[%s2475_s9 + $0x3e8] sm:$0x3]  ;;  %v2202_v63 = vld [vmem:[%s2475_s9 + $0x3e0] sm:$0xff] }
 0x178   : > { %v989_v13 = vld [vmem:[#allocation2 + $0xb6] sm:$0xff]  ;;  %2177 = vmatpush.msk.msra.mxu1 %vm1029_vm2, %v2176_v1  ;;  %2186 = vmatpush.msk.msra.mxu2 %vm1029_vm2, %v2185_v2  ;;  %v2212_v56 = vld [vmem:[%s2475_s9 + $0x420] sm:$0x3]  ;;  %v2193_v62 = vld [vmem:[%s2475_s9 + $0x3a8] sm:$0xff] }
 0x179   : > { %v996_v17 = vmax.f32 %v982_v9, %v989_v13  ;;  %956 = vst.msk [vmem:[#allocation2 + $0xc0] sm:$0xff] %vm931_vm3, %v930_v10  ;;  %1475 = vmatpush.msra.mxu3 %v2157_v7  ;;  %1511 = vmatpush.msra.mxu0 %v2166_v8  ;;  %v2221_v61 = vld [vmem:[%s2475_s9 + $0x458] sm:$0x3]  ;;  %v2220_v1 = vld [vmem:[%s2475_s9 + $0x450] sm:$0xff]  ;;  %v2192_v2 = vld [vmem:[%s2475_s9 + $0x3a0] sm:$0xff] }
 0x17a   : > { %1547 = vmatpush.msra.mxu1 %v2175_v11  ;;  %1583 = vmatpush.msra.mxu2 %v2184_v12  ;;  %v2211_v0 = vld [vmem:[%s2475_s9 + $0x418] sm:$0xff]  ;;  %v2200_v8 = vld [vmem:[%s2475_s9 + $0x3d0] sm:$0xff]  ;;  %v2209_v9 = vld [vmem:[%s2475_s9 + $0x408] sm:$0xff] }
 0x17b   : > { %v1003_v22 = vmax.f32 %v975_v16, %v996_v17  ;;  %2124 = vmatmul.msk.f32.vlgmr.msrb.gmra.mxu3 %vm931_vm3, %v1306_v14  ;;  %2133 = vmatmul.msk.f32.vlgmr.msrb.gmra.mxu0 %vm931_vm3, %v1342_v15  ;;  %v2201_v4 = vld [vmem:[%s2475_s9 + $0x3d8] sm:$0xff]  ;;  %v2218_v10 = vld [vmem:[%s2475_s9 + $0x440] sm:$0xff]  ;;  %v2190_v11 = vld [vmem:[%s2475_s9 + $0x390] sm:$0xff] }
 0x17c   : > { %2142 = vmatmul.msk.f32.vlgmr.msrb.gmra.mxu1 %vm931_vm3, %v1378_v18  ;;  %2151 = vmatmul.msk.f32.vlgmr.msrb.gmra.mxu2 %vm931_vm3, %v1414_v19  ;;  %v1450_v57 = vld [vmem:[#allocation3 + $0x18] sm:$0x3]  ;;  %v1486_v58 = vld [vmem:[#allocation3 + $0x1a] sm:$0x3]  ;;  %v1522_v59 = vld [vmem:[#allocation3 + $0x1c] sm:$0x3] }
 0x17d   : > { %1010 = vst.msk [vmem:[#allocation3 + $0x20] sm:$0xff] %vm931_vm3, %v1003_v22  ;;  %1476 = vmatpush.msra.mxu3 %v2156_v20  ;;  %1512 = vmatpush.msra.mxu0 %v2165_v21  ;;  %v1558_v60 = vld [vmem:[#allocation3 + $0x1e] sm:$0x3]  ;;  %v2191_v7 = vld [vmem:[%s2475_s9 + $0x398] sm:$0xff]  ;;  %v2199_v12 = vld [vmem:[%s2475_s9 + $0x3c8] sm:$0xff] }
 0x17e   : > { %1548 = vmatpush.msra.mxu1 %v2174_v23  ;;  %1584 = vmatpush.msra.mxu2 %v2183_v24  ;;  %v2208_v13 = vld [vmem:[%s2475_s9 + $0x400] sm:$0xff]  ;;  %v2217_v14 = vld [vmem:[%s2475_s9 + $0x438] sm:$0xff]  ;;  %v2189_v15 = vld [vmem:[%s2475_s9 + $0x388] sm:$0xff] }
 0x17f   : > { %1477 = vmatpush.msra.mxu3 %v2155_v26  ;;  %1513 = vmatpush.msra.mxu0 %v2164_v27  ;;  %v2198_v16 = vld [vmem:[%s2475_s9 + $0x3c0] sm:$0xff]  ;;  %v2207_v17 = vld [vmem:[%s2475_s9 + $0x3f8] sm:$0xff]  ;;  %v2216_v18 = vld [vmem:[%s2475_s9 + $0x430] sm:$0xff] }
 0x180   : > { %v990_v41 = vld [vmem:[#allocation2 + $0xbe] sm:$0xff]  ;;  %v991_v42 = vld [vmem:[#allocation2 + $0xc6] sm:$0x3]  ;;  %1549 = vmatpush.msra.mxu1 %v2173_v30  ;;  %1585 = vmatpush.msra.mxu2 %v2182_v31  ;;  %v2206_v21 = vld [vmem:[%s2475_s9 + $0x3f0] sm:$0xff] }
 0x181   : > { %v997_v45 = vmax.f32 %v983_v33, %v990_v41  ;;  %v998_v46 = vmax.f32 %v984_v34, %v991_v42  ;;  %1478 = vmatpush.msra.mxu3 %v2154_v35  ;;  %1514 = vmatpush.msra.mxu0 %v2163_v36  ;;  %v2188_v19 = vld [vmem:[%s2475_s9 + $0x380] sm:$0xff]  ;;  %v2197_v20 = vld [vmem:[%s2475_s9 + $0x3b8] sm:$0xff]  ;;  %v2215_v22 = vld [vmem:[%s2475_s9 + $0x428] sm:$0xff] }
 0x182   : > { %1550 = vmatpush.msra.mxu1 %v2172_v37  ;;  %1586 = vmatpush.msra.mxu2 %v2181_v38  ;;  %v2230_v23 = vld [vmem:[%s2475_s9 + $0x490] sm:$0x3]  ;;  %v2239_v24 = vld [vmem:[%s2475_s9 + $0x4c8] sm:$0x3]  ;;  %v2248_v27 = vld [vmem:[%s2475_s9 + $0x500] sm:$0x3] }
 0x183   : > { %v1004_v50 = vmax.f32 %v976_v40, %v997_v45  ;;  %v1005_v51 = vmax.f32 %v977_v44, %v998_v46  ;;  %1479 = vmatpush.msra.mxu3 %v2153_v39  ;;  %1515 = vmatpush.msra.mxu0 %v2162_v43  ;;  %v2257_v30 = vld [vmem:[%s2475_s9 + $0x538] sm:$0x3]  ;;  %v2229_v31 = vld [vmem:[%s2475_s9 + $0x488] sm:$0xff]  ;;  %v2238_v32 = vld [vmem:[%s2475_s9 + $0x4c0] sm:$0xff] }
 0x184   : > { %1551 = vmatpush.msra.mxu1 %v2171_v47  ;;  %1587 = vmatpush.msra.mxu2 %v2180_v48  ;;  %v1594_v25 = vld [vmem:[#allocation3 + $0x20] sm:$0x3]  ;;  %v1630_v26 = vld [vmem:[#allocation3 + $0x22] sm:$0x3]  ;;  %v1666_v28 = vld [vmem:[#allocation3 + $0x24] sm:$0x3] }
 0x185   : > { %1011 = vst.msk [vmem:[#allocation3 + $0x28] sm:$0xff] %vm931_vm3, %v1004_v50  ;;  %1480 = vmatpush.msra.mxu3 %v2152_v49  ;;  %1516 = vmatpush.msra.mxu0 %v2161_v3  ;;  %v1702_v29 = vld [vmem:[#allocation3 + $0x26] sm:$0x3]  ;;  %v2247_v33 = vld [vmem:[%s2475_s9 + $0x4f8] sm:$0xff]  ;;  %v2256_v34 = vld [vmem:[%s2475_s9 + $0x530] sm:$0xff] }
 0x186   : > { %1013 = vst.msk [vmem:[#allocation3 + $0x30] sm:$0x3] %vm1012_vm4, %v1005_v51  ;;  %1552 = vmatpush.msra.mxu1 %v2170_v52  ;;  %1588 = vmatpush.msra.mxu2 %v2179_v53  ;;  %v2228_v35 = vld [vmem:[%s2475_s9 + $0x480] sm:$0xff]  ;;  %v2237_v36 = vld [vmem:[%s2475_s9 + $0x4b8] sm:$0xff]  ;;  %v2246_v37 = vld [vmem:[%s2475_s9 + $0x4f0] sm:$0xff] }
 0x187   : > { %2160 = vmatmul.msk.f32.vlgmr.msra.gmra.mxu3 %vm931_vm3, %v1450_v57  ;;  %2169 = vmatmul.msk.f32.vlgmr.msra.gmra.mxu0 %vm931_vm3, %v1486_v58  ;;  %v2255_v38 = vld [vmem:[%s2475_s9 + $0x528] sm:$0xff]  ;;  %v2227_v39 = vld [vmem:[%s2475_s9 + $0x478] sm:$0xff]  ;;  %v2236_v40 = vld [vmem:[%s2475_s9 + $0x4b0] sm:$0xff] }
 0x188   : > { %2178 = vmatmul.msk.f32.vlgmr.msra.gmra.mxu1 %vm931_vm3, %v1522_v59  ;;  %2187 = vmatmul.msk.f32.vlgmr.msra.gmra.mxu2 %vm931_vm3, %v1558_v60  ;;  %v2245_v41 = vld [vmem:[%s2475_s9 + $0x4e8] sm:$0xff]  ;;  %v2254_v42 = vld [vmem:[%s2475_s9 + $0x520] sm:$0xff]  ;;  %v2226_v43 = vld [vmem:[%s2475_s9 + $0x470] sm:$0xff] }
 0x189   : > { %2195 = vmatpush.msk.msrb.mxu3 %vm1029_vm2, %v2194_v54  ;;  %2204 = vmatpush.msk.msrb.mxu0 %vm1029_vm2, %v2203_v55  ;;  %v2235_v44 = vld [vmem:[%s2475_s9 + $0x4a8] sm:$0xff]  ;;  %v2244_v45 = vld [vmem:[%s2475_s9 + $0x4e0] sm:$0xff]  ;;  %v2253_v46 = vld [vmem:[%s2475_s9 + $0x518] sm:$0xff] }
 0x18a   : > { %2213 = vmatpush.msk.msrb.mxu1 %vm1029_vm2, %v2212_v56  ;;  %2222 = vmatpush.msk.msrb.mxu2 %vm1029_vm2, %v2221_v61  ;;  %v2225_v47 = vld [vmem:[%s2475_s9 + $0x468] sm:$0xff]  ;;  %v2234_v48 = vld [vmem:[%s2475_s9 + $0x4a0] sm:$0xff]  ;;  %v2243_v49 = vld [vmem:[%s2475_s9 + $0x4d8] sm:$0xff] }
 0x18b   : > { %1619 = vmatpush.msrb.mxu3 %v2193_v62  ;;  %1655 = vmatpush.msrb.mxu0 %v2202_v63  ;;  %v2252_v3 = vld [vmem:[%s2475_s9 + $0x510] sm:$0xff]  ;;  %v2224_v50 = vld [vmem:[%s2475_s9 + $0x460] sm:$0xff]  ;;  %v2233_v51 = vld [vmem:[%s2475_s9 + $0x498] sm:$0xff] }
 0x18c   : > { %1691 = vmatpush.msrb.mxu1 %v2211_v0  ;;  %1727 = vmatpush.msrb.mxu2 %v2220_v1  ;;  %v2242_v52 = vld [vmem:[%s2475_s9 + $0x4d0] sm:$0xff]  ;;  %v2251_v53 = vld [vmem:[%s2475_s9 + $0x508] sm:$0xff]  ;;  %v2264_v60 = vld [vmem:[%s2475_s9 + $0x560] sm:$0xff] }
 0x18d   : > { %1620 = vmatpush.msrb.mxu3 %v2192_v2  ;;  %1656 = vmatpush.msrb.mxu0 %v2201_v4  ;;  %v1738_v54 = vld [vmem:[#allocation3 + $0x28] sm:$0x3]  ;;  %v1774_v55 = vld [vmem:[#allocation3 + $0x2a] sm:$0x3]  ;;  %v1810_v57 = vld [vmem:[#allocation3 + $0x2c] sm:$0x3] }
 0x18e   : > { %1692 = vmatpush.msrb.mxu1 %v2210_v5  ;;  %1728 = vmatpush.msrb.mxu2 %v2219_v6  ;;  %v2266_v56 = vld [vmem:[%s2475_s9 + $0x570] sm:$0x3]  ;;  %v1846_v58 = vld [vmem:[#allocation3 + $0x2e] sm:$0x3]  ;;  %v2265_v59 = vld [vmem:[%s2475_s9 + $0x568] sm:$0xff] }
 0x18f   : > { %1621 = vmatpush.msrb.mxu3 %v2191_v7  ;;  %1657 = vmatpush.msrb.mxu0 %v2200_v8  ;;  %v2263_v61 = vld [vmem:[%s2475_s9 + $0x558] sm:$0xff]  ;;  %v2262_v62 = vld [vmem:[%s2475_s9 + $0x550] sm:$0xff]  ;;  %v2261_v63 = vld [vmem:[%s2475_s9 + $0x548] sm:$0xff] }
 0x190   : > { %1693 = vmatpush.msrb.mxu1 %v2209_v9  ;;  %1729 = vmatpush.msrb.mxu2 %v2218_v10  ;;  %v2260_v0 = vld [vmem:[%s2475_s9 + $0x540] sm:$0xff]  ;;  %v1882_v1 = vld [vmem:[#allocation3 + $0x30] sm:$0x3] }
 0x191   : > { %1622 = vmatpush.msrb.mxu3 %v2190_v11  ;;  %1658 = vmatpush.msrb.mxu0 %v2199_v12  ;;  %v2283_v2 = vld [vmem:[%s286_s14] ss:$0 sm:$0xff] }
 0x192   : > { %1694 = vmatpush.msrb.mxu1 %v2208_v13  ;;  %1730 = vmatpush.msrb.mxu2 %v2217_v14 }
 0x193   : > { %1623 = vmatpush.msrb.mxu3 %v2189_v15  ;;  %1659 = vmatpush.msrb.mxu0 %v2198_v16 }
 0x194   : > { %1695 = vmatpush.msrb.mxu1 %v2207_v17  ;;  %1731 = vmatpush.msrb.mxu2 %v2216_v18 }
 0x195   : > { %1624 = vmatpush.msrb.mxu3 %v2188_v19  ;;  %1660 = vmatpush.msrb.mxu0 %v2197_v20 }
 0x196   : > { %1696 = vmatpush.msrb.mxu1 %v2206_v21  ;;  %1732 = vmatpush.msrb.mxu2 %v2215_v22 }
 0x197   : > { %2196 = vmatmul.msk.f32.vlgmr.msrb.gmra.mxu3 %vm931_vm3, %v1594_v25  ;;  %2205 = vmatmul.msk.f32.vlgmr.msrb.gmra.mxu0 %vm931_vm3, %v1630_v26 }
 0x198   : > { %2214 = vmatmul.msk.f32.vlgmr.msrb.gmra.mxu1 %vm931_vm3, %v1666_v28  ;;  %2223 = vmatmul.msk.f32.vlgmr.msrb.gmra.mxu2 %vm931_vm3, %v1702_v29 }
 0x199   : > { %2231 = vmatpush.msk.msra.mxu3 %vm1029_vm2, %v2230_v23  ;;  %2240 = vmatpush.msk.msra.mxu0 %vm1029_vm2, %v2239_v24 }
 0x19a   : > { %2249 = vmatpush.msk.msra.mxu1 %vm1029_vm2, %v2248_v27  ;;  %2258 = vmatpush.msk.msra.mxu2 %vm1029_vm2, %v2257_v30 }
 0x19b   : > { %1763 = vmatpush.msra.mxu3 %v2229_v31  ;;  %1799 = vmatpush.msra.mxu0 %v2238_v32 }
 0x19c   : > { %1835 = vmatpush.msra.mxu1 %v2247_v33  ;;  %1871 = vmatpush.msra.mxu2 %v2256_v34 }
 0x19d   : > { %1764 = vmatpush.msra.mxu3 %v2228_v35  ;;  %1800 = vmatpush.msra.mxu0 %v2237_v36 }
 0x19e   : > { %1836 = vmatpush.msra.mxu1 %v2246_v37  ;;  %1872 = vmatpush.msra.mxu2 %v2255_v38 }
 0x19f   : > { %1765 = vmatpush.msra.mxu3 %v2227_v39  ;;  %1801 = vmatpush.msra.mxu0 %v2236_v40 }
 0x1a0   : > { %1837 = vmatpush.msra.mxu1 %v2245_v41  ;;  %1873 = vmatpush.msra.mxu2 %v2254_v42 }
 0x1a1   : > { %1766 = vmatpush.msra.mxu3 %v2226_v43  ;;  %1802 = vmatpush.msra.mxu0 %v2235_v44 }
 0x1a2   : > { %1838 = vmatpush.msra.mxu1 %v2244_v45  ;;  %1874 = vmatpush.msra.mxu2 %v2253_v46 }
 0x1a3   : > { %1767 = vmatpush.msra.mxu3 %v2225_v47  ;;  %1803 = vmatpush.msra.mxu0 %v2234_v48 }
 0x1a4   : > { %1839 = vmatpush.msra.mxu1 %v2243_v49  ;;  %1875 = vmatpush.msra.mxu2 %v2252_v3 }
 0x1a5   : > { %1768 = vmatpush.msra.mxu3 %v2224_v50  ;;  %1804 = vmatpush.msra.mxu0 %v2233_v51 }
 0x1a6   : > { %1840 = vmatpush.msra.mxu1 %v2242_v52  ;;  %1876 = vmatpush.msra.mxu2 %v2251_v53 }
 0x1a7   : > { %2232 = vmatmul.msk.f32.vlgmr.msra.gmra.mxu3 %vm931_vm3, %v1738_v54  ;;  %2241 = vmatmul.msk.f32.vlgmr.msra.gmra.mxu0 %vm931_vm3, %v1774_v55 }
 0x1a8   : > { %2250 = vmatmul.msk.f32.vlgmr.msra.gmra.mxu1 %vm931_vm3, %v1810_v57  ;;  %2259 = vmatmul.msk.f32.vlgmr.msra.gmra.mxu2 %vm931_vm3, %v1846_v58 }
 0x1a9   : > { %2267 = vmatpush.msk.msrb.mxu3 %vm1029_vm2, %v2266_v56 }
 0x1ab   : > { %1907 = vmatpush.msrb.mxu3 %v2265_v59 }
 0x1ad   : > { %1908 = vmatpush.msrb.mxu3 %v2264_v60 }
 0x1af   : > { %1909 = vmatpush.msrb.mxu3 %v2263_v61 }
 0x1b1   : > { %1910 = vmatpush.msrb.mxu3 %v2262_v62 }
 0x1b3   : > { %1911 = vmatpush.msrb.mxu3 %v2261_v63 }
 0x1b5   : > { %1912 = vmatpush.msrb.mxu3 %v2260_v0 }
 0x1b6   : > { %2268 = vmatmul.msk.f32.vlgmr.msrb.gmra.mxu3 %vm931_vm3, %v1882_v1 }
 0x1e2   : > { %v1086_v6 = vpop.f32.mrf.mxu0 }
 0x1e3   : > { %v1122_v8 = vpop.f32.mrf.mxu1 }
 0x1e8   : > { %v1050_v4 = vpop.f32.mrf.mxu3 }
 0x1e9   : > { %v1053_v5 = vadd.f32 %v2283_v2, %v1050_v4  ;;  %v1158_v10 = vpop.f32.mrf.mxu2 }
 0x1eb   : > { %v1089_v7 = vadd.f32 %v1086_v6, %v1053_v5 }
 0x1ec   : > { %v1230_v14 = vpop.f32.mrf.mxu0 }
 0x1ed   : > { %v1125_v9 = vadd.f32 %v1122_v8, %v1089_v7  ;;  %v1266_v16 = vpop.f32.mrf.mxu1 }
 0x1ef   : > { %v1161_v11 = vadd.f32 %v1158_v10, %v1125_v9 }
 0x1f2   : > { %v1194_v12 = vpop.f32.mrf.mxu3 }
 0x1f3   : > { %v1197_v13 = vadd.f32 %v1194_v12, %v1161_v11  ;;  %v1302_v18 = vpop.f32.mrf.mxu2 }
 0x1f5   : > { %v1233_v15 = vadd.f32 %v1230_v14, %v1197_v13 }
 0x1f7   : > { %v1269_v17 = vadd.f32 %v1266_v16, %v1233_v15 }
 0x1f8   : > { %v1374_v22 = vpop.f32.mrf.mxu0 }
 0x1f9   : > { %v1305_v19 = vadd.f32 %v1302_v18, %v1269_v17  ;;  %v1410_v24 = vpop.f32.mrf.mxu1 }
 0x1fe   : > { %v1338_v20 = vpop.f32.mrf.mxu3 }
 0x1ff   : > { %v1341_v21 = vadd.f32 %v1338_v20, %v1305_v19  ;;  %v1446_v26 = vpop.f32.mrf.mxu2 }
 0x201   : > { %v1377_v23 = vadd.f32 %v1374_v22, %v1341_v21 }
 0x203   : > { %v1413_v25 = vadd.f32 %v1410_v24, %v1377_v23 }
 0x204   : > { %v1518_v30 = vpop.f32.mrf.mxu0 }
 0x205   : > { %v1449_v28 = vadd.f32 %v1446_v26, %v1413_v25  ;;  %v1554_v32 = vpop.f32.mrf.mxu1 }
 0x20a   : > { %v1482_v27 = vpop.f32.mrf.mxu3 }
 0x20b   : > { %v1485_v29 = vadd.f32 %v1482_v27, %v1449_v28  ;;  %v1590_v34 = vpop.f32.mrf.mxu2 }
 0x20d   : > { %v1521_v31 = vadd.f32 %v1518_v30, %v1485_v29 }
 0x20f   : > { %v1557_v33 = vadd.f32 %v1554_v32, %v1521_v31 }
 0x211   : > { %v1593_v36 = vadd.f32 %v1590_v34, %v1557_v33 }
 0x214   : > { %v1662_v38 = vpop.f32.mrf.mxu0 }
 0x215   : > { %v1698_v40 = vpop.f32.mrf.mxu1 }
 0x21a   : > { %v1626_v35 = vpop.f32.mrf.mxu3 }
 0x21b   : > { %v1629_v37 = vadd.f32 %v1626_v35, %v1593_v36  ;;  %v1734_v42 = vpop.f32.mrf.mxu2 }
 0x21d   : > { %v1665_v39 = vadd.f32 %v1662_v38, %v1629_v37 }
 0x21f   : > { %v1701_v41 = vadd.f32 %v1698_v40, %v1665_v39 }
 0x221   : > { %v1737_v43 = vadd.f32 %v1734_v42, %v1701_v41 }
 0x224   : > { %v1806_v46 = vpop.f32.mrf.mxu0 }
 0x225   : > { %v1842_v48 = vpop.f32.mrf.mxu1 }
 0x22a   : > { %v1770_v44 = vpop.f32.mrf.mxu3 }
 0x22b   : > { %v1773_v45 = vadd.f32 %v1770_v44, %v1737_v43  ;;  %v1878_v3 = vpop.f32.mrf.mxu2 }
 0x22d   : > { %v1809_v47 = vadd.f32 %v1806_v46, %v1773_v45 }
 0x22f   : > { %v1845_v49 = vadd.f32 %v1842_v48, %v1809_v47 }
 0x231   : > { %v1881_v50 = vadd.f32 %v1878_v3, %v1845_v49 }
 0x239   : > { %v1914_v51 = vpop.f32.mrf.mxu3 }
 0x23a   : > { %v1917_v52 = vadd.f32 %v1914_v51, %v1881_v50 }
 0x23c   : > { %v1918_v53 = vmax.f32 %v1917_v52, 0.0 }
 0x23e   : > { %1920 = vst.msk [vmem:[%s290_s22] sm:$0x3] %vm1919_vm5, %v1918_v53 }
 0x23f PF: > { %s15_s18 = sadd.s32 1, %s2290_s18  }
 0x240   : > { %p12_p4 = scmp.ge.s32.totalorder %s15_s18, 11  }
 0x242   :  { %14 = sbr.rel (!%p12_p4) target bundleno = 1 (0x1), region = 106 }

// kernel: multistream_cnn_forward.5
= control target key start
LH: loop header
LB: loop body
LE: loop exit
PB: predicated region body
PF: predicated region fallthrough
CT: control target
= control target key end

     0   :  { %vm24_vm0 = vcmask 261120   ;;  %s563_s0 = inlined_call_operand.vmem [shape: f32[9,2,32], index: 0, kind: input, shape index: {}]   ;;  %s564_s1 = inlined_call_operand.vmem [shape: f32[9,32,10], index: 1, kind: input, shape index: {}]   ;;  %s565_s2 = inlined_call_operand.vmem [shape: f32[1,10], index: 2, kind: input, shape index: {}]   ;;  %s566_s3 = inlined_call_operand.hbm [shape: f32[2,10], index: 3, kind: output, shape index: {}]  }
   0x1   :  { %v326_v0 = vld [vmem:[%s564_s1 + $0x58] sm:$0xff]  ;;  %v325_v2 = vld [vmem:[%s564_s1 + $0x50] sm:$0xff]  ;;  %v324_v6 = vld [vmem:[%s564_s1 + $0x48] sm:$0xff] }
   0x2   :  { %v23_v1 = vld [vmem:[%s564_s1 + $0x18] sm:$0xff]  ;;  %102 = vmatpush.msra.mxu2 %v326_v0  ;;  %v22_v4 = vld [vmem:[%s564_s1 + $0x10] sm:$0xff]  ;;  %v21_v8 = vld [vmem:[%s564_s1 + $0x8] sm:$0xff] }
   0x3   :  { %40 = vmatpush.msra.mxu0 %v23_v1  ;;  %v332_v3 = vld [vmem:[%s564_s1 + $0x78] sm:$0xff]  ;;  %v331_v7 = vld [vmem:[%s564_s1 + $0x70] sm:$0xff]  ;;  %v330_v10 = vld [vmem:[%s564_s1 + $0x68] sm:$0xff] }
   0x4   :  { %v320_v5 = vld [vmem:[%s564_s1 + $0x38] sm:$0xff]  ;;  %133 = vmatpush.msra.mxu3 %v332_v3  ;;  %103 = vmatpush.msra.mxu2 %v325_v2  ;;  %v319_v9 = vld [vmem:[%s564_s1 + $0x30] sm:$0xff]  ;;  %v323_v11 = vld [vmem:[%s564_s1 + $0x40] sm:$0xff] }
   0x5   :  { %71 = vmatpush.msra.mxu1 %v320_v5  ;;  %41 = vmatpush.msra.mxu0 %v22_v4  ;;  %v20_v12 = vld [vmem:[%s564_s1] sm:$0xff]  ;;  %v318_v14 = vld [vmem:[%s564_s1 + $0x28] sm:$0xff]  ;;  %v350_v16 = vld [vmem:[%s564_s1 + $0xd8] sm:$0xff] }
   0x6   :  { %134 = vmatpush.msra.mxu3 %v331_v7  ;;  %104 = vmatpush.msra.mxu2 %v324_v6  ;;  %v322_v13 = vld [vmem:[%s563_s0 + $0x4] sm:$0x3]  ;;  %v19_v17 = vld [vmem:[%s563_s0] sm:$0x3]  ;;  %v328_v18 = vld [vmem:[%s563_s0 + $0x6] sm:$0x3] }
   0x7   :  { %72 = vmatpush.msra.mxu1 %v319_v9  ;;  %42 = vmatpush.msra.mxu0 %v21_v8  ;;  %v329_v15 = vld [vmem:[%s564_s1 + $0x60] sm:$0xff]  ;;  %v338_v19 = vld [vmem:[%s564_s1 + $0x98] sm:$0xff]  ;;  %v349_v20 = vld [vmem:[%s564_s1 + $0xd0] sm:$0xff] }
   0x8   :  { %135 = vmatpush.msra.mxu3 %v330_v10  ;;  %105 = vmatpush.msra.mxu2 %v323_v11  ;;  %v356_v21 = vld [vmem:[%s564_s1 + $0xf8] sm:$0xff]  ;;  %v317_v22 = vld [vmem:[%s564_s1 + $0x20] sm:$0xff]  ;;  %v337_v23 = vld [vmem:[%s564_s1 + $0x90] sm:$0xff] }
   0x9   :  { %73 = vmatpush.msra.mxu1 %v318_v14  ;;  %43 = vmatpush.msra.mxu0 %v20_v12  ;;  %v316_v24 = vld [vmem:[%s563_s0 + $0x2] sm:$0x3]  ;;  %v348_v25 = vld [vmem:[%s564_s1 + $0xc8] sm:$0xff]  ;;  %v344_v26 = vld [vmem:[%s564_s1 + $0xb8] sm:$0xff] }
   0xa   :  { %327 = vmatmul.msk.f32.vlgmr.msra.gmra.mxu2 %vm24_vm0, %v322_v13  ;;  %136 = vmatpush.msra.mxu3 %v329_v15  ;;  %v355_v27 = vld [vmem:[%s564_s1 + $0xf0] sm:$0xff]  ;;  %v336_v28 = vld [vmem:[%s564_s1 + $0x88] sm:$0xff]  ;;  %v347_v29 = vld [vmem:[%s564_s1 + $0xc0] sm:$0xff] }
   0xb   :  { %226 = vmatpush.msrb.mxu2 %v350_v16  ;;  %315 = vmatmul.msk.f32.vlgmr.msra.gmra.mxu0 %vm24_vm0, %v19_v17  ;;  %v343_v30 = vld [vmem:[%s564_s1 + $0xb0] sm:$0xff]  ;;  %v354_v31 = vld [vmem:[%s564_s1 + $0xe8] sm:$0xff]  ;;  %v335_v32 = vld [vmem:[%s564_s1 + $0x80] sm:$0xff] }
   0xc   :  { %333 = vmatmul.msk.f32.vlgmr.msra.gmra.mxu3 %vm24_vm0, %v328_v18  ;;  %164 = vmatpush.msrb.mxu0 %v338_v19  ;;  %v342_v33 = vld [vmem:[%s564_s1 + $0xa8] sm:$0xff]  ;;  %v353_v35 = vld [vmem:[%s564_s1 + $0xe0] sm:$0xff] }
   0xd   :  { %227 = vmatpush.msrb.mxu2 %v349_v20  ;;  %257 = vmatpush.msrb.mxu3 %v356_v21  ;;  %v346_v34 = vld [vmem:[%s563_s0 + $0xc] sm:$0x3] }
   0xe   :  { %74 = vmatpush.msra.mxu1 %v317_v22  ;;  %165 = vmatpush.msrb.mxu0 %v337_v23 }
   0xf   :  { %321 = vmatmul.msk.f32.vlgmr.msra.gmra.mxu1 %vm24_vm0, %v316_v24  ;;  %228 = vmatpush.msrb.mxu2 %v348_v25 }
  0x10   :  { %195 = vmatpush.msrb.mxu1 %v344_v26  ;;  %258 = vmatpush.msrb.mxu3 %v355_v27 }
  0x11   :  { %166 = vmatpush.msrb.mxu0 %v336_v28  ;;  %229 = vmatpush.msrb.mxu2 %v347_v29 }
  0x12   :  { %8 = vsyncpa [#allocation3], 0  ;;  %196 = vmatpush.msrb.mxu1 %v343_v30  ;;  %259 = vmatpush.msrb.mxu3 %v354_v31  ;;  %v334_v36 = vld [vmem:[%s563_s0 + $0x8] sm:$0x3]  ;;  %v352_v37 = vld [vmem:[%s563_s0 + $0xe] sm:$0x3] }
  0x13   :  { %167 = vmatpush.msrb.mxu0 %v335_v32  ;;  %351 = vmatmul.msk.f32.vlgmr.msrb.gmra.mxu2 %vm24_vm0, %v346_v34  ;;  %v341_v38 = vld [vmem:[%s564_s1 + $0xa0] sm:$0xff]  ;;  %v362_v39 = vld [vmem:[%s564_s1 + $0x118] sm:$0xff]  ;;  %v340_v40 = vld [vmem:[%s563_s0 + $0xa] sm:$0x3]  ;;  %vm297_vm1 = vcmask 74752  }
  0x14   :  { %197 = vmatpush.msrb.mxu1 %v342_v33  ;;  %260 = vmatpush.msrb.mxu3 %v353_v35  ;;  %v361_v41 = vld [vmem:[%s564_s1 + $0x110] sm:$0xff]  ;;  %v360_v42 = vld [vmem:[%s564_s1 + $0x108] sm:$0xff]  ;;  %v359_v43 = vld [vmem:[%s564_s1 + $0x100] sm:$0xff] }
  0x15   :  { %339 = vmatmul.msk.f32.vlgmr.msrb.gmra.mxu0 %vm24_vm0, %v334_v36  ;;  %357 = vmatmul.msk.f32.vlgmr.msrb.gmra.mxu3 %vm24_vm0, %v352_v37  ;;  %v358_v44 = vld [vmem:[%s563_s0 + $0x10] sm:$0x3]  ;;  %v365_v45 = vld [vmem:[%s565_s2] ss:$0 sm:$0xff]  ;;  %s392_s0 = smov [#allocation2]   ;;  %s306_s2 = sshll.u32 %s566_s3, 4  ;;  %s307_s2 = int_to_ptr.hbm [resolvable:$true] %s306_s2 }
  0x16   :  { %198 = vmatpush.msrb.mxu1 %v341_v38  ;;  %288 = vmatpush.msra.mxu0 %v362_v39  ;;  %s304_s1 = sshll.u32 %s392_s0, 4  ;;  %s305_s1 = int_to_ptr.vmem [resolvable:$true] %s304_s1 }
  0x17   :  { %345 = vmatmul.msk.f32.vlgmr.msrb.gmra.mxu1 %vm24_vm0, %v340_v40 }
  0x18   :  { %289 = vmatpush.msra.mxu0 %v361_v41 }
  0x1a   :  { %290 = vmatpush.msra.mxu0 %v360_v42 }
  0x1c   :  { %291 = vmatpush.msra.mxu0 %v359_v43 }
  0x1d   :  { %363 = vmatmul.msk.f32.vlgmr.msra.gmra.mxu0 %vm24_vm0, %v358_v44 }
  0x88   :  { %v45_v46 = vpop.f32.mrf.mxu0 }
  0x89   :  { %v48_v47 = vadd.f32 %v365_v45, %v45_v46 }
  0x8c   :  { %v76_v48 = vpop.f32.mrf.mxu1 }
  0x8d   :  { %v79_v49 = vadd.f32 %v76_v48, %v48_v47  ;;  %v107_v50 = vpop.f32.mrf.mxu2 }
  0x8f   :  { %v110_v51 = vadd.f32 %v107_v50, %v79_v49  ;;  %v138_v52 = vpop.f32.mrf.mxu3 }
  0x91   :  { %v141_v53 = vadd.f32 %v138_v52, %v110_v51 }
  0x92   :  { %v169_v54 = vpop.f32.mrf.mxu0 }
  0x93   :  { %v172_v55 = vadd.f32 %v169_v54, %v141_v53 }
  0x94   :  { %v200_v56 = vpop.f32.mrf.mxu1 }
  0x95   :  { %v203_v57 = vadd.f32 %v200_v56, %v172_v55 }
  0x96   :  { %v231_v58 = vpop.f32.mrf.mxu2 }
  0x97   :  { %v234_v59 = vadd.f32 %v231_v58, %v203_v57 }
  0x98   :  { %v262_v60 = vpop.f32.mrf.mxu3 }
  0x99   :  { %v265_v61 = vadd.f32 %v262_v60, %v234_v59 }
  0x9a   :  { %v293_v62 = vpop.f32.mrf.mxu0 }
  0x9b   :  { %v296_v63 = vadd.f32 %v293_v62, %v265_v61 }
  0x9d   :  { %298 = vst.msk [vmem:[#allocation2] sm:$0x3] %vm297_vm1, %v296_v63 }
  0x9e   :  { %309 = dma.vmem_to_hbm [thread:$0]  %s305_s1, 32, %s307_s2, [#allocation3]  }
  0x9f   :  { %390 = dma.done.wait [#allocation3], 32  }
  0xa0   :  { %391 = vsyncadd [#allocation3], 4294967264 }
  0xa1   :  { %314 = vsyncpa [#allocation3], 1 }

</bundles_post_ra>
